<compile_context>
chip_gen: v6e
topology: v6e:2x2x1
jax: 0.10.0
libtpu: 0.0.40
codegen_flags: <defaults>
</compile_context>

<pallas_src>
import jax
import jax.numpy as jnp
from jax.experimental import pallas as pl
from jax.experimental.pallas import tpu as pltpu

_WPAD = 8  # zero-column pad width for the conv2 intermediate (f32 sublane tile)


def _im2col_3x3(xp, out_h, out_w, w0=0):
  """Build the (out_h*out_w, 9*Cin) im2col patch for a 3x3/stride-1 conv.

  xp: (out_h + 2, >= w0 + 2 + out_w, Cin). Tap order is (dh, dw, cin),
  matching a row-major reshape of an HWIO (3, 3, Cin, Cout) weight.
  """
  taps = []
  for dh in range(3):
    for dw in range(3):
      taps.append(xp[dh:dh + out_h, w0 + dw:w0 + dw + out_w, :])
  patch = jnp.concatenate(taps, axis=-1)          # (H, W, 9*Cin), lane concat
  return patch.reshape(out_h * out_w, patch.shape[-1])


def basic_block_kernel(xpad_ref, w1_ref, b1_ref, w2_ref, b2_ref, o_ref):
  """One image per grid step.

  xpad_ref: (1, H+2, W+2, C)  bf16, spatially zero-padded NHWC input block
  w1_ref/w2_ref: (9*C, C)     bf16, BN-scale-folded conv weights (im2col layout)
  b1_ref/b2_ref: (1, C)       f32, folded BatchNorm biases
  o_ref: (1, H, W, C)         f32 output block
  """
  _, Hp, Wp, C = xpad_ref.shape
  H, W = Hp - 2, Wp - 2
  Cout = w1_ref.shape[-1]

  xp = xpad_ref[0]                                       # (H+2, W+2, C) bf16

  # ---- conv1 (BN1 scale folded) as one K=9C MXU matmul, bias + ReLU ----
  p1 = _im2col_3x3(xp, H, W)                             # (H*W, 9C) bf16
  acc1 = jnp.dot(p1, w1_ref[...], preferred_element_type=jnp.float32)
  out1 = jnp.maximum(acc1 + b1_ref[...], 0.0)            # (H*W, C) f32

  # ---- zero-pad the intermediate as a value (no scratch round trip) ----
  # W padding uses 8 zero columns per side so the sublane-dim concatenation
  # stays tile-aligned; conv2 taps simply start at column _WPAD - 1.
  o1 = out1.reshape(H, W, Cout)
  zrow = jnp.zeros((1, W, Cout), jnp.float32)
  o1 = jnp.concatenate([zrow, o1, zrow], axis=0)         # (H+2, W, C)
  zcol = jnp.zeros((H + 2, _WPAD, Cout), jnp.float32)
  o1p = jnp.concatenate([zcol, o1, zcol], axis=1).astype(xp.dtype)

  # ---- conv2 (BN2 scale folded), bias, residual add, ReLU ----
  p2 = _im2col_3x3(o1p, H, W, w0=_WPAD - 1)              # (H*W, 9C) bf16
  acc2 = jnp.dot(p2, w2_ref[...], preferred_element_type=jnp.float32)
  out2 = acc2 + b2_ref[...]                              # (H*W, C) f32

  res = xp[1:H + 1, 1:W + 1, :].reshape(H * W, C).astype(jnp.float32)
  o = jnp.maximum(out2 + res, 0.0)
  o_ref[0] = o.reshape(H, W, Cout).astype(o_ref.dtype)


def _fold_bn(gamma, beta, mean, var, eps=1e-5):
  scale = gamma / jnp.sqrt(var + eps)
  bias = beta - mean * scale
  return scale, bias


def _prep_conv_weight(w_oihw, scale):
  """OIHW -> HWIO, fold BN scale into output channels, flatten to (9*Cin, Cout)."""
  w_hwio = jnp.transpose(w_oihw, (2, 3, 1, 0)).astype(jnp.float32)
  w_hwio = w_hwio * scale[None, None, None, :]
  kh, kw, cin, cout = w_hwio.shape
  return w_hwio.reshape(kh * kw * cin, cout).astype(jnp.bfloat16)


@jax.jit
def basic_block_forward(x_nchw, w1_oihw, g1, be1, m1, v1,
                        w2_oihw, g2, be2, m2, v2):
  """x_nchw: (N, C, H, W) float32; returns (N, C, H, W) float32."""
  N, C, H, W = x_nchw.shape
  # Only the stride=1 / downsample=None BasicBlock is supported: the residual
  # add requires Cout == Cin and unchanged spatial dims. Fail loudly otherwise.
  assert w1_oihw.shape == (C, C, 3, 3), "conv1 must be 3x3 with Cout == Cin"
  assert w2_oihw.shape == (C, C, 3, 3), "conv2 must be 3x3 with Cout == Cin"

  s1, b1 = _fold_bn(g1, be1, m1, v1)
  s2, b2 = _fold_bn(g2, be2, m2, v2)
  w1 = _prep_conv_weight(w1_oihw, s1)                    # (9C, C) bf16
  w2 = _prep_conv_weight(w2_oihw, s2)
  b1 = b1.reshape(1, C).astype(jnp.float32)
  b2 = b2.reshape(1, C).astype(jnp.float32)

  # NCHW -> NHWC + spatial pad + bf16 cast (XLA fuses these into one pass).
  x = jnp.transpose(x_nchw, (0, 2, 3, 1))
  xpad = jnp.pad(x, ((0, 0), (1, 1), (1, 1), (0, 0))).astype(jnp.bfloat16)
  Hp, Wp = H + 2, W + 2

  flops = 4 * N * H * W * 9 * C * C                      # two K=9C matmuls
  bytes_accessed = (N * Hp * Wp * C * 2 + N * H * W * C * 4
                    + 2 * 9 * C * C * 2 + 2 * C * 4)

  out_nhwc = pl.pallas_call(
      basic_block_kernel,
      grid=(N,),
      in_specs=[
          pl.BlockSpec((1, Hp, Wp, C), lambda n: (n, 0, 0, 0)),
          pl.BlockSpec((9 * C, C), lambda n: (0, 0)),
          pl.BlockSpec((1, C), lambda n: (0, 0)),
          pl.BlockSpec((9 * C, C), lambda n: (0, 0)),
          pl.BlockSpec((1, C), lambda n: (0, 0)),
      ],
      out_specs=pl.BlockSpec((1, H, W, C), lambda n: (n, 0, 0, 0)),
      out_shape=jax.ShapeDtypeStruct((N, H, W, C), jnp.float32),
      compiler_params=pltpu.CompilerParams(
          dimension_semantics=("parallel",),
          vmem_limit_bytes=32 * 1024 * 1024),
      cost_estimate=pl.CostEstimate(
          flops=flops, transcendentals=0, bytes_accessed=bytes_accessed),
  )(xpad, w1, b1, w2, b2)

  return jnp.transpose(out_nhwc, (0, 3, 1, 2))           # back to NCHW


def _reference(x, w1, g1, be1, m1, v1, w2, g2, be2, m2, v2, eps=1e-5):
  """Pure-JAX f32 reference mirroring the PyTorch module (NCHW / OIHW)."""
  dn = ('NCHW', 'OIHW', 'NCHW')

  def bn(o, g, b, m, v):
    g = g.reshape(1, -1, 1, 1); b = b.reshape(1, -1, 1, 1)
    m = m.reshape(1, -1, 1, 1); v = v.reshape(1, -1, 1, 1)
    return (o - m) / jnp.sqrt(v + eps) * g + b

  o = jax.lax.conv_general_dilated(x, w1, (1, 1), 'SAME', dimension_numbers=dn)
  o = jnp.maximum(bn(o, g1, be1, m1, v1), 0.0)
  o = jax.lax.conv_general_dilated(o, w2, (1, 1), 'SAME', dimension_numbers=dn)
  o = bn(o, g2, be2, m2, v2)
  return jnp.maximum(o + x, 0.0)


if __name__ == "__main__":
  # BasicBlock(inplanes=4, planes=4, stride=1, downsample=None)
  N, C, H, W = 2, 4, 16, 16
  key = jax.random.PRNGKey(0)
  ks = jax.random.split(key, 11)

  x = jax.random.normal(ks[0], (N, C, H, W), jnp.float32)
  w1 = 0.1 * jax.random.normal(ks[1], (C, C, 3, 3), jnp.float32)   # OIHW
  w2 = 0.1 * jax.random.normal(ks[2], (C, C, 3, 3), jnp.float32)

  g1 = 1.0 + 0.1 * jax.random.normal(ks[3], (C,), jnp.float32)
  be1 = 0.1 * jax.random.normal(ks[4], (C,), jnp.float32)
  m1 = 0.1 * jax.random.normal(ks[5], (C,), jnp.float32)
  v1 = jnp.abs(jax.random.normal(ks[6], (C,), jnp.float32)) + 0.5
  g2 = 1.0 + 0.1 * jax.random.normal(ks[7], (C,), jnp.float32)
  be2 = 0.1 * jax.random.normal(ks[8], (C,), jnp.float32)
  m2 = 0.1 * jax.random.normal(ks[9], (C,), jnp.float32)
  v2 = jnp.abs(jax.random.normal(ks[10], (C,), jnp.float32)) + 0.5

  out = basic_block_forward(x, w1, g1, be1, m1, v1, w2, g2, be2, m2, v2)
  out = jax.block_until_ready(out)

  ref = _reference(x, w1, g1, be1, m1, v1, w2, g2, be2, m2, v2)
  assert out.shape == (N, C, H, W)
  # Kernel uses bf16 MXU operands (f32 accumulation); reference is all-f32,
  # so use a tolerance comfortably above bf16 rounding noise.
  assert jnp.allclose(out, ref, rtol=5e-2, atol=5e-2), "mismatch vs reference"

  print("KERNEL_OK")
</pallas_src>

<mosaic_0001>
module attributes {stable_mosaic.version = 11 : i64} {
  func.func @basic_block_kernel(%arg0: i32, %arg1: memref<1x18x18x4xbf16, #tpu.memory_space<vmem>>, %arg2: memref<36x4xbf16, #tpu.memory_space<vmem>>, %arg3: memref<1x4xf32, #tpu.memory_space<vmem>>, %arg4: memref<36x4xbf16, #tpu.memory_space<vmem>>, %arg5: memref<1x4xf32, #tpu.memory_space<vmem>>, %arg6: memref<1x16x16x4xf32, #tpu.memory_space<vmem>>) attributes {dimension_semantics = [#tpu.dimension_semantics<parallel>], iteration_bounds = array<i64: 2>, scalar_prefetch = 0 : i64, scratch_operands = 0 : i64, tpu.core_type = #tpu.core_type<tc>, window_params = [{transform_indices = @transform_0, window_bounds = array<i64: 1, 18, 18, 4>}, {pipeline_mode = #tpu.pipeline_mode<synchronous>, transform_indices = @transform_1, window_bounds = array<i64: 36, 4>}, {pipeline_mode = #tpu.pipeline_mode<synchronous>, transform_indices = @transform_2, window_bounds = array<i64: 1, 4>}, {pipeline_mode = #tpu.pipeline_mode<synchronous>, transform_indices = @transform_3, window_bounds = array<i64: 36, 4>}, {pipeline_mode = #tpu.pipeline_mode<synchronous>, transform_indices = @transform_4, window_bounds = array<i64: 1, 4>}, {transform_indices = @transform_5, window_bounds = array<i64: 1, 16, 16, 4>}]} {
    %c0 = arith.constant 0 : index
    %c0_0 = arith.constant 0 : index
    %c0_1 = arith.constant 0 : index
    %c0_2 = arith.constant 0 : index
    %0 = vector.load %arg1[%c0, %c0_0, %c0_1, %c0_2] : memref<1x18x18x4xbf16, #tpu.memory_space<vmem>>, vector<1x18x18x4xbf16>
    %1 = vector.shape_cast %0 : vector<1x18x18x4xbf16> to vector<18x18x4xbf16>
    %2 = vector.extract_strided_slice %1 {offsets = [0, 0, 0], sizes = [16, 16, 4], strides = [1, 1, 1]} : vector<18x18x4xbf16> to vector<16x16x4xbf16>
    %3 = vector.extract_strided_slice %1 {offsets = [0, 1, 0], sizes = [16, 16, 4], strides = [1, 1, 1]} : vector<18x18x4xbf16> to vector<16x16x4xbf16>
    %4 = vector.extract_strided_slice %1 {offsets = [0, 2, 0], sizes = [16, 16, 4], strides = [1, 1, 1]} : vector<18x18x4xbf16> to vector<16x16x4xbf16>
    %5 = vector.extract_strided_slice %1 {offsets = [1, 0, 0], sizes = [16, 16, 4], strides = [1, 1, 1]} : vector<18x18x4xbf16> to vector<16x16x4xbf16>
    %6 = vector.extract_strided_slice %1 {offsets = [1, 1, 0], sizes = [16, 16, 4], strides = [1, 1, 1]} : vector<18x18x4xbf16> to vector<16x16x4xbf16>
    %7 = vector.extract_strided_slice %1 {offsets = [1, 2, 0], sizes = [16, 16, 4], strides = [1, 1, 1]} : vector<18x18x4xbf16> to vector<16x16x4xbf16>
    %8 = vector.extract_strided_slice %1 {offsets = [2, 0, 0], sizes = [16, 16, 4], strides = [1, 1, 1]} : vector<18x18x4xbf16> to vector<16x16x4xbf16>
    %9 = vector.extract_strided_slice %1 {offsets = [2, 1, 0], sizes = [16, 16, 4], strides = [1, 1, 1]} : vector<18x18x4xbf16> to vector<16x16x4xbf16>
    %10 = vector.extract_strided_slice %1 {offsets = [2, 2, 0], sizes = [16, 16, 4], strides = [1, 1, 1]} : vector<18x18x4xbf16> to vector<16x16x4xbf16>
    %11 = tpu.concatenate %2, %3, %4, %5, %6, %7, %8, %9, %10 in 2 : vector<16x16x4xbf16>, vector<16x16x4xbf16>, vector<16x16x4xbf16>, vector<16x16x4xbf16>, vector<16x16x4xbf16>, vector<16x16x4xbf16>, vector<16x16x4xbf16>, vector<16x16x4xbf16>, vector<16x16x4xbf16> -> vector<16x16x36xbf16>
    %12 = vector.shape_cast %11 : vector<16x16x36xbf16> to vector<256x36xbf16>
    %c0_3 = arith.constant 0 : index
    %c0_4 = arith.constant 0 : index
    %13 = vector.load %arg2[%c0_3, %c0_4] : memref<36x4xbf16, #tpu.memory_space<vmem>>, vector<36x4xbf16>
    %cst = arith.constant dense<0.000000e+00> : vector<256x4xf32>
    %14 = tpu.matmul %12, %13, %cst {dimension_numbers = #tpu.dot_dimension_numbers<[1], [0], [0], [1], [0, 0, 1, 1], [], []>} : vector<256x36xbf16>, vector<36x4xbf16>, vector<256x4xf32> -> vector<256x4xf32>
    %c0_5 = arith.constant 0 : index
    %c0_6 = arith.constant 0 : index
    %15 = vector.load %arg3[%c0_5, %c0_6] : memref<1x4xf32, #tpu.memory_space<vmem>>, vector<1x4xf32>
    %16 = vector.broadcast %15 : vector<1x4xf32> to vector<256x4xf32>
    %17 = arith.addf %14, %16 : vector<256x4xf32>
    %cst_7 = arith.constant 0.000000e+00 : f32
    %18 = vector.broadcast %cst_7 : f32 to vector<256x4xf32>
    %19 = arith.maximumf %17, %18 : vector<256x4xf32>
    %20 = vector.shape_cast %19 : vector<256x4xf32> to vector<16x16x4xf32>
    %cst_8 = arith.constant 0.000000e+00 : f32
    %21 = vector.broadcast %cst_8 : f32 to vector<1x16x4xf32>
    %22 = tpu.concatenate %21, %20, %21 in 0 : vector<1x16x4xf32>, vector<16x16x4xf32>, vector<1x16x4xf32> -> vector<18x16x4xf32>
    %cst_9 = arith.constant 0.000000e+00 : f32
    %23 = vector.broadcast %cst_9 : f32 to vector<18x8x4xf32>
    %24 = tpu.concatenate %23, %22, %23 in 1 : vector<18x8x4xf32>, vector<18x16x4xf32>, vector<18x8x4xf32> -> vector<18x32x4xf32>
    %25 = arith.truncf %24 : vector<18x32x4xf32> to vector<18x32x4xbf16>
    %26 = vector.extract_strided_slice %25 {offsets = [0, 7, 0], sizes = [16, 16, 4], strides = [1, 1, 1]} : vector<18x32x4xbf16> to vector<16x16x4xbf16>
    %27 = vector.extract_strided_slice %25 {offsets = [0, 8, 0], sizes = [16, 16, 4], strides = [1, 1, 1]} : vector<18x32x4xbf16> to vector<16x16x4xbf16>
    %28 = vector.extract_strided_slice %25 {offsets = [0, 9, 0], sizes = [16, 16, 4], strides = [1, 1, 1]} : vector<18x32x4xbf16> to vector<16x16x4xbf16>
    %29 = vector.extract_strided_slice %25 {offsets = [1, 7, 0], sizes = [16, 16, 4], strides = [1, 1, 1]} : vector<18x32x4xbf16> to vector<16x16x4xbf16>
    %30 = vector.extract_strided_slice %25 {offsets = [1, 8, 0], sizes = [16, 16, 4], strides = [1, 1, 1]} : vector<18x32x4xbf16> to vector<16x16x4xbf16>
    %31 = vector.extract_strided_slice %25 {offsets = [1, 9, 0], sizes = [16, 16, 4], strides = [1, 1, 1]} : vector<18x32x4xbf16> to vector<16x16x4xbf16>
    %32 = vector.extract_strided_slice %25 {offsets = [2, 7, 0], sizes = [16, 16, 4], strides = [1, 1, 1]} : vector<18x32x4xbf16> to vector<16x16x4xbf16>
    %33 = vector.extract_strided_slice %25 {offsets = [2, 8, 0], sizes = [16, 16, 4], strides = [1, 1, 1]} : vector<18x32x4xbf16> to vector<16x16x4xbf16>
    %34 = vector.extract_strided_slice %25 {offsets = [2, 9, 0], sizes = [16, 16, 4], strides = [1, 1, 1]} : vector<18x32x4xbf16> to vector<16x16x4xbf16>
    %35 = tpu.concatenate %26, %27, %28, %29, %30, %31, %32, %33, %34 in 2 : vector<16x16x4xbf16>, vector<16x16x4xbf16>, vector<16x16x4xbf16>, vector<16x16x4xbf16>, vector<16x16x4xbf16>, vector<16x16x4xbf16>, vector<16x16x4xbf16>, vector<16x16x4xbf16>, vector<16x16x4xbf16> -> vector<16x16x36xbf16>
    %36 = vector.shape_cast %35 : vector<16x16x36xbf16> to vector<256x36xbf16>
    %c0_10 = arith.constant 0 : index
    %c0_11 = arith.constant 0 : index
    %37 = vector.load %arg4[%c0_10, %c0_11] : memref<36x4xbf16, #tpu.memory_space<vmem>>, vector<36x4xbf16>
    %cst_12 = arith.constant dense<0.000000e+00> : vector<256x4xf32>
    %38 = tpu.matmul %36, %37, %cst_12 {dimension_numbers = #tpu.dot_dimension_numbers<[1], [0], [0], [1], [0, 0, 1, 1], [], []>} : vector<256x36xbf16>, vector<36x4xbf16>, vector<256x4xf32> -> vector<256x4xf32>
    %c0_13 = arith.constant 0 : index
    %c0_14 = arith.constant 0 : index
    %39 = vector.load %arg5[%c0_13, %c0_14] : memref<1x4xf32, #tpu.memory_space<vmem>>, vector<1x4xf32>
    %40 = vector.broadcast %39 : vector<1x4xf32> to vector<256x4xf32>
    %41 = arith.addf %38, %40 : vector<256x4xf32>
    %42 = vector.extract_strided_slice %1 {offsets = [1, 1, 0], sizes = [16, 16, 4], strides = [1, 1, 1]} : vector<18x18x4xbf16> to vector<16x16x4xbf16>
    %43 = vector.shape_cast %42 : vector<16x16x4xbf16> to vector<256x4xbf16>
    %44 = arith.extf %43 : vector<256x4xbf16> to vector<256x4xf32>
    %45 = arith.addf %41, %44 : vector<256x4xf32>
    %cst_15 = arith.constant 0.000000e+00 : f32
    %46 = vector.broadcast %cst_15 : f32 to vector<256x4xf32>
    %47 = arith.maximumf %45, %46 : vector<256x4xf32>
    %48 = vector.shape_cast %47 : vector<256x4xf32> to vector<16x16x4xf32>
    %c0_16 = arith.constant 0 : index
    %c0_17 = arith.constant 0 : index
    %c0_18 = arith.constant 0 : index
    %c0_19 = arith.constant 0 : index
    %49 = vector.load %arg6[%c0_16, %c0_17, %c0_18, %c0_19] : memref<1x16x16x4xf32, #tpu.memory_space<vmem>>, vector<1x16x16x4xf32>
    %50 = vector.shape_cast %49 : vector<1x16x16x4xf32> to vector<16x16x4xf32>
    %51 = vector.shape_cast %48 : vector<16x16x4xf32> to vector<1x16x16x4xf32>
    tpu.vector_store %arg6[%c0_16, %c0_17, %c0_18, %c0_19], %51 {strides = array<i32>} : memref<1x16x16x4xf32, #tpu.memory_space<vmem>>, vector<1x16x16x4xf32>,
    return
  }
  func.func @transform_0(%arg0: i32) -> (i32, i32, i32, i32) {
    %c0_i32 = arith.constant 0 : i32
    %c0_i32_0 = arith.constant 0 : i32
    %c0_i32_1 = arith.constant 0 : i32
    %c0_i32_2 = arith.constant 0 : i32
    return %arg0, %c0_i32, %c0_i32_0, %c0_i32_1 : i32, i32, i32, i32
  }
  func.func @transform_1(%arg0: i32) -> (i32, i32) {
    %c0_i32 = arith.constant 0 : i32
    %c0_i32_0 = arith.constant 0 : i32
    %c0_i32_1 = arith.constant 0 : i32
    return %c0_i32, %c0_i32_0 : i32, i32
  }
  func.func @transform_2(%arg0: i32) -> (i32, i32) {
    %c0_i32 = arith.constant 0 : i32
    %c0_i32_0 = arith.constant 0 : i32
    %c0_i32_1 = arith.constant 0 : i32
    return %c0_i32, %c0_i32_0 : i32, i32
  }
  func.func @transform_3(%arg0: i32) -> (i32, i32) {
    %c0_i32 = arith.constant 0 : i32
    %c0_i32_0 = arith.constant 0 : i32
    %c0_i32_1 = arith.constant 0 : i32
    return %c0_i32, %c0_i32_0 : i32, i32
  }
  func.func @transform_4(%arg0: i32) -> (i32, i32) {
    %c0_i32 = arith.constant 0 : i32
    %c0_i32_0 = arith.constant 0 : i32
    %c0_i32_1 = arith.constant 0 : i32
    return %c0_i32, %c0_i32_0 : i32, i32
  }
  func.func @transform_5(%arg0: i32) -> (i32, i32, i32, i32) {
    %c0_i32 = arith.constant 0 : i32
    %c0_i32_0 = arith.constant 0 : i32
    %c0_i32_1 = arith.constant 0 : i32
    %c0_i32_2 = arith.constant 0 : i32
    return %arg0, %c0_i32, %c0_i32_0, %c0_i32_1 : i32, i32, i32, i32
  }
}

</mosaic_0001>

<bundles_post_ra>
// kernel: basic_block_forward.1
= control target key start
LH: loop header
LB: loop body
LE: loop exit
PB: predicated region body
PF: predicated region fallthrough
CT: control target
= control target key end

     0   :  { %s4313_s18 = smov 0   ;;  %s7155_s0 = inlined_call_operand.vmem [shape: bf16[2,18,18,4], index: 0, kind: input, shape index: {}]   ;;  %s7156_s1 = inlined_call_operand.vmem [shape: bf16[36,4], index: 1, kind: input, shape index: {}]   ;;  %s7157_s2 = inlined_call_operand.vmem [shape: f32[1,4], index: 2, kind: input, shape index: {}]   ;;  %s7158_s3 = inlined_call_operand.vmem [shape: bf16[36,4], index: 3, kind: input, shape index: {}]   ;;  %s7159_s4 = inlined_call_operand.vmem [shape: f32[1,4], index: 4, kind: input, shape index: {}]   ;;  %s7160_s5 = inlined_call_operand.vmem [shape: f32[2,16,16,4], index: 5, kind: output, shape index: {}]  }
   0x1 LB: > { %s3940_s19 = sadd.s32 4294967295, %s4270_s18   ;;  %p3944_p0 = scmp.ge.s32.totalorder %s4270_s18, 1  ;;  %s4270_s18 = sphi %s4313_s18, %s15_s18  }
   0x2   : > { %p187_p1 = scmp.lt.s32.totalorder %s4270_s18, 3 }
   0x4   : > { %p188_p2 = pnand %p3944_p0, %p187_p1 }
   0x6   : > { %191 = sbr.rel (%p188_p2) target bundleno = 1343 (0x53f), region = 40 }
   0xb   : > { %p215_p3 = scmp.lt.s32.totalorder %s3940_s19, 1  ;;  %vm408_vm0 = vsmask.f32 7424  ;;  %s4272_s24 = smov 4   ;;  %vm633_vm1 = vcmask 1046528   ;;  %vm1276_vm2 = vcmask 1041408  }
   0xc   : > { %s4273_s25 = smov 8   ;;  %s4274_s26 = smov 12   ;;  %vm952_vm3 = vcmask 31744   ;;  %vm985_vm4 = vcmask 64512   ;;  %vm1018_vm5 = vcmask 97280   ;;  %vm1051_vm6 = vcmask 130048  }
   0xd   : > { %s7634_s19 = smov (!%p215_p3, %s3940_s19), 1  ;;  %s4275_s27 = smov 16   ;;  %vm1084_vm7 = vcmask 162816   ;;  %vm1117_vm8 = vcmask 195584   ;;  %vm1150_vm9 = vcmask 228352   ;;  %vm1183_vm10 = vcmask 261120  }
   0xe   : > { %s4143_s20 = smul.u32 216, %s7634_s19  ;;  %s4276_s28 = smov 20   ;;  %vm1243_vm11 = vcmask 293888   ;;  %vm2858_vm12 = vsmask.f32 4352 }
   0xf   : > { %s4277_s10 = smov 24   ;;  %s4278_s11 = smov 28   ;;  %vm3338_vm13 = vsmask.f32 3328  ;;  %vm3339_vm14 = vsmask.f32 7440 }
  0x10   : > { %s4327_s23 = scalar_lea.vmem %s7155_s0, %s4143_s20  ;;  %s4279_s12 = smov 32   ;;  %vm6719_vm15 = vmor %vm3338_vm13, %vm3339_vm14 }
  0x11   : > { %v232_v0 = vld [vmem:[%s4327_s23 + $0x18] sm:$0xf]  ;;  %v233_v1 = vld [vmem:[%s4327_s23 + $0x1c] sm:$0xf]  ;;  %v234_v2 = vld [vmem:[%s4327_s23 + $0x20] sm:$0x1] }
  0x12   : > { %v4332_v3 = vcombine.low %v232_v0, %v233_v1  ;;  %v4334_v4 = vcombine.low %v234_v2, %v234_v2  ;;  %v4337_v5 = vld [vmem:[%s4327_s23] sm:$0xff]   ;;  %v4340_v6 = vld [vmem:[%s4327_s23 + $0x8] ss:$0 sps:$4 sm:$0x11]   ;;  %v237_v15 = vld [vmem:[%s4327_s23 + $0x2c] sm:$0x1] }
  0x13   : > { %v235_v7 = vld [vmem:[%s4327_s23 + $0x24] sm:$0xf]  ;;  %v236_v11 = vld [vmem:[%s4327_s23 + $0x28] sm:$0xf]  ;;  %v410_v12 = vshrl.u32 %v4337_v5, 16  ;;  %v412_v13 = vshll.u32 %v4337_v5, 16  ;;  %v4353_v19 = vcombine.low %v237_v15, %v237_v15 }
  0x14   : > { %v434_v8 = vshrl.u32 %v4332_v3, 16  ;;  %v436_v9 = vshll.u32 %v4332_v3, 16  ;;  %v441_v10 = vshll.u32 %v4334_v4, 16  ;;  %v417_v14 = vshll.u32 %v4340_v6, 16  ;;  %v229_v20 = vld [vmem:[%s4327_s23 + $0xc] sm:$0xf] }
  0x15   : > { %v4351_v16 = vcombine.low %v235_v7, %v236_v11  ;;  %v230_v21 = vld [vmem:[%s4327_s23 + $0x10] sm:$0xf]  ;;  %v414_v22 = vrot.slane %v412_v13, 1  ;;  %v231_v26 = vld [vmem:[%s4327_s23 + $0x14] sm:$0x1]  ;;  %v453_v28 = vshll.u32 %v4353_v19, 16 }
  0x16   : > { %v438_v17 = vrot.slane %v436_v9, 1  ;;  %v443_v18 = vrot.slane %v441_v10, 1  ;;  %v419_v23 = vrot.slane %v417_v14, 1  ;;  %v4361_v29 = vcombine.low %v229_v20, %v230_v21  ;;  %v241_v31 = vld [vmem:[%s4327_s23 + $0x3c] sm:$0xf] }
  0x17   : > { %v446_v24 = vshrl.u32 %v4351_v16, 16  ;;  %v448_v25 = vshll.u32 %v4351_v16, 16  ;;  %v4363_v30 = vcombine.low %v231_v26, %v231_v26  ;;  %v242_v32 = vld [vmem:[%s4327_s23 + $0x40] sm:$0xf]  ;;  %v415_v33 = vor.u32 %v414_v22, %v410_v12  ;;  %v243_v35 = vld [vmem:[%s4327_s23 + $0x44] sm:$0x1] }
  0x18   : > { %v439_v27 = vor.u32 %v438_v17, %v434_v8  ;;  %v4368_v36 = vcombine.low %v241_v31, %v242_v32  ;;  %v238_v37 = vld [vmem:[%s4327_s23 + $0x30] sm:$0xf]  ;;  %v455_v39 = vrot.slane %v453_v28, 1  ;;  %v422_v40 = vshrl.u32 %v4361_v29, 16  ;;  %v239_v42 = vld [vmem:[%s4327_s23 + $0x34] sm:$0xf] }
  0x19   : > { %v450_v34 = vrot.slane %v448_v25, 1  ;;  %v424_v41 = vshll.u32 %v4361_v29, 16  ;;  %v420_v43 = vsel %vm408_vm0, %v415_v33, %v419_v23  ;;  %v429_v45 = vshll.u32 %v4363_v30, 16  ;;  %v240_v47 = vld [vmem:[%s4327_s23 + $0x38] sm:$0x1] }
  0x1a   : > { %v4372_v38 = vsel %vm408_vm0, %v439_v27, %v443_v18  ;;  %v4381_v46 = vcombine.low %v243_v35, %v243_v35  ;;  %v247_v48 = vld [vmem:[%s4327_s23 + $0x54] sm:$0xf]  ;;  %601 = vrot.lane.b32.xlu0 %v420_v43, %s4272_s24  ;;  %v470_v50 = vshrl.u32 %v4368_v36, 16  ;;  %v472_v51 = vshll.u32 %v4368_v36, 16  ;;  %v248_v53 = vld [vmem:[%s4327_s23 + $0x58] sm:$0xf] }
  0x1b   : > { %605 = vrot.lane.b32.xlu1 %v4372_v38, %s4272_s24  ;;  %v451_v44 = vor.u32 %v450_v34, %v446_v24  ;;  %v426_v49 = vrot.slane %v424_v41, 1  ;;  %v4388_v52 = vcombine.low %v238_v37, %v239_v42  ;;  %v431_v55 = vrot.slane %v429_v45, 1  ;;  %v249_v58 = vld [vmem:[%s4327_s23 + $0x5c] sm:$0x1]  ;;  %v244_v59 = vld [vmem:[%s4327_s23 + $0x48] sm:$0xf] }
  0x1c   : > { %v477_v56 = vshll.u32 %v4381_v46, 16  ;;  %v4395_v57 = vcombine.low %v240_v47, %v240_v47  ;;  %v474_v61 = vrot.slane %v472_v51, 1  ;;  %v245_v0 = vld [vmem:[%s4327_s23 + $0x4c] sm:$0xf]  ;;  %v4405_v7 = vcombine.low %v247_v48, %v248_v53  ;;  %v246_v9 = vld [vmem:[%s4327_s23 + $0x50] sm:$0x1] }
  0x1d   : > { %v4392_v54 = vsel %vm408_vm0, %v451_v44, %v455_v39  ;;  %v427_v60 = vor.u32 %v426_v49, %v422_v40  ;;  %v458_v62 = vshrl.u32 %v4388_v52, 16  ;;  %v460_v63 = vshll.u32 %v4388_v52, 16  ;;  %v253_v10 = vld [vmem:[%s4327_s23 + $0x6c] sm:$0xf]  ;;  %v254_v15 = vld [vmem:[%s4327_s23 + $0x70] sm:$0xf] }
  0x1e   : > { %v479_v1 = vrot.slane %v477_v56, 1  ;;  %v465_v2 = vshll.u32 %v4395_v57, 16  ;;  %v4407_v8 = vcombine.low %v249_v58, %v249_v58  ;;  %v475_v12 = vor.u32 %v474_v61, %v470_v50  ;;  %v255_v17 = vld [vmem:[%s4327_s23 + $0x74] sm:$0x1]  ;;  %v250_v23 = vld [vmem:[%s4327_s23 + $0x60] sm:$0xf] }
  0x1f   : > { %607 = vrot.lane.b32.xlu1 %v4392_v54, %s4272_s24  ;;  %v4412_v11 = vsel %vm408_vm0, %v427_v60, %v431_v55  ;;  %v462_v13 = vrot.slane %v460_v63, 1  ;;  %v4414_v14 = vcombine.low %v244_v59, %v245_v0  ;;  %v494_v20 = vshrl.u32 %v4405_v7, 16  ;;  %v251_v28 = vld [vmem:[%s4327_s23 + $0x64] sm:$0xf]  ;;  %v252_v31 = vld [vmem:[%s4327_s23 + $0x68] sm:$0x1] }
  0x20   : > { %603 = vrot.lane.b32.xlu0 %v4412_v11, %s4272_s24  ;;  %v467_v18 = vrot.slane %v465_v2, 1  ;;  %v496_v21 = vshll.u32 %v4405_v7, 16  ;;  %v501_v22 = vshll.u32 %v4407_v8, 16  ;;  %v4425_v24 = vsel %vm408_vm0, %v475_v12, %v479_v1  ;;  %v259_v37 = vld [vmem:[%s4327_s23 + $0x84] sm:$0xf] }
  0x21   : > { %v463_v25 = vor.u32 %v462_v13, %v458_v62  ;;  %v4427_v26 = vcombine.low %v246_v9, %v246_v9  ;;  %v482_v27 = vshrl.u32 %v4414_v14, 16  ;;  %v484_v34 = vshll.u32 %v4414_v14, 16  ;;  %v260_v43 = vld [vmem:[%s4327_s23 + $0x88] sm:$0xf]  ;;  %v261_v44 = vld [vmem:[%s4327_s23 + $0x8c] sm:$0x1] }
  0x22   : > { %v498_v32 = vrot.slane %v496_v21, 1  ;;  %v503_v33 = vrot.slane %v501_v22, 1  ;;  %v4435_v35 = vcombine.low %v253_v10, %v254_v15  ;;  %v4442_v41 = vcombine.low %v255_v17, %v255_v17  ;;  %v256_v50 = vld [vmem:[%s4327_s23 + $0x78] sm:$0xf]  ;;  %v257_v58 = vld [vmem:[%s4327_s23 + $0x7c] sm:$0xf] }
  0x23   : > { %611 = vrot.lane.b32.xlu1 %v4425_v24, %s4272_s24  ;;  %v4439_v39 = vsel %vm408_vm0, %v463_v25, %v467_v18  ;;  %v489_v40 = vshll.u32 %v4427_v26, 16  ;;  %v4444_v42 = vcombine.low %v250_v23, %v251_v28  ;;  %v486_v47 = vrot.slane %v484_v34, 1  ;;  %v258_v63 = vld [vmem:[%s4327_s23 + $0x80] sm:$0x1]  ;;  %v265_v10 = vld [vmem:[%s4327_s23 + $0x9c] sm:$0xf] }
  0x24   : > { %609 = vrot.lane.b32.xlu0 %v4439_v39, %s4272_s24  ;;  %v499_v45 = vor.u32 %v498_v32, %v494_v20  ;;  %v518_v48 = vshrl.u32 %v4435_v35, 16  ;;  %v520_v49 = vshll.u32 %v4435_v35, 16  ;;  %v525_v53 = vshll.u32 %v4442_v41, 16  ;;  %v266_v12 = vld [vmem:[%s4327_s23 + $0xa0] sm:$0xf] }
  0x25   : > { %v491_v51 = vrot.slane %v489_v40, 1  ;;  %v4454_v55 = vcombine.low %v252_v31, %v252_v31  ;;  %v506_v56 = vshrl.u32 %v4444_v42, 16  ;;  %v487_v60 = vor.u32 %v486_v47, %v482_v27  ;;  %v267_v20 = vld [vmem:[%s4327_s23 + $0xa4] sm:$0x1]  ;;  %v262_v21 = vld [vmem:[%s4327_s23 + $0x90] sm:$0xf] }
  0x26   : > { %v4459_v59 = vsel %vm408_vm0, %v499_v45, %v503_v33  ;;  %v522_v61 = vrot.slane %v520_v49, 1  ;;  %v508_v62 = vshll.u32 %v4444_v42, 16  ;;  %v527_v0 = vrot.slane %v525_v53, 1  ;;  %v263_v28 = vld [vmem:[%s4327_s23 + $0x94] sm:$0xf] }
  0x27   : > { %615 = vrot.lane.b32.xlu1 %v4459_v59, %s4272_s24  ;;  %v513_v1 = vshll.u32 %v4454_v55, 16  ;;  %v4466_v2 = vcombine.low %v259_v37, %v260_v43  ;;  %v4468_v9 = vcombine.low %v261_v44, %v261_v44  ;;  %v4473_v13 = vsel %vm408_vm0, %v487_v60, %v491_v51  ;;  %v264_v37 = vld [vmem:[%s4327_s23 + $0x98] sm:$0x1]  ;;  %v271_v47 = vld [vmem:[%s4327_s23 + $0xb4] sm:$0xf] }
  0x28   : > { %v523_v15 = vor.u32 %v522_v61, %v518_v48  ;;  %v510_v17 = vrot.slane %v508_v62, 1  ;;  %v4475_v18 = vcombine.low %v256_v50, %v257_v58  ;;  %613 = vrot.lane.b32.xlu0 %v4473_v13, %s4272_s24  ;;  %v4488_v33 = vcombine.low %v258_v63, %v258_v63  ;;  %v272_v53 = vld [vmem:[%s4327_s23 + $0xb8] sm:$0xf]  ;;  %v268_v63 = vld [vmem:[%s4327_s23 + $0xa8] sm:$0xf] }
  0x29   : > { %7285 = vst [vmem:[#allocation2_spill] sm:$0xff] %v4466_v2  ;;  %v515_v22 = vrot.slane %v513_v1, 1  ;;  %v542_v23 = vshrl.u32 %v4466_v2, 16  ;;  %v544_v25 = vshll.u32 %v4466_v2, 16  ;;  %v549_v27 = vshll.u32 %v4468_v9, 16 }
  0x2a   : > { %v4486_v31 = vsel %vm408_vm0, %v523_v15, %v527_v0  ;;  %v511_v32 = vor.u32 %v510_v17, %v506_v56  ;;  %v530_v34 = vshrl.u32 %v4475_v18, 16  ;;  %v532_v44 = vshll.u32 %v4475_v18, 16  ;;  %v273_v56 = vld [vmem:[%s4327_s23 + $0xbc] sm:$0x1]  ;;  %v269_v15 = vld [vmem:[%s4327_s23 + $0xac] sm:$0xf] }
  0x2b   : > { %619 = vrot.lane.b32.xlu1 %v4486_v31, %s4272_s24  ;;  %v546_v40 = vrot.slane %v544_v25, 1  ;;  %v551_v43 = vrot.slane %v549_v27, 1  ;;  %v4495_v45 = vcombine.low %v265_v10, %v266_v12  ;;  %v537_v49 = vshll.u32 %v4488_v33, 16 }
  0x2c   : > { %v4499_v48 = vsel %vm408_vm0, %v511_v32, %v515_v22  ;;  %v4502_v50 = vcombine.low %v267_v20, %v267_v20  ;;  %v4504_v51 = vcombine.low %v262_v21, %v263_v28  ;;  %v534_v60 = vrot.slane %v532_v44, 1 }
  0x2d   : > { %7286 = vst [vmem:[#allocation3_spill] sm:$0xff] %v4495_v45  ;;  %617 = vrot.lane.b32.xlu0 %v4499_v48, %s4272_s24  ;;  %v547_v58 = vor.u32 %v546_v40, %v542_v23  ;;  %v566_v61 = vshrl.u32 %v4495_v45, 16  ;;  %v568_v62 = vshll.u32 %v4495_v45, 16  ;;  %v539_v0 = vrot.slane %v537_v49, 1  ;;  %v270_v23 = vld [vmem:[%s4327_s23 + $0xb0] sm:$0x1] }
  0x2e   : > { %7287 = vst [vmem:[#allocation4_spill] sm:$0xff] %v4504_v51  ;;  %v573_v1 = vshll.u32 %v4502_v50, 16  ;;  %v4514_v10 = vcombine.low %v264_v37, %v264_v37  ;;  %v554_v12 = vshrl.u32 %v4504_v51, 16  ;;  %v535_v20 = vor.u32 %v534_v60, %v530_v34 }
  0x2f   : > { %v4519_v17 = vsel %vm408_vm0, %v547_v58, %v551_v43  ;;  %v570_v21 = vrot.slane %v568_v62, 1  ;;  %v556_v22 = vshll.u32 %v4504_v51, 16  ;;  %v4526_v28 = vcombine.low %v271_v47, %v272_v53 }
  0x30   : > { %623 = vrot.lane.b32.xlu1 %v4519_v17, %s4272_s24  ;;  %v575_v25 = vrot.slane %v573_v1, 1  ;;  %v561_v27 = vshll.u32 %v4514_v10, 16  ;;  %v4528_v32 = vcombine.low %v273_v56, %v273_v56  ;;  %v4531_v37 = vsel %vm408_vm0, %v535_v20, %v539_v0 }
  0x31   : > { %7288 = vst [vmem:[#allocation5_spill] sm:$0xff] %v4526_v28  ;;  %v571_v40 = vor.u32 %v570_v21, %v566_v61  ;;  %v558_v43 = vrot.slane %v556_v22, 1  ;;  %v4533_v34 = vcombine.low %v268_v63, %v269_v15  ;;  %621 = vrot.lane.b32.xlu0 %v4531_v37, %s4272_s24  ;;  %v590_v49 = vshrl.u32 %v4526_v28, 16 }
  0x32   : > { %v563_v44 = vrot.slane %v561_v27, 1  ;;  %v592_v58 = vshll.u32 %v4526_v28, 16  ;;  %v597_v47 = vshll.u32 %v4528_v32, 16  ;;  %v4543_v60 = vcombine.low %v270_v23, %v270_v23 }
  0x33   : > { %7289 = vst [vmem:[#allocation6_spill] sm:$0xff] %v4533_v34  ;;  %v4541_v53 = vsel %vm408_vm0, %v571_v40, %v575_v25  ;;  %v559_v56 = vor.u32 %v558_v43, %v554_v12  ;;  %v578_v63 = vshrl.u32 %v4533_v34, 16  ;;  %v580_v0 = vshll.u32 %v4533_v34, 16 }
  0x34   : > { %627 = vrot.lane.b32.xlu1 %v4541_v53, %s4272_s24  ;;  %v594_v61 = vrot.slane %v592_v58, 1  ;;  %v599_v62 = vrot.slane %v597_v47, 1  ;;  %v585_v15 = vshll.u32 %v4543_v60, 16  ;;  %v637_v21 = vrot.slane %v4361_v29, 1 }
  0x35   : > { %v4550_v1 = vsel %vm408_vm0, %v559_v56, %v563_v44  ;;  %v582_v20 = vrot.slane %v580_v0, 1  ;;  %v638_v22 = vrot.slane %v4363_v30, 1  ;;  %v634_v40 = vrot.slane %v4337_v5, 1 }
  0x36   : > { %625 = vrot.lane.b32.xlu0 %v4550_v1, %s4272_s24  ;;  %v595_v12 = vor.u32 %v594_v61, %v590_v49  ;;  %v587_v23 = vrot.slane %v585_v15, 1  ;;  %v635_v43 = vrot.slane %v4340_v6, 1  ;;  %v643_v30 = vrot.slane %v4351_v16, 1 }
  0x37   : > { %v583_v27 = vor.u32 %v582_v20, %v578_v63  ;;  %v4568_v49 = vsel %vm633_vm1, %v637_v21, %v638_v22  ;;  %v644_v58 = vrot.slane %v4353_v19, 1  ;;  %v640_v6 = vrot.slane %v4332_v3, 1 }
  0x38   : > { %v4558_v25 = vsel %vm408_vm0, %v595_v12, %v599_v62  ;;  %v636_v47 = vsel %vm633_vm1, %v634_v40, %v635_v43  ;;  %v641_v56 = vrot.slane %v4334_v4, 1  ;;  %v649_v62 = vrot.slane %v4368_v36, 1 }
  0x39   : > { %631 = vrot.lane.b32.xlu1 %v4558_v25, %s4272_s24  ;;  %v4565_v44 = vsel %vm408_vm0, %v583_v27, %v587_v23  ;;  %v4580_v61 = vsel %vm633_vm1, %v643_v30, %v644_v58  ;;  %v650_v19 = vrot.slane %v4381_v46, 1  ;;  %v646_v0 = vrot.slane %v4388_v52, 1 }
  0x3a   : > { %629 = vrot.lane.b32.xlu0 %v4565_v44, %s4272_s24  ;;  %v4586_v63 = vsel %vm633_vm1, %v640_v6, %v641_v56  ;;  %v647_v4 = vrot.slane %v4395_v57, 1  ;;  %v655_v12 = vrot.slane %v4405_v7, 1  ;;  %v656_v20 = vrot.slane %v4407_v8, 1 }
  0x3b   : > { %v4593_v15 = vsel %vm633_vm1, %v649_v62, %v650_v19  ;;  %v652_v21 = vrot.slane %v4414_v14, 1  ;;  %v653_v57 = vrot.slane %v4427_v26, 1  ;;  %v661_v23 = vrot.slane %v4435_v35, 1 }
  0x3c   : > { %v4600_v46 = vsel %vm633_vm1, %v646_v0, %v647_v4  ;;  %v4607_v22 = vsel %vm633_vm1, %v655_v12, %v656_v20  ;;  %v662_v8 = vrot.slane %v4442_v41, 1  ;;  %v658_v40 = vrot.slane %v4444_v42, 1 }
  0x3d   : > { %684 = vrot.lane.b32.xlu1 %v4568_v49, %s4273_s25  ;;  %v4614_v27 = vsel %vm633_vm1, %v652_v21, %v653_v57  ;;  %v659_v26 = vrot.slane %v4454_v55, 1  ;;  %v667_v30 = vrot.slane %v4466_v2, 1  ;;  %v668_v41 = vrot.slane %v4468_v9, 1  ;;  %v275_v57 = vld [vmem:[%s4327_s23 + $0xc4] sm:$0xf] }
  0x3e   : > { %682 = vrot.lane.b32.xlu0 %v636_v47, %s4273_s25  ;;  %v4621_v43 = vsel %vm633_vm1, %v661_v23, %v662_v8  ;;  %v664_v47 = vrot.slane %v4475_v18, 1  ;;  %v665_v55 = vrot.slane %v4488_v33, 1  ;;  %v673_v56 = vrot.slane %v4495_v45, 1  ;;  %v276_v8 = vld [vmem:[%s4327_s23 + $0xc8] sm:$0x1] }
  0x3f   : > { %v4628_v58 = vsel %vm633_vm1, %v658_v40, %v659_v26  ;;  %v4635_v6 = vsel %vm633_vm1, %v667_v30, %v668_v41  ;;  %v674_v9 = vrot.slane %v4502_v50, 1  ;;  %v670_v19 = vrot.slane %v4504_v51, 1 }
  0x40   : > { %v4642_v62 = vsel %vm633_vm1, %v664_v47, %v665_v55  ;;  %v671_v33 = vrot.slane %v4514_v10, 1  ;;  %v679_v4 = vrot.slane %v4526_v28, 1  ;;  %v680_v50 = vrot.slane %v4528_v32, 1 }
  0x41   : > { %688 = vrot.lane.b32.xlu1 %v4580_v61, %s4273_s25  ;;  %v4649_v0 = vsel %vm633_vm1, %v673_v56, %v674_v9  ;;  %v676_v20 = vrot.slane %v4533_v34, 1  ;;  %v677_v10 = vrot.slane %v4543_v60, 1  ;;  %v274_v60 = vld [vmem:[%s4327_s23 + $0xc0] sm:$0xf]  ;;  %v4725_v40 = vcombine.low %v276_v8, %v276_v8 }
  0x42   : > { %686 = vrot.lane.b32.xlu0 %v4586_v63, %s4273_s25  ;;  %v4656_v12 = vsel %vm633_vm1, %v670_v19, %v671_v33  ;;  %v4663_v21 = vsel %vm633_vm1, %v679_v4, %v680_v50  ;;  %v4702_v23 = vcombine.low %v274_v60, %v275_v57 }
  0x43   : > { %v4668_v32 = vsel %vm633_vm1, %v676_v20, %v677_v10  ;;  %v762_v55 = vshll.u32 %v4725_v40, 16 }
  0x44   : > { %v755_v41 = vshrl.u32 %v4702_v23, 16 }
  0x45   : > { %692 = vrot.lane.b32.xlu1 %v4593_v15, %s4273_s25  ;;  %v764_v33 = vrot.slane %v762_v55, 1 }
  0x46   : > { %690 = vrot.lane.b32.xlu0 %v4600_v46, %s4273_s25 }
  0x49   : > { %696 = vrot.lane.b32.xlu1 %v4607_v22, %s4273_s25 }
  0x4a   : > { %694 = vrot.lane.b32.xlu0 %v4614_v27, %s4273_s25 }
  0x4d   : > { %700 = vrot.lane.b32.xlu1 %v4621_v43, %s4273_s25 }
  0x4e   : > { %698 = vrot.lane.b32.xlu0 %v4628_v58, %s4273_s25 }
  0x51   : > { %704 = vrot.lane.b32.xlu1 %v4635_v6, %s4273_s25 }
  0x52   : > { %702 = vrot.lane.b32.xlu0 %v4642_v62, %s4273_s25 }
  0x55   : > { %708 = vrot.lane.b32.xlu1 %v4649_v0, %s4273_s25 }
  0x56   : > { %706 = vrot.lane.b32.xlu0 %v4656_v12, %s4273_s25 }
  0x59   : > { %712 = vrot.lane.b32.xlu1 %v4663_v21, %s4273_s25 }
  0x5a   : > { %710 = vrot.lane.b32.xlu0 %v4668_v32, %s4273_s25 }
  0x5d   : > { %721 = vrot.lane.b32.xlu1 %v4332_v3, %s4274_s26 }
  0x5e   : > { %719 = vrot.lane.b32.xlu0 %v4361_v29, %s4274_s26 }
  0x61   : > { %725 = vrot.lane.b32.xlu1 %v4388_v52, %s4274_s26 }
  0x62   : > { %723 = vrot.lane.b32.xlu0 %v4351_v16, %s4274_s26 }
  0x65   : > { %729 = vrot.lane.b32.xlu1 %v4414_v14, %s4274_s26 }
  0x66   : > { %727 = vrot.lane.b32.xlu0 %v4368_v36, %s4274_s26 }
  0x69   : > { %733 = vrot.lane.b32.xlu1 %v4444_v42, %s4274_s26 }
  0x6a   : > { %731 = vrot.lane.b32.xlu0 %v4405_v7, %s4274_s26 }
  0x6d   : > { %737 = vrot.lane.b32.xlu1 %v4475_v18, %s4274_s26 }
  0x6e   : > { %735 = vrot.lane.b32.xlu0 %v4435_v35, %s4274_s26 }
  0x71   : > { %741 = vrot.lane.b32.xlu1 %v4504_v51, %s4274_s26 }
  0x72   : > { %739 = vrot.lane.b32.xlu0 %v4466_v2, %s4274_s26 }
  0x75   : > { %745 = vrot.lane.b32.xlu1 %v4533_v34, %s4274_s26 }
  0x76   : > { %743 = vrot.lane.b32.xlu0 %v4495_v45, %s4274_s26 }
  0x79   : > { %749 = vrot.lane.b32.xlu1 %v4702_v23, %s4274_s26 }
  0x7a   : > { %747 = vrot.lane.b32.xlu0 %v4526_v28, %s4274_s26 }
  0x7d   : > { %768 = vrot.lane.b32.xlu1 %v4372_v38, %s4275_s27 }
  0x7e   : > { %766 = vrot.lane.b32.xlu0 %v4412_v11, %s4275_s27  ;;  %v757_v11 = vshll.u32 %v4702_v23, 16 }
  0x80   : > { %v759_v47 = vrot.slane %v757_v11, 1 }
  0x81   : > { %772 = vrot.lane.b32.xlu1 %v4439_v39, %s4275_s27 }
  0x82   : > { %770 = vrot.lane.b32.xlu0 %v4392_v54, %s4275_s27  ;;  %v760_v19 = vor.u32 %v759_v47, %v755_v41 }
  0x84   : > { %v4755_v20 = vsel %vm408_vm0, %v760_v19, %v764_v33  ;;  %v4209_v33 = vld [vmem:[%s7156_s1 + $0x10] ss:$0 sps:$4 sm:$0x33]  }
  0x85   : > { %776 = vrot.lane.b32.xlu1 %v4473_v13, %s4275_s27  ;;  %4141 = vmatprep.subr.msk.bf16.mxu0 %vm1276_vm2, %v4209_v33 }
  0x86   : > { %774 = vrot.lane.b32.xlu0 %v4425_v24, %s4275_s27 }
  0x89   : > { %780 = vrot.lane.b32.xlu1 %v4499_v48, %s4275_s27 }
  0x8a   : > { %778 = vrot.lane.b32.xlu0 %v4459_v59, %s4275_s27 }
  0x8c   : > { %v4734_v30 = vpop.permute.xlu0 %601 }
  0x8d   : > { %v4730_v26 = vpop.permute.xlu1 %605  ;;  %784 = vrot.lane.b32.xlu1 %v4531_v37, %s4275_s27 }
  0x8e   : > { %782 = vrot.lane.b32.xlu0 %v4486_v31, %s4275_s27 }
  0x91   : > { %v4740_v56 = vpop.permute.xlu1 %607  ;;  %788 = vrot.lane.b32.xlu1 %v4550_v1, %s4275_s27 }
  0x92   : > { %v4744_v9 = vpop.permute.xlu0 %603  ;;  %786 = vrot.lane.b32.xlu0 %v4519_v17, %s4275_s27 }
  0x95   : > { %v4748_v4 = vpop.permute.xlu1 %611  ;;  %792 = vrot.lane.b32.xlu1 %v4565_v44, %s4275_s27 }
  0x96   : > { %v4752_v50 = vpop.permute.xlu0 %609  ;;  %790 = vrot.lane.b32.xlu0 %v4541_v53, %s4275_s27 }
  0x99   : > { %796 = vrot.lane.b32.xlu1 %v4755_v20, %s4275_s27  ;;  %v4761_v10 = vpop.permute.xlu1 %615 }
  0x9a   : > { %7290 = vst [vmem:[#allocation7_spill] sm:$0xff] %v4761_v10  ;;  %794 = vrot.lane.b32.xlu0 %v4558_v25, %s4275_s27  ;;  %v4765_v60 = vpop.permute.xlu0 %613 }
  0x9d   : > { %803 = vrot.lane.b32.xlu1 %v4586_v63, %s4276_s28  ;;  %v4769_v57 = vpop.permute.xlu1 %619 }
  0x9e   : > { %7291 = vst [vmem:[#allocation8_spill] sm:$0xff] %v4769_v57  ;;  %801 = vrot.lane.b32.xlu0 %v4568_v49, %s4276_s28 }
  0x9f   : > { %v4773_v8 = vpop.permute.xlu0 %617 }
  0xa0   : > { %7292 = vst [vmem:[#allocation9_spill] sm:$0xff] %v4773_v8 }
  0xa1   : > { %807 = vrot.lane.b32.xlu1 %v4600_v46, %s4276_s28 }
  0xa2   : > { %v4777_v11 = vpop.permute.xlu1 %623  ;;  %805 = vrot.lane.b32.xlu0 %v4580_v61, %s4276_s28 }
  0xa3   : > { %7293 = vst [vmem:[#allocation10_spill] sm:$0xff] %v4777_v11  ;;  %v4781_v41 = vpop.permute.xlu0 %621 }
  0xa4   : > { %7294 = vst [vmem:[#allocation11_spill] sm:$0xff] %v4781_v41 }
  0xa5   : > { %811 = vrot.lane.b32.xlu1 %v4614_v27, %s4276_s28 }
  0xa6   : > { %v4785_v47 = vpop.permute.xlu1 %627  ;;  %809 = vrot.lane.b32.xlu0 %v4593_v15, %s4276_s28 }
  0xa7   : > { %7295 = vst [vmem:[#allocation12_spill] sm:$0xff] %v4785_v47 }
  0xa8   : > { %v4789_v49 = vpop.permute.xlu0 %625 }
  0xa9   : > { %7296 = vst [vmem:[#allocation13_spill] sm:$0xff] %v4789_v49  ;;  %815 = vrot.lane.b32.xlu1 %v4628_v58, %s4276_s28  ;;  %v1278_v49 = vsel %vm1276_vm2, %v4209_v33, 0 }
  0xaa   : > { %813 = vrot.lane.b32.xlu0 %v4607_v22, %s4276_s28  ;;  %4066 = vmatpush3.bf16.msra.mxu0 %v1278_v49  ;;  %v4211_v49 = vld [vmem:[%s7156_s1] sm:$0xff]  }
  0xab   : > { %v4795_v55 = vpop.permute.xlu1 %631 }
  0xac   : > { %7297 = vst [vmem:[#allocation14_spill] sm:$0xff] %v4795_v55  ;;  %v4797_v19 = vpop.permute.xlu0 %629 }
  0xad   : > { %7298 = vst [vmem:[#allocation15_spill] sm:$0xff] %v4797_v19  ;;  %819 = vrot.lane.b32.xlu1 %v4642_v62, %s4276_s28  ;;  %v4210_v19 = vld [vmem:[%s7156_s1 + $0x8] sm:$0xff]  }
  0xae   : > { %817 = vrot.lane.b32.xlu0 %v4621_v43, %s4276_s28  ;;  %4067 = vmatprep.subr.bf16.mxu0 %v4210_v19 }
  0xaf   : > { %v4806_v47 = vpop.permute.xlu1 %684  ;;  %4068 = vmatpush3.bf16.msra.mxu0 %v4210_v19 }
  0xb0   : > { %v4810_v55 = vpop.permute.xlu0 %682  ;;  %4069 = vmatprep.subr.bf16.mxu0 %v4211_v49 }
  0xb1   : > { %823 = vrot.lane.b32.xlu1 %v4656_v12, %s4276_s28 }
  0xb2   : > { %821 = vrot.lane.b32.xlu0 %v4635_v6, %s4276_s28 }
  0xb3   : > { %v4819_v11 = vpop.permute.xlu1 %688  ;;  %4070 = vmatpush3.bf16.msra.mxu0 %v4211_v49 }
  0xb4   : > { %v4821_v41 = vpop.permute.xlu0 %686 }
  0xb5   : > { %827 = vrot.lane.b32.xlu1 %v4668_v32, %s4276_s28 }
  0xb6   : > { %825 = vrot.lane.b32.xlu0 %v4649_v0, %s4276_s28 }
  0xb7   : > { %v4830_v33 = vpop.permute.xlu1 %692 }
  0xb8   : > { %v4832_v57 = vpop.permute.xlu0 %690 }
  0xb9   : > { %838 = vrot.lane.b32.xlu1 %v4332_v3, %s4277_s10 }
  0xba   : > { %829 = vrot.lane.b32.xlu0 %v4663_v21, %s4276_s28 }
  0xbb   : > { %v4838_v19 = vpop.permute.xlu1 %696 }
  0xbc   : > { %7299 = vst [vmem:[#allocation16_spill] sm:$0xff] %v4838_v19  ;;  %v4840_v8 = vpop.permute.xlu0 %694 }
  0xbd   : > { %7300 = vst [vmem:[#allocation17_spill] sm:$0xff] %v4840_v8  ;;  %885 = vrot.lane.b32.xlu1 %v4372_v38, %s4278_s11 }
  0xbe   : > { %840 = vrot.lane.b32.xlu0 %v4351_v16, %s4277_s10 }
  0xbf   : > { %v4846_v49 = vpop.permute.xlu1 %700 }
  0xc0   : > { %7301 = vst [vmem:[#allocation18_spill] sm:$0xff] %v4846_v49  ;;  %v4848_v10 = vpop.permute.xlu0 %698 }
  0xc1   : > { %920 = vrot.lane.b32.xlu1 %v4586_v63, %s4279_s12 }
  0xc2   : > { %887 = vrot.lane.b32.xlu0 %v4392_v54, %s4278_s11 }
  0xc3   : > { %v4854_v19 = vpop.permute.xlu1 %704 }
  0xc4   : > { %7302 = vst [vmem:[#allocation19_spill] sm:$0xff] %v4854_v19  ;;  %v4856_v8 = vpop.permute.xlu0 %702 }
  0xc5   : > { %7303 = vst [vmem:[#allocation20_spill] sm:$0xff] %v4856_v8  ;;  %842 = vrot.lane.b32.xlu1 %v4388_v52, %s4277_s10 }
  0xc6   : > { %922 = vrot.lane.b32.xlu0 %v4580_v61, %s4279_s12 }
  0xc7   : > { %v4862_v38 = vpop.permute.xlu1 %708 }
  0xc8   : > { %7304 = vst [vmem:[#allocation21_spill] sm:$0xff] %v4862_v38  ;;  %v4864_v49 = vpop.permute.xlu0 %706 }
  0xc9   : > { %7305 = vst [vmem:[#allocation22_spill] sm:$0xff] %v4864_v49  ;;  %889 = vrot.lane.b32.xlu1 %v4439_v39, %s4278_s11 }
  0xca   : > { %844 = vrot.lane.b32.xlu0 %v4368_v36, %s4277_s10 }
  0xcb   : > { %v4870_v54 = vpop.permute.xlu1 %712 }
  0xcc   : > { %7306 = vst [vmem:[#allocation23_spill] sm:$0xff] %v4870_v54  ;;  %v4872_v63 = vpop.permute.xlu0 %710 }
  0xcd   : > { %7307 = vst [vmem:[#allocation24_spill] sm:$0xff] %v4872_v63  ;;  %924 = vrot.lane.b32.xlu1 %v4600_v46, %s4279_s12 }
  0xce   : > { %891 = vrot.lane.b32.xlu0 %v4425_v24, %s4278_s11 }
  0xcf   : > { %v4878_v61 = vpop.permute.xlu1 %721 }
  0xd0   : > { %v4880_v38 = vpop.permute.xlu0 %719 }
  0xd1   : > { %846 = vrot.lane.b32.xlu1 %v4414_v14, %s4277_s10 }
  0xd2   : > { %926 = vrot.lane.b32.xlu0 %v4593_v15, %s4279_s12 }
  0xd3   : > { %v4886_v39 = vpop.permute.xlu1 %725 }
  0xd4   : > { %v4888_v54 = vpop.permute.xlu0 %723 }
  0xd5   : > { %893 = vrot.lane.b32.xlu1 %v4473_v13, %s4278_s11 }
  0xd6   : > { %848 = vrot.lane.b32.xlu0 %v4405_v7, %s4277_s10 }
  0xd7   : > { %v4894_v24 = vpop.permute.xlu1 %729 }
  0xd8   : > { %v4896_v46 = vpop.permute.xlu0 %727 }
  0xd9   : > { %928 = vrot.lane.b32.xlu1 %v4614_v27, %s4279_s12 }
  0xda   : > { %895 = vrot.lane.b32.xlu0 %v4459_v59, %s4278_s11 }
  0xdb   : > { %v4902_v15 = vpop.permute.xlu1 %733 }
  0xdc   : > { %v4904_v63 = vpop.permute.xlu0 %731 }
  0xdd   : > { %850 = vrot.lane.b32.xlu1 %v4444_v42, %s4277_s10 }
  0xde   : > { %930 = vrot.lane.b32.xlu0 %v4607_v22, %s4279_s12 }
  0xdf   : > { %v4910_v13 = vpop.permute.xlu1 %737 }
  0xe0   : > { %v4912_v49 = vpop.permute.xlu0 %735 }
  0xe1   : > { %897 = vrot.lane.b32.xlu1 %v4499_v48, %s4278_s11 }
  0xe2   : > { %852 = vrot.lane.b32.xlu0 %v4435_v35, %s4277_s10 }
  0xe3   : > { %v4918_v59 = vpop.permute.xlu1 %741 }
  0xe4   : > { %7308 = vst [vmem:[#allocation25_spill] sm:$0xff] %v4918_v59  ;;  %v4920_v27 = vpop.permute.xlu0 %739 }
  0xe5   : > { %7309 = vst [vmem:[#allocation26_spill] sm:$0xff] %v4920_v27  ;;  %932 = vrot.lane.b32.xlu1 %v4628_v58, %s4279_s12 }
  0xe6   : > { %899 = vrot.lane.b32.xlu0 %v4486_v31, %s4278_s11 }
  0xe7   : > { %v4926_v22 = vpop.permute.xlu1 %745 }
  0xe8   : > { %7310 = vst [vmem:[#allocation27_spill] sm:$0xff] %v4926_v22  ;;  %v4928_v19 = vpop.permute.xlu0 %743 }
  0xe9   : > { %7311 = vst [vmem:[#allocation28_spill] sm:$0xff] %v4928_v19  ;;  %854 = vrot.lane.b32.xlu1 %v4475_v18, %s4277_s10 }
  0xea   : > { %934 = vrot.lane.b32.xlu0 %v4621_v43, %s4279_s12 }
  0xeb   : > { %v4934_v48 = vpop.permute.xlu1 %749 }
  0xec   : > { %7312 = vst [vmem:[#allocation29_spill] sm:$0xff] %v4934_v48  ;;  %v4936_v59 = vpop.permute.xlu0 %747 }
  0xed   : > { %7313 = vst [vmem:[#allocation30_spill] sm:$0xff] %v4936_v59  ;;  %901 = vrot.lane.b32.xlu1 %v4531_v37, %s4278_s11 }
  0xee   : > { %856 = vrot.lane.b32.xlu0 %v4466_v2, %s4277_s10 }
  0xef   : > { %v4942_v31 = vpop.permute.xlu1 %768 }
  0xf0   : > { %v4944_v58 = vpop.permute.xlu0 %766 }
  0xf1   : > { %936 = vrot.lane.b32.xlu1 %v4642_v62, %s4279_s12 }
  0xf2   : > { %903 = vrot.lane.b32.xlu0 %v4519_v17, %s4278_s11 }
  0xf3   : > { %v4950_v43 = vpop.permute.xlu1 %772 }
  0xf4   : > { %v4952_v59 = vpop.permute.xlu0 %770 }
  0xf5   : > { %858 = vrot.lane.b32.xlu1 %v4504_v51, %s4277_s10  ;;  %v4208_v51 = vld [vmem:[%s4327_s23 + $0xd4] ss:$0 sps:$4 sm:$0x11]  }
  0xf6   : > { %938 = vrot.lane.b32.xlu0 %v4635_v6, %s4279_s12 }
  0xf7   : > { %v4958_v37 = vpop.permute.xlu1 %776 }
  0xf8   : > { %v4960_v48 = vpop.permute.xlu0 %774 }
  0xf9   : > { %905 = vrot.lane.b32.xlu1 %v4550_v1, %s4278_s11  ;;  %v4207_v1 = vld [vmem:[%s4327_s23 + $0xcc] sm:$0xff]  }
  0xfa   : > { %860 = vrot.lane.b32.xlu0 %v4495_v45, %s4277_s10  ;;  %v876_v2 = vshll.u32 %v4207_v1, 16 }
  0xfb   : > { %v4966_v17 = vpop.permute.xlu1 %780 }
  0xfc   : > { %v4968_v62 = vpop.permute.xlu0 %778 }
  0xfd   : > { %940 = vrot.lane.b32.xlu1 %v4656_v12, %s4279_s12  ;;  %v799_v12 = vrot.slane %v4725_v40, 1 }
  0xfe   : > { %907 = vrot.lane.b32.xlu0 %v4541_v53, %s4278_s11  ;;  %v798_v53 = vrot.slane %v4702_v23, 1 }
  0xff   : > { %v4974_v6 = vpop.permute.xlu1 %784 }
 0x100   : > { %v4976_v22 = vpop.permute.xlu0 %782 }
 0x101   : > { %862 = vrot.lane.b32.xlu1 %v4533_v34, %s4277_s10 }
 0x102   : > { %942 = vrot.lane.b32.xlu0 %v4649_v0, %s4279_s12  ;;  %v800_v0 = vsel %vm633_vm1, %v798_v53, %v799_v12  ;;  %v917_v53 = vrot.slane %v4207_v1, 1  ;;  %v918_v12 = vrot.slane %v4208_v51, 1 }
 0x103   : > { %v4983_v45 = vpop.permute.xlu1 %788 }
 0x104   : > { %7314 = vst [vmem:[#allocation31_spill] sm:$0xff] %v4983_v45  ;;  %v4985_v19 = vpop.permute.xlu0 %786  ;;  %v874_v45 = vshrl.u32 %v4207_v1, 16 }
 0x105   : > { %7315 = vst [vmem:[#allocation32_spill] sm:$0xff] %v4985_v19  ;;  %909 = vrot.lane.b32.xlu1 %v4565_v44, %s4278_s11  ;;  %v878_v44 = vrot.slane %v876_v2, 1  ;;  %v881_v19 = vshll.u32 %v4208_v51, 16 }
 0x106   : > { %864 = vrot.lane.b32.xlu0 %v4526_v28, %s4277_s10 }
 0x107   : > { %v4994_v34 = vpop.permute.xlu1 %792  ;;  %v879_v28 = vor.u32 %v878_v44, %v874_v45  ;;  %v919_v45 = vsel %vm633_vm1, %v917_v53, %v918_v12 }
 0x108   : > { %7316 = vst [vmem:[#allocation33_spill] sm:$0xff] %v4994_v34  ;;  %v4996_v27 = vpop.permute.xlu0 %790  ;;  %v883_v34 = vrot.slane %v881_v19, 1 }
 0x109   : > { %7317 = vst [vmem:[#allocation34_spill] sm:$0xff] %v4996_v27  ;;  %944 = vrot.lane.b32.xlu1 %v4668_v32, %s4279_s12 }
 0x10a   : > { %911 = vrot.lane.b32.xlu0 %v4558_v25, %s4278_s11  ;;  %v884_v2 = vsel %vm408_vm0, %v879_v28, %v883_v34 }
 0x10b   : > { %v5003_v40 = vpop.permute.xlu1 %796 }
 0x10c   : > { %7318 = vst [vmem:[#allocation35_spill] sm:$0xff] %v5003_v40  ;;  %v5005_v8 = vpop.permute.xlu0 %794 }
 0x10d   : > { %7319 = vst [vmem:[#allocation36_spill] sm:$0xff] %v5005_v8  ;;  %831 = vrot.lane.b32.xlu1 %v800_v0, %s4276_s28 }
 0x10e   : > { %946 = vrot.lane.b32.xlu0 %v4663_v21, %s4279_s12 }
 0x10f   : > { %v804_v32 = vpop.permute.xlu1 %803 }
 0x110   : > { %v802_v27 = vpop.permute.xlu0 %801 }
 0x111   : > { %868 = vrot.lane.b32.xlu1 %v4207_v1, %s4277_s10 }
 0x112   : > { %866 = vrot.lane.b32.xlu0 %v4702_v23, %s4277_s10 }
 0x113   : > { %v5014_v25 = vpop.permute.xlu1 %807 }
 0x114   : > { %v806_v8 = vpop.permute.xlu0 %805 }
 0x115   : > { %915 = vrot.lane.b32.xlu1 %v884_v2, %s4278_s11 }
 0x116   : > { %913 = vrot.lane.b32.xlu0 %v4755_v20, %s4278_s11 }
 0x117   : > { %v5020_v21 = vpop.permute.xlu1 %811 }
 0x118   : > { %v5022_v19 = vpop.permute.xlu0 %809 }
 0x119   : > { %950 = vrot.lane.b32.xlu1 %v919_v45, %s4279_s12 }
 0x11a   : > { %948 = vrot.lane.b32.xlu0 %v800_v0, %s4279_s12  ;;  %v954_v0 = vsel %vm952_vm3, %v4337_v5, %v4734_v30  ;;  %v956_v30 = vsel %vm952_vm3, %v4361_v29, %v4744_v9 }
 0x11b   : > { %v5026_v51 = vpop.permute.xlu1 %815  ;;  %v987_v45 = vsel %vm985_vm4, %v954_v0, %v4810_v55  ;;  %v989_v0 = vsel %vm985_vm4, %v956_v30, %v4806_v47  ;;  %v958_v47 = vsel %vm952_vm3, %v4332_v3, %v4730_v26 }
 0x11c   : > { %v5028_v28 = vpop.permute.xlu0 %813  ;;  %v1020_v40 = vsel %vm1018_vm5, %v987_v45, %v4880_v38 }
 0x11f   : > { %v5030_v34 = vpop.permute.xlu1 %819 }
 0x120   : > { %v5032_v23 = vpop.permute.xlu0 %817 }
 0x123   : > { %v5034_v1 = vpop.permute.xlu1 %823 }
 0x124   : > { %7320 = vst [vmem:[#allocation37_spill] sm:$0xff] %v5034_v1  ;;  %v5036_v44 = vpop.permute.xlu0 %821 }
 0x125   : > { %7321 = vst [vmem:[#allocation38_spill] sm:$0xff] %v5036_v44 }
 0x127   : > { %v5038_v20 = vpop.permute.xlu1 %827 }
 0x128   : > { %7322 = vst [vmem:[#allocation39_spill] sm:$0xff] %v5038_v20  ;;  %v5040_v2 = vpop.permute.xlu0 %825 }
 0x129   : > { %7323 = vst [vmem:[#allocation40_spill] sm:$0xff] %v5040_v2  ;;  %v1053_v2 = vsel %vm1051_vm6, %v1020_v40, %v4944_v58 }
 0x12a   : > { %v1086_v1 = vsel %vm1084_vm7, %v1053_v2, %v802_v27  ;;  %v1022_v27 = vsel %vm1018_vm5, %v989_v0, %v4878_v61  ;;  %v991_v61 = vsel %vm985_vm4, %v958_v47, %v4821_v41  ;;  %v960_v41 = vsel %vm952_vm3, %v4351_v16, %v4740_v56 }
 0x12b   : > { %v839_v53 = vpop.permute.xlu1 %838 }
 0x12c   : > { %v5045_v12 = vpop.permute.xlu0 %829  ;;  %v1119_v5 = vsel %vm1117_vm8, %v1086_v1, %v839_v53  ;;  %v1055_v1 = vsel %vm1051_vm6, %v1022_v27, %v4942_v31  ;;  %v1024_v31 = vsel %vm1018_vm5, %v991_v61, %v4888_v54  ;;  %v993_v54 = vsel %vm985_vm4, %v960_v41, %v4819_v11 }
 0x12d   : > { %v1088_v2 = vsel %vm1084_vm7, %v1055_v1, %v804_v32  ;;  %v962_v11 = vsel %vm952_vm3, %v4388_v52, %v4752_v50 }
 0x12f   : > { %v886_v20 = vpop.permute.xlu1 %885 }
 0x130   : > { %v841_v44 = vpop.permute.xlu0 %840  ;;  %v1152_v55 = vsel %vm1150_vm9, %v1119_v5, %v886_v20 }
 0x131   : > { %v1121_v9 = vsel %vm1117_vm8, %v1088_v2, %v841_v44  ;;  %v1057_v44 = vsel %vm1051_vm6, %v1024_v31, %v4952_v59  ;;  %v1026_v59 = vsel %vm1018_vm5, %v993_v54, %v4886_v39  ;;  %v995_v39 = vsel %vm985_vm4, %v962_v11, %v4832_v57 }
 0x132   : > { %v1090_v5 = vsel %vm1084_vm7, %v1057_v44, %v806_v8  ;;  %v1059_v8 = vsel %vm1051_vm6, %v1026_v59, %v4950_v43  ;;  %v1028_v43 = vsel %vm1018_vm5, %v995_v39, %v4896_v46  ;;  %v964_v57 = vsel %vm952_vm3, %v4368_v36, %v4748_v4 }
 0x133   : > { %v921_v38 = vpop.permute.xlu1 %920  ;;  %v1092_v16 = vsel %vm1084_vm7, %v1059_v8, %v5014_v25  ;;  %v1061_v2 = vsel %vm1051_vm6, %v1028_v43, %v4960_v48  ;;  %v997_v46 = vsel %vm985_vm4, %v964_v57, %v4830_v33  ;;  %v966_v33 = vsel %vm952_vm3, %v4414_v14, %v4765_v60  ;;  %v7328_v43 = vld [vmem:[#allocation8_spill] sm:$0xff] }
 0x134   : > { %v1185_v58 = vsel %vm1183_vm10, %v1152_v55, %v921_v38  ;;  %v888_v40 = vpop.permute.xlu0 %887  ;;  %v1094_v52 = vsel %vm1084_vm7, %v1061_v2, %v5022_v19  ;;  %v1030_v48 = vsel %vm1018_vm5, %v997_v46, %v4894_v24  ;;  %v7324_v24 = vld [vmem:[#allocation17_spill] sm:$0xff] }
 0x135   : > { %4071 = vmatprep.mubr.msk.bf16.mxu0 %vm1243_vm11, %v1185_v58  ;;  %v1154_v20 = vsel %vm1150_vm9, %v1121_v9, %v888_v40  ;;  %v1063_v19 = vsel %vm1051_vm6, %v1030_v48, %v4958_v37 }
 0x136   : > { %v1096_v36 = vsel %vm1084_vm7, %v1063_v19, %v5020_v21 }
 0x137   : > { %v843_v29 = vpop.permute.xlu1 %842 }
 0x138   : > { %v923_v53 = vpop.permute.xlu0 %922  ;;  %v1123_v26 = vsel %vm1117_vm8, %v1090_v5, %v843_v29 }
 0x139   : > { %v1187_v45 = vsel %vm1183_vm10, %v1154_v20, %v923_v53 }
 0x13a   : > { %4072 = vmatmul.mubr.msk.bf16.vlgmr.msra.gmra.mxu0 %vm1243_vm11, %v1187_v45 }
 0x13b   : > { %v890_v32 = vpop.permute.xlu1 %889 }
 0x13c   : > { %v845_v3 = vpop.permute.xlu0 %844  ;;  %v1156_v30 = vsel %vm1150_vm9, %v1123_v26, %v890_v32  ;;  %v999_v32 = vsel %vm985_vm4, %v966_v33, %v7324_v24  ;;  %v7325_v26 = vld [vmem:[#allocation7_spill] sm:$0xff]  ;;  %v7334_v33 = vld [vmem:[#allocation38_spill] sm:$0xff] }
 0x13d   : > { %v1125_v58 = vsel %vm1117_vm8, %v1092_v16, %v845_v3  ;;  %v1032_v37 = vsel %vm1018_vm5, %v999_v32, %v4904_v63  ;;  %v968_v41 = vsel %vm952_vm3, %v4405_v7, %v7325_v26  ;;  %v7326_v63 = vld [vmem:[#allocation16_spill] sm:$0xff]  ;;  %v7327_v16 = vld [vmem:[#allocation9_spill] sm:$0xff]  ;;  %v7335_v24 = vld [vmem:[#allocation10_spill] sm:$0xff] }
 0x13e   : > { %v1065_v5 = vsel %vm1051_vm6, %v1032_v37, %v4968_v62  ;;  %v1001_v54 = vsel %vm985_vm4, %v968_v41, %v7326_v63  ;;  %v7336_v32 = vld [vmem:[#allocation2_spill] sm:$0xff]  ;;  %v7340_v63 = vld [vmem:[#allocation37_spill] sm:$0xff] }
 0x13f   : > { %v925_v55 = vpop.permute.xlu1 %924  ;;  %v1098_v14 = vsel %vm1084_vm7, %v1065_v5, %v5028_v28  ;;  %v1034_v62 = vsel %vm1018_vm5, %v1001_v54, %v4902_v15  ;;  %v7337_v5 = vld [vmem:[#allocation19_spill] sm:$0xff] }
 0x140   : > { %v1189_v38 = vsel %vm1183_vm10, %v1156_v30, %v925_v55  ;;  %v892_v0 = vpop.permute.xlu0 %891  ;;  %v1067_v28 = vsel %vm1051_vm6, %v1034_v62, %v4966_v17 }
 0x141   : > { %4075 = vmatprep.mubr.msk.bf16.mxu0 %vm1243_vm11, %v1189_v38  ;;  %v1158_v27 = vsel %vm1150_vm9, %v1125_v58, %v892_v0  ;;  %v1100_v7 = vsel %vm1084_vm7, %v1067_v28, %v5026_v51  ;;  %v7342_v28 = vld [vmem:[#allocation4_spill] sm:$0xff] }
 0x143   : > { %v847_v56 = vpop.permute.xlu1 %846 }
 0x144   : > { %v927_v40 = vpop.permute.xlu0 %926  ;;  %v1127_v29 = vsel %vm1117_vm8, %v1094_v52, %v847_v56  ;;  %v970_v56 = vsel %vm952_vm3, %v4444_v42, %v7327_v16  ;;  %v7343_v16 = vld [vmem:[#allocation22_spill] sm:$0xff] }
 0x145   : > { %v1191_v1 = vsel %vm1183_vm10, %v1158_v27, %v927_v40  ;;  %v1003_v15 = vsel %vm985_vm4, %v970_v56, %v4848_v10  ;;  %v972_v10 = vsel %vm952_vm3, %v4435_v35, %v7328_v43 }
 0x146   : > { %4076 = vmatmul.mubr.msk.bf16.gmra.mxu0 %vm1243_vm11, %v1191_v1  ;;  %v1036_v17 = vsel %vm1018_vm5, %v1003_v15, %v4912_v49  ;;  %v7329_v49 = vld [vmem:[#allocation18_spill] sm:$0xff] }
 0x147   : > { %v894_v25 = vpop.permute.xlu1 %893  ;;  %v1069_v40 = vsel %vm1051_vm6, %v1036_v17, %v4976_v22  ;;  %v1005_v52 = vsel %vm985_vm4, %v972_v10, %v7329_v49  ;;  %v7345_v17 = vld [vmem:[#allocation34_spill] sm:$0xff] }
 0x148   : > { %v849_v50 = vpop.permute.xlu0 %848  ;;  %v1160_v9 = vsel %vm1150_vm9, %v1127_v29, %v894_v25  ;;  %v1102_v42 = vsel %vm1084_vm7, %v1069_v40, %v5032_v23  ;;  %v1038_v22 = vsel %vm1018_vm5, %v1005_v52, %v4910_v13  ;;  %v7331_v13 = vld [vmem:[#allocation20_spill] sm:$0xff] }
 0x149   : > { %v1129_v61 = vsel %vm1117_vm8, %v1096_v36, %v849_v50  ;;  %v1071_v23 = vsel %vm1051_vm6, %v1038_v22, %v4974_v6  ;;  %v7332_v36 = vld [vmem:[#allocation26_spill] sm:$0xff]  ;;  %v7346_v40 = vld [vmem:[#allocation40_spill] sm:$0xff] }
 0x14a   : > { %v1104_v35 = vsel %vm1084_vm7, %v1071_v23, %v5030_v34 }
 0x14b   : > { %v929_v47 = vpop.permute.xlu1 %928 }
 0x14c   : > { %v1193_v20 = vsel %vm1183_vm10, %v1160_v9, %v929_v47  ;;  %v896_v53 = vpop.permute.xlu0 %895  ;;  %v7330_v47 = vld [vmem:[#allocation11_spill] sm:$0xff] }
 0x14d   : > { %4079 = vmatprep.mubr.msk.bf16.mxu0 %vm1243_vm11, %v1193_v20  ;;  %v1162_v45 = vsel %vm1150_vm9, %v1129_v61, %v896_v53  ;;  %v974_v46 = vsel %vm952_vm3, %v4475_v18, %v7330_v47  ;;  %v7352_v47 = vld [vmem:[#allocation27_spill] sm:$0xff] }
 0x14e   : > { %v1007_v53 = vsel %vm985_vm4, %v974_v46, %v7331_v13 }
 0x14f   : > { %v851_v4 = vpop.permute.xlu1 %850  ;;  %v1040_v6 = vsel %vm1018_vm5, %v1007_v53, %v7332_v36  ;;  %v7354_v53 = vld [vmem:[#allocation39_spill] sm:$0xff] }
 0x150   : > { %v931_v31 = vpop.permute.xlu0 %930  ;;  %v1131_v3 = vsel %vm1117_vm8, %v1098_v14, %v851_v4  ;;  %v7333_v4 = vld [vmem:[#allocation32_spill] sm:$0xff] }
 0x151   : > { %v1195_v44 = vsel %vm1183_vm10, %v1162_v45, %v931_v31  ;;  %v1073_v61 = vsel %vm1051_vm6, %v1040_v6, %v7333_v4 }
 0x152   : > { %4080 = vmatmul.mubr.msk.bf16.gmra.mxu0 %vm1243_vm11, %v1195_v44  ;;  %v1106_v18 = vsel %vm1084_vm7, %v1073_v61, %v7334_v33  ;;  %v976_v44 = vsel %vm952_vm3, %v7336_v32, %v7335_v24  ;;  %v7357_v32 = vld [vmem:[#allocation15_spill] sm:$0xff] }
 0x153   : > { %v898_v21 = vpop.permute.xlu1 %897  ;;  %v1009_v14 = vsel %vm985_vm4, %v976_v44, %v7337_v5  ;;  %v7358_v44 = vld [vmem:[#allocation6_spill] sm:$0xff] }
 0x154   : > { %v853_v60 = vpop.permute.xlu0 %852  ;;  %v1164_v30 = vsel %vm1150_vm9, %v1131_v3, %v898_v21  ;;  %v7338_v3 = vld [vmem:[#allocation25_spill] sm:$0xff] }
 0x155   : > { %v1133_v8 = vsel %vm1117_vm8, %v1100_v7, %v853_v60  ;;  %v1042_v26 = vsel %vm1018_vm5, %v1009_v14, %v7338_v3 }
 0x157   : > { %v933_v55 = vpop.permute.xlu1 %932 }
 0x158   : > { %v1197_v38 = vsel %vm1183_vm10, %v1164_v30, %v933_v55  ;;  %v900_v59 = vpop.permute.xlu0 %899  ;;  %v7339_v30 = vld [vmem:[#allocation31_spill] sm:$0xff] }
 0x159   : > { %4083 = vmatprep.mubr.msk.bf16.mxu0 %vm1243_vm11, %v1197_v38  ;;  %v1166_v58 = vsel %vm1150_vm9, %v1133_v8, %v900_v59  ;;  %v1075_v55 = vsel %vm1051_vm6, %v1042_v26, %v7339_v30  ;;  %v7341_v59 = vld [vmem:[#allocation13_spill] sm:$0xff]  ;;  %v7362_v30 = vld [vmem:[#allocation30_spill] sm:$0xff] }
 0x15a   : > { %v1108_v54 = vsel %vm1084_vm7, %v1075_v55, %v7340_v63  ;;  %v978_v7 = vsel %vm952_vm3, %v7342_v28, %v7341_v59  ;;  %v7361_v26 = vld [vmem:[#allocation29_spill] sm:$0xff]  ;;  %v7363_v63 = vld [vmem:[#allocation35_spill] sm:$0xff] }
 0x15b   : > { %v855_v0 = vpop.permute.xlu1 %854  ;;  %v1011_v56 = vsel %vm985_vm4, %v978_v7, %v7343_v16 }
 0x15c   : > { %v935_v11 = vpop.permute.xlu0 %934  ;;  %v1135_v1 = vsel %vm1117_vm8, %v1102_v42, %v855_v0 }
 0x15d   : > { %v1199_v27 = vsel %vm1183_vm10, %v1166_v58, %v935_v11  ;;  %v7344_v11 = vld [vmem:[#allocation28_spill] sm:$0xff] }
 0x15e   : > { %4084 = vmatmul.mubr.msk.bf16.gmra.mxu0 %vm1243_vm11, %v1199_v27  ;;  %v1044_v15 = vsel %vm1018_vm5, %v1011_v56, %v7344_v11 }
 0x15f   : > { %v902_v51 = vpop.permute.xlu1 %901 }
 0x160   : > { %v857_v39 = vpop.permute.xlu0 %856  ;;  %v1168_v25 = vsel %vm1150_vm9, %v1135_v1, %v902_v51  ;;  %v1077_v51 = vsel %vm1051_vm6, %v1044_v15, %v7345_v17  ;;  %v4280_v1 = vmov 0  }
 0x161   : > { %v1137_v9 = vsel %vm1117_vm8, %v1104_v35, %v857_v39  ;;  %v1110_v42 = vsel %vm1084_vm7, %v1077_v51, %v7346_v40  ;;  %v1511_v43 = vrot.slane %v4280_v1, 1 }
 0x163   : > { %v937_v2 = vpop.permute.xlu1 %936  ;;  %v5237_v22 = vpack.i.bf16 %v1511_v43, %v1511_v43  ;;  %v7167_v43 = vmov 0.0  }
 0x164   : > { %v1201_v50 = vsel %vm1183_vm10, %v1168_v25, %v937_v2  ;;  %v904_v29 = vpop.permute.xlu0 %903  ;;  %v7347_v25 = vld [vmem:[#allocation12_spill] sm:$0xff]  ;;  %v7348_v2 = vld [vmem:[#allocation3_spill] sm:$0xff] }
 0x165   : > { %4087 = vmatprep.mubr.msk.bf16.mxu0 %vm1243_vm11, %v1201_v50  ;;  %v1170_v20 = vsel %vm1150_vm9, %v1137_v9, %v904_v29  ;;  %v980_v49 = vsel %vm952_vm3, %v7348_v2, %v7347_v25  ;;  %7349 = vst [vmem:[#allocation17_spill] sm:$0xff] %v5237_v22  ;;  %v7350_v29 = vld [vmem:[#allocation21_spill] sm:$0xff]  ;;  %4164 = vrot.lane.b32.xlu0 %v5237_v22, %s4272_s24 }
 0x166   : > { %v1013_v23 = vsel %vm985_vm4, %v980_v49, %v7350_v29 }
 0x167   : > { %v859_v57 = vpop.permute.xlu1 %858  ;;  %v1046_v46 = vsel %vm1018_vm5, %v1013_v23, %v7352_v47 }
 0x168   : > { %v939_v48 = vpop.permute.xlu0 %938  ;;  %v1139_v31 = vsel %vm1117_vm8, %v1106_v18, %v859_v57  ;;  %v7166_v57 = vmov 0.0|0.0  }
 0x169   : > { %v1203_v19 = vsel %vm1183_vm10, %v1170_v20, %v939_v48  ;;  %v5243_v9 = vrot.slane %v7166_v57, 1  ;;  %v7353_v48 = vld [vmem:[#allocation33_spill] sm:$0xff] }
 0x16a   : > { %4088 = vmatmul.mubr.msk.bf16.gmra.mxu0 %vm1243_vm11, %v1203_v19  ;;  %v1079_v13 = vsel %vm1051_vm6, %v1046_v46, %v7353_v48 }
 0x16b   : > { %v906_v34 = vpop.permute.xlu1 %905  ;;  %7351 = vst [vmem:[#allocation7_spill] sm:$0xff] %v5243_v9  ;;  %1881 = vrot.lane.b32.xlu1 %v5243_v9, %s4273_s25  ;;  %v1112_v19 = vsel %vm1084_vm7, %v1079_v13, %v7354_v53  ;;  %1883 = vrot.lane.b32.xlu0 %v5243_v9, %s4273_s25 }
 0x16c   : > { %v861_v45 = vpop.permute.xlu0 %860  ;;  %v1172_v37 = vsel %vm1150_vm9, %v1139_v31, %v906_v34  ;;  %v7356_v31 = vld [vmem:[#allocation5_spill] sm:$0xff] }
 0x16d   : > { %v1141_v62 = vsel %vm1117_vm8, %v1108_v54, %v861_v45  ;;  %v7355_v45 = vld [vmem:[#allocation14_spill] sm:$0xff] }
 0x16e   : > { %v984_v24 = vsel %vm952_vm3, %v7356_v31, %v7355_v45 }
 0x16f   : > { %v941_v21 = vpop.permute.xlu1 %940 }
 0x170   : > { %v1205_v60 = vsel %vm1183_vm10, %v1172_v37, %v941_v21  ;;  %v908_v41 = vpop.permute.xlu0 %907  ;;  %v982_v37 = vsel %vm952_vm3, %v7358_v44, %v7357_v32  ;;  %v7359_v21 = vld [vmem:[#allocation23_spill] sm:$0xff] }
 0x171   : > { %4091 = vmatprep.mubr.msk.bf16.mxu0 %vm1243_vm11, %v1205_v60  ;;  %v1174_v0 = vsel %vm1150_vm9, %v1141_v62, %v908_v41  ;;  %v1017_v5 = vsel %vm985_vm4, %v984_v24, %v7359_v21  ;;  %v7360_v60 = vld [vmem:[#allocation24_spill] sm:$0xff] }
 0x172   : > { %v1015_v3 = vsel %vm985_vm4, %v982_v37, %v7360_v60  ;;  %v1050_v41 = vsel %vm1018_vm5, %v1017_v5, %v7361_v26  ;;  %v7364_v62 = vld [vmem:[#allocation36_spill] sm:$0xff] }
 0x173   : > { %v863_v38 = vpop.permute.xlu1 %862  ;;  %v1048_v55 = vsel %vm1018_vm5, %v1015_v3, %v7362_v30  ;;  %v1083_v54 = vsel %vm1051_vm6, %v1050_v41, %v7363_v63 }
 0x174   : > { %v943_v8 = vpop.permute.xlu0 %942  ;;  %v1143_v10 = vsel %vm1117_vm8, %v1110_v42, %v863_v38  ;;  %v1081_v59 = vsel %vm1051_vm6, %v1048_v55, %v7364_v62 }
 0x175   : > { %v1207_v58 = vsel %vm1183_vm10, %v1174_v0, %v943_v8  ;;  %v1114_v7 = vsel %vm1084_vm7, %v1081_v59, %v5045_v12  ;;  %v5294_v12 = vld [vmem:[%s7157_s2] ss:$0 sm:$0xff] }
 0x176   : > { %4092 = vmatmul.mubr.msk.bf16.gmra.mxu0 %vm1243_vm11, %v1207_v58 }
 0x177   : > { %v910_v27 = vpop.permute.xlu1 %909 }
 0x178   : > { %v865_v39 = vpop.permute.xlu0 %864  ;;  %v1176_v52 = vsel %vm1150_vm9, %v1143_v10, %v910_v27 }
 0x179   : > { %v1145_v6 = vsel %vm1117_vm8, %v1112_v19, %v865_v39 }
 0x17b   : > { %v945_v50 = vpop.permute.xlu1 %944 }
 0x17c   : > { %v1209_v35 = vsel %vm1183_vm10, %v1176_v52, %v945_v50  ;;  %v912_v20 = vpop.permute.xlu0 %911 }
 0x17d   : > { %4095 = vmatprep.mubr.msk.bf16.mxu0 %vm1243_vm11, %v1209_v35  ;;  %v1178_v34 = vsel %vm1150_vm9, %v1145_v6, %v912_v20 }
 0x17f   : > { %v832_v36 = vpop.permute.xlu1 %831 }
 0x180   : > { %v947_v4 = vpop.permute.xlu0 %946  ;;  %v1116_v28 = vsel %vm1084_vm7, %v1083_v54, %v832_v36 }
 0x181   : > { %v1211_v61 = vsel %vm1183_vm10, %v1178_v34, %v947_v4 }
 0x182   : > { %4096 = vmatmul.mubr.msk.bf16.gmra.mxu0 %vm1243_vm11, %v1211_v61 }
 0x183   : > { %v869_v33 = vpop.permute.xlu1 %868 }
 0x184   : > { %v867_v18 = vpop.permute.xlu0 %866  ;;  %v1149_v0 = vsel %vm1117_vm8, %v1116_v28, %v869_v33 }
 0x185   : > { %v1147_v16 = vsel %vm1117_vm8, %v1114_v7, %v867_v18 }
 0x187   : > { %v916_v14 = vpop.permute.xlu1 %915 }
 0x188   : > { %v914_v38 = vpop.permute.xlu0 %913  ;;  %v1182_v56 = vsel %vm1150_vm9, %v1149_v0, %v916_v14 }
 0x189   : > { %v1180_v58 = vsel %vm1150_vm9, %v1147_v16, %v914_v38 }
 0x18b   : > { %v951_v8 = vpop.permute.xlu1 %950 }
 0x18c   : > { %v1215_v11 = vsel %vm1183_vm10, %v1182_v56, %v951_v8  ;;  %v949_v15 = vpop.permute.xlu0 %948 }
 0x18d   : > { %v1213_v27 = vsel %vm1183_vm10, %v1180_v58, %v949_v15 }
 0x18e   : > { %4099 = vmatprep.mubr.msk.bf16.mxu0 %vm1243_vm11, %v1213_v27 }
 0x18f   : > { %4100 = vmatmul.mubr.msk.bf16.gmra.mxu0 %vm1243_vm11, %v1215_v11 }
 0x1fa   : > { %v4073_v17 = vpop.f32.mrf.mxu0 }
 0x1fb   : > { %v1323_v51 = vadd.f32 %v4073_v17, %v5294_v12 }
 0x1fc   : > { %v1314_v40 = vpop.f32.mrf.mxu0 }
 0x1fd   : > { %v1443_v42 = vmax.f32 %v1323_v51, 0.0  ;;  %v1315_v39 = vadd.f32 %v5294_v12, %v1314_v40 }
 0x1fe   : > { %v4074_v1 = vpop.f32.mrf.mxu0 }
 0x1ff   : > { %v5299_v10 = vpack.c.bf16 %v1443_v42, %v7167_v43  ;;  %v1441_v25 = vmax.f32 %v1315_v39, 0.0  ;;  %v1326_v2 = vadd.f32 %v4074_v1, %v5294_v12 }
 0x200   : > { %v1317_v49 = vpop.f32.mrf.mxu0 }
 0x201   : > { %v1444_v52 = vmax.f32 %v1326_v2, 0.0  ;;  %1951 = vrot.lane.b32.xlu1 %v5299_v10, %s4274_s26  ;;  %v5305_v50 = vpack.c.bf16 %v1441_v25, %v7167_v43  ;;  %v1318_v23 = vadd.f32 %v5294_v12, %v1317_v49  ;;  %v1839_v47 = vrot.slane %v5299_v10, 1 }
 0x202   : > { %v1532_v20 = vshll.u32 %v5299_v10, 16  ;;  %v1530_v18 = vshrl.u32 %v5299_v10, 16 }
 0x203   : > { %7365 = vst [vmem:[#allocation16_spill] sm:$0xff] %v5305_v50  ;;  %v5308_v29 = vpack.c.bf16 %v7167_v43, %v1444_v52  ;;  %v1442_v48 = vmax.f32 %v1318_v23, 0.0  ;;  %v1836_v3 = vrot.slane %v5305_v50, 1  ;;  %v1517_v26 = vshll.u32 %v5305_v50, 16 }
 0x204   : > { %v1534_v34 = vrot.slane %v1532_v20, 1  ;;  %v1515_v16 = vshrl.u32 %v5305_v50, 16 }
 0x205   : > { %1953 = vrot.lane.b32.xlu0 %v5308_v29, %s4274_s26  ;;  %1947 = vrot.lane.b32.xlu1 %v5305_v50, %s4274_s26  ;;  %v5316_v35 = vrot.slane %v5308_v29, 1  ;;  %v1537_v36 = vshll.u32 %v5308_v29, 16  ;;  %v5331_v4 = vpack.c.bf16 %v7167_v43, %v1442_v48  ;;  %v1541_v14 = vshrl.u32 %v5308_v29, 16 }
 0x206   : > { %v4077_v46 = vpop.f32.mrf.mxu0  ;;  %v1535_v31 = vor.u32 %v1534_v34, %v1530_v18  ;;  %v1519_v59 = vrot.slane %v1517_v26, 1 }
 0x207   : > { %v1339_v13 = vadd.f32 %v4077_v46, %v5294_v12  ;;  %v5323_v53 = vsel %vm633_vm1, %v1839_v47, %v5316_v35  ;;  %7366 = vst [vmem:[#allocation9_spill] sm:$0xff] %v5331_v4  ;;  %v1539_v45 = vrot.slane %v1537_v36, 1  ;;  %v5343_v32 = vrot.slane %v5331_v4, 1 }
 0x208   : > { %v1330_v19 = vpop.f32.mrf.mxu0  ;;  %v1522_v44 = vshll.u32 %v5331_v4, 16  ;;  %v1526_v62 = vshrl.u32 %v5331_v4, 16  ;;  %v1520_v56 = vor.u32 %v1519_v59, %v1515_v16 }
 0x209   : > { %v1447_v6 = vmax.f32 %v1339_v13, 0.0  ;;  %1891 = vrot.lane.b32.xlu0 %v5316_v35, %s4273_s25  ;;  %1889 = vrot.lane.b32.xlu1 %v5323_v53, %s4273_s25  ;;  %v1331_v24 = vadd.f32 %v5294_v12, %v1330_v19  ;;  %v5348_v5 = vsel %vm408_vm0, %v1535_v31, %v1539_v45  ;;  %v5357_v30 = vor.u32 %v1541_v14, %v1539_v45 }
 0x20a   : > { %v4078_v33 = vpop.f32.mrf.mxu0  ;;  %v1524_v55 = vrot.slane %v1522_v44, 1  ;;  %v5361_v38 = vsel %vm633_vm1, %v1836_v3, %v5343_v32 }
 0x20b   : > { %v5334_v61 = vpack.c.bf16 %v1447_v6, %v7167_v43  ;;  %v1342_v37 = vadd.f32 %v4078_v33, %v5294_v12  ;;  %v1445_v41 = vmax.f32 %v1331_v24, 0.0 }
 0x20c   : > { %v1333_v21 = vpop.f32.mrf.mxu0  ;;  %v5371_v7 = vor.u32 %v1526_v62, %v1524_v55  ;;  %v5384_v27 = vsel %vm408_vm0, %v1520_v56, %v1524_v55 }
 0x20d   : > { %1949 = vrot.lane.b32.xlu0 %v5331_v4, %s4274_s26  ;;  %1959 = vrot.lane.b32.xlu1 %v5334_v61, %s4274_s26  ;;  %v1448_v63 = vmax.f32 %v1342_v37, 0.0  ;;  %v5369_v28 = vpack.c.bf16 %v1445_v41, %v7167_v43  ;;  %v1334_v58 = vadd.f32 %v5294_v12, %v1333_v21  ;;  %v1845_v40 = vrot.slane %v5334_v61, 1 }
 0x20e   : > { %v1562_v42 = vshll.u32 %v5334_v61, 16  ;;  %v1560_v20 = vshrl.u32 %v5334_v61, 16 }
 0x20f   : > { %v5374_v0 = vpack.c.bf16 %v7167_v43, %v1448_v63  ;;  %v1446_v39 = vmax.f32 %v1334_v58, 0.0  ;;  %v1842_v24 = vrot.slane %v5369_v28, 1  ;;  %v1547_v44 = vshll.u32 %v5369_v28, 16 }
 0x210   : > { %v1564_v52 = vrot.slane %v1562_v42, 1  ;;  %v1545_v16 = vshrl.u32 %v5369_v28, 16 }
 0x211   : > { %1887 = vrot.lane.b32.xlu0 %v5343_v32, %s4273_s25  ;;  %1747 = vrot.lane.b32.xlu1 %v5348_v5, %s4272_s24  ;;  %v5387_v17 = vrot.slane %v5374_v0, 1  ;;  %v1567_v49 = vshll.u32 %v5374_v0, 16  ;;  %v5409_v23 = vpack.c.bf16 %v7167_v43, %v1446_v39  ;;  %v1571_v45 = vshrl.u32 %v5374_v0, 16 }
 0x212   : > { %v4081_v60 = vpop.f32.mrf.mxu0  ;;  %v1565_v13 = vor.u32 %v1564_v52, %v1560_v20  ;;  %v1549_v55 = vrot.slane %v1547_v44, 1 }
 0x213   : > { %v1355_v11 = vadd.f32 %v4081_v60, %v5294_v12  ;;  %v5401_v2 = vsel %vm633_vm1, %v1845_v40, %v5387_v17  ;;  %v1569_v48 = vrot.slane %v1567_v49, 1  ;;  %v5421_v36 = vrot.slane %v5409_v23, 1 }
 0x214   : > { %v1346_v54 = vpop.f32.mrf.mxu0  ;;  %v1552_v6 = vshll.u32 %v5409_v23, 16  ;;  %v1556_v41 = vshrl.u32 %v5409_v23, 16  ;;  %v1550_v56 = vor.u32 %v1549_v55, %v1545_v16 }
 0x215   : > { %1749 = vrot.lane.b32.xlu0 %v5357_v30, %s4272_s24  ;;  %1885 = vrot.lane.b32.xlu1 %v5361_v38, %s4273_s25  ;;  %v1451_v1 = vmax.f32 %v1355_v11, 0.0  ;;  %v1347_v19 = vadd.f32 %v5294_v12, %v1346_v54  ;;  %v5428_v18 = vsel %vm408_vm0, %v1565_v13, %v1569_v48  ;;  %v5439_v21 = vor.u32 %v1571_v45, %v1569_v48 }
 0x216   : > { %v4082_v8 = vpop.f32.mrf.mxu0  ;;  %v1554_v14 = vrot.slane %v1552_v6, 1  ;;  %v5445_v26 = vsel %vm633_vm1, %v1842_v24, %v5421_v36 }
 0x217   : > { %v5412_v47 = vpack.c.bf16 %v1451_v1, %v7167_v43  ;;  %v1358_v34 = vadd.f32 %v4082_v8, %v5294_v12  ;;  %v1449_v37 = vmax.f32 %v1347_v19, 0.0 }
 0x218   : > { %v1349_v15 = vpop.f32.mrf.mxu0  ;;  %v5455_v54 = vor.u32 %v1556_v41, %v1554_v14  ;;  %v5472_v42 = vsel %vm408_vm0, %v1550_v56, %v1554_v14 }
 0x219   : > { %1745 = vrot.lane.b32.xlu0 %v5371_v7, %s4272_s24  ;;  %1955 = vrot.lane.b32.xlu1 %v5369_v28, %s4274_s26  ;;  %7367 = vst [vmem:[#allocation8_spill] sm:$0xff] %v5412_v47  ;;  %v1452_v60 = vmax.f32 %v1358_v34, 0.0  ;;  %v5453_v63 = vpack.c.bf16 %v1449_v37, %v7167_v43  ;;  %v1350_v59 = vadd.f32 %v5294_v12, %v1349_v15  ;;  %v1592_v58 = vshll.u32 %v5412_v47, 16 }
 0x21a   : > { %v1851_v49 = vrot.slane %v5412_v47, 1  ;;  %v1590_v19 = vshrl.u32 %v5412_v47, 16 }
 0x21b   : > { %v5458_v62 = vpack.c.bf16 %v7167_v43, %v1452_v60  ;;  %v1450_v11 = vmax.f32 %v1350_v59, 0.0  ;;  %v1594_v52 = vrot.slane %v1592_v58, 1  ;;  %v1848_v41 = vrot.slane %v5453_v63, 1 }
 0x21d   : > { %1961 = vrot.lane.b32.xlu0 %v5374_v0, %s4274_s26  ;;  %1743 = vrot.lane.b32.xlu1 %v5384_v27, %s4272_s24  ;;  %7368 = vst [vmem:[#allocation18_spill] sm:$0xff] %v5458_v62  ;;  %v5475_v15 = vrot.slane %v5458_v62, 1  ;;  %v1597_v39 = vshll.u32 %v5458_v62, 16  ;;  %v5486_v20 = vpack.c.bf16 %v7167_v43, %v1450_v11  ;;  %v1595_v45 = vor.u32 %v1594_v52, %v1590_v19 }
 0x21e   : > { %v5393_v51 = vpop.f32.mrf.mxu0  ;;  %v1601_v58 = vshrl.u32 %v5458_v62, 16 }
 0x21f   : > { %7369 = vst [vmem:[#allocation11_spill] sm:$0xff] %v5475_v15  ;;  %v5492_v13 = vsel %vm633_vm1, %v1851_v49, %v5475_v15  ;;  %v1599_v6 = vrot.slane %v1597_v39, 1  ;;  %v1371_v34 = vadd.f32 %v5393_v51, %v5294_v12  ;;  %v5510_v60 = vrot.slane %v5486_v20, 1 }
 0x220   : > { %v5397_v25 = vpop.f32.mrf.mxu0  ;;  %7370 = vst [vmem:[#allocation20_spill] sm:$0xff] %v5492_v13  ;;  %v1582_v55 = vshll.u32 %v5486_v20, 16 }
 0x221   : > { %1899 = vrot.lane.b32.xlu0 %v5387_v17, %s4273_s25  ;;  %1897 = vrot.lane.b32.xlu1 %v5401_v2, %s4273_s25  ;;  %v1363_v24 = vadd.f32 %v5294_v12, %v5397_v25  ;;  %v5507_v14 = vsel %vm408_vm0, %v1595_v45, %v1599_v6  ;;  %v1455_v51 = vmax.f32 %v1371_v34, 0.0  ;;  %v1577_v25 = vshll.u32 %v5453_v63, 16 }
 0x222   : > { %v4086_v46 = vpop.f32.mrf.mxu0  ;;  %7371 = vst [vmem:[#allocation26_spill] sm:$0xff] %v5507_v14  ;;  %v5523_v56 = vsel %vm633_vm1, %v1848_v41, %v5510_v60  ;;  %v5538_v19 = vor.u32 %v1601_v58, %v1599_v6  ;;  %v1584_v34 = vrot.slane %v1582_v55, 1  ;;  %v1586_v6 = vshrl.u32 %v5486_v20, 16 }
 0x223   : > { %v1374_v44 = vadd.f32 %v4086_v46, %v5294_v12  ;;  %v1453_v46 = vmax.f32 %v1363_v24, 0.0  ;;  %v5531_v11 = vpack.c.bf16 %v1455_v51, %v7167_v43  ;;  %v1579_v49 = vrot.slane %v1577_v25, 1 }
 0x224   : > { %v5425_v33 = vpop.f32.mrf.mxu0  ;;  %7374 = vst [vmem:[#allocation10_spill] sm:$0xff] %v5538_v19 }
 0x225   : > { %1957 = vrot.lane.b32.xlu0 %v5409_v23, %s4274_s26  ;;  %1967 = vrot.lane.b32.xlu1 %v5412_v47, %s4274_s26  ;;  %v1456_v59 = vmax.f32 %v1374_v44, 0.0  ;;  %7372 = vst [vmem:[#allocation32_spill] sm:$0xff] %v5531_v11  ;;  %v5536_v52 = vpack.c.bf16 %v1453_v46, %v7167_v43  ;;  %v1366_v24 = vadd.f32 %v5294_v12, %v5425_v33  ;;  %v1575_v44 = vshrl.u32 %v5453_v63, 16 }
 0x226   : > { %v1622_v25 = vshll.u32 %v5531_v11, 16  ;;  %v5554_v46 = vor.u32 %v1586_v6, %v1584_v34 }
 0x227   : > { %7373 = vst [vmem:[#allocation38_spill] sm:$0xff] %v5536_v52  ;;  %v5541_v45 = vpack.c.bf16 %v7167_v43, %v1456_v59  ;;  %v1580_v51 = vor.u32 %v1579_v49, %v1575_v44  ;;  %v1454_v55 = vmax.f32 %v1366_v24, 0.0  ;;  %v1857_v49 = vrot.slane %v5531_v11, 1 }
 0x228   : > { %v7377_v44 = vmov 0.0  }
 0x229   : > { %1895 = vrot.lane.b32.xlu0 %v5421_v36, %s4273_s25  ;;  %1755 = vrot.lane.b32.xlu1 %v5428_v18, %s4272_s24  ;;  %7375 = vst [vmem:[#allocation2_spill] sm:$0xff] %v5541_v45  ;;  %v5557_v33 = vsel %vm408_vm0, %v1580_v51, %v1584_v34  ;;  %v5560_v59 = vrot.slane %v5541_v45, 1  ;;  %v1627_v58 = vshll.u32 %v5541_v45, 16  ;;  %v1624_v34 = vrot.slane %v1622_v25, 1 }
 0x22a   : > { %v5435_v31 = vpop.f32.mrf.mxu0  ;;  %v5575_v6 = vpack.c.bf16 %v7377_v44, %v1454_v55  ;;  %v1620_v51 = vshrl.u32 %v5531_v11, 16  ;;  %v1607_v25 = vshll.u32 %v5536_v52, 16 }
 0x22b   : > { %7376 = vst [vmem:[#allocation19_spill] sm:$0xff] %v5560_v59  ;;  %v1387_v57 = vadd.f32 %v5435_v31, %v5294_v12  ;;  %v5579_v31 = vsel %vm633_vm1, %v1857_v49, %v5560_v59  ;;  %v1629_v9 = vrot.slane %v1627_v58, 1 }
 0x22c   : > { %v5441_v3 = vpop.f32.mrf.mxu0  ;;  %7378 = vst [vmem:[#allocation25_spill] sm:$0xff] %v5575_v6  ;;  %7379 = vst [vmem:[#allocation31_spill] sm:$0xff] %v5579_v31  ;;  %v1612_v58 = vshll.u32 %v5575_v6, 16 }
 0x22d   : > { %1757 = vrot.lane.b32.xlu0 %v5439_v21, %s4272_s24  ;;  %1893 = vrot.lane.b32.xlu1 %v5445_v26, %s4273_s25  ;;  %v1459_v22 = vmax.f32 %v1387_v57, 0.0  ;;  %v5594_v57 = vrot.slane %v5575_v6, 1 }
 0x22e   : > { %v5461_v8 = vpop.f32.mrf.mxu0 }
 0x22f   : > { %v1390_v24 = vadd.f32 %v5461_v8, %v5294_v12  ;;  %v1625_v8 = vor.u32 %v1624_v34, %v1620_v51  ;;  %7381 = vst [vmem:[#allocation13_spill] sm:$0xff] %v5594_v57  ;;  %v1379_v34 = vadd.f32 %v5294_v12, %v5441_v3  ;;  %v1854_v51 = vrot.slane %v5536_v52, 1 }
 0x230   : > { %v5469_v40 = vpop.f32.mrf.mxu0  ;;  %v1605_v3 = vshrl.u32 %v5536_v52, 16 }
 0x231   : > { %1753 = vrot.lane.b32.xlu0 %v5455_v54, %s4272_s24  ;;  %1963 = vrot.lane.b32.xlu1 %v5453_v63, %s4274_s26  ;;  %v1460_v55 = vmax.f32 %v1390_v24, 0.0  ;;  %v5591_v47 = vsel %vm408_vm0, %v1625_v8, %v1629_v9  ;;  %v1609_v8 = vrot.slane %v1607_v25, 1  ;;  %v1457_v25 = vmax.f32 %v1379_v34, 0.0 }
 0x232   : > { %7380 = vst [vmem:[#allocation37_spill] sm:$0xff] %v5591_v47 }
 0x235   : > { %1969 = vrot.lane.b32.xlu0 %v5458_v62, %s4274_s26  ;;  %1751 = vrot.lane.b32.xlu1 %v5472_v42, %s4272_s24 }
 0x236   : > { %v5482_v1 = vpop.f32.mrf.mxu0 }
 0x238   : > { %v5488_v48 = vpop.f32.mrf.mxu0 }
 0x239   : > { %1907 = vrot.lane.b32.xlu0 %v5475_v15, %s4273_s25  ;;  %1905 = vrot.lane.b32.xlu1 %v5492_v13, %s4273_s25  ;;  %v1614_v15 = vrot.slane %v1612_v58, 1 }
 0x23a   : > { %v5504_v37 = vpop.f32.mrf.mxu0 }
 0x23c   : > { %v5519_v16 = vpop.f32.mrf.mxu0 }
 0x23d   : > { %1965 = vrot.lane.b32.xlu0 %v5486_v20, %s4274_s26  ;;  %1763 = vrot.lane.b32.xlu1 %v5507_v14, %s4272_s24 }
 0x241   : > { %1903 = vrot.lane.b32.xlu0 %v5510_v60, %s4273_s25  ;;  %1901 = vrot.lane.b32.xlu1 %v5523_v56, %s4273_s25 }
 0x242   : > { %v5533_v39 = vpop.f32.mrf.mxu0 }
 0x244   : > { %v5546_v41 = vpop.f32.mrf.mxu0 }
 0x245   : > { %1765 = vrot.lane.b32.xlu0 %v5538_v19, %s4272_s24  ;;  %1971 = vrot.lane.b32.xlu1 %v5536_v52, %s4274_s26  ;;  %v1610_v52 = vor.u32 %v1609_v8, %v1605_v3  ;;  %v5646_v8 = vpack.c.bf16 %v1457_v25, %v7377_v44 }
 0x246   : > { %v5565_v43 = vpop.f32.mrf.mxu0 }
 0x247   : > { %7388 = vst [vmem:[#allocation3_spill] sm:$0xff] %v5646_v8 }
 0x248   : > { %v5582_v50 = vpop.f32.mrf.mxu0 }
 0x249   : > { %1761 = vrot.lane.b32.xlu0 %v5554_v46, %s4272_s24  ;;  %1759 = vrot.lane.b32.xlu1 %v5557_v33, %s4272_s24 }
 0x24d   : > { %1915 = vrot.lane.b32.xlu0 %v5560_v59, %s4273_s25  ;;  %1913 = vrot.lane.b32.xlu1 %v5579_v31, %s4273_s25  ;;  %v5598_v59 = vpack.c.bf16 %v1459_v22, %v7377_v44  ;;  %v5610_v31 = vpack.c.bf16 %v7377_v44, %v1460_v55  ;;  %v1382_v22 = vadd.f32 %v5294_v12, %v5469_v40  ;;  %v1631_v40 = vshrl.u32 %v5541_v45, 16 }
 0x24f   : > { %v4101_v4 = vpop.f32.mrf.mxu0  ;;  %v1652_v55 = vshll.u32 %v5598_v59, 16  ;;  %v1458_v14 = vmax.f32 %v1382_v22, 0.0  ;;  %v5630_v19 = vor.u32 %v1631_v40, %v1629_v9  ;;  %v5633_v58 = vrot.slane %v5610_v31, 1 }
 0x250   : > { %v1435_v49 = vadd.f32 %v4101_v4, %v5294_v12  ;;  %v1863_v9 = vrot.slane %v5598_v59, 1 }
 0x251   : > { %1973 = vrot.lane.b32.xlu0 %v5575_v6, %s4274_s26  ;;  %1771 = vrot.lane.b32.xlu1 %v5591_v47, %s4272_s24  ;;  %v5606_v4 = vpop.f32.mrf.mxu0  ;;  %7384 = vst [vmem:[#allocation28_spill] sm:$0xff] %v5630_v19  ;;  %7385 = vst [vmem:[#allocation34_spill] sm:$0xff] %v5633_v58  ;;  %v1654_v22 = vrot.slane %v1652_v55, 1  ;;  %v1650_v55 = vshrl.u32 %v5598_v59, 16 }
 0x252   : > { %v1471_v24 = vmax.f32 %v1435_v49, 0.0  ;;  %v5621_v49 = vsel %vm633_vm1, %v1854_v51, %v5594_v57 }
 0x253   : > { %v4102_v62 = vpop.f32.mrf.mxu0  ;;  %7383 = vst [vmem:[#allocation22_spill] sm:$0xff] %v5621_v49 }
 0x254   : > { %v5616_v13 = vpack.c.bf16 %v1471_v24, %v7377_v44  ;;  %v1438_v47 = vadd.f32 %v4102_v62, %v5294_v12  ;;  %v1616_v62 = vshrl.u32 %v5575_v6, 16 }
 0x255   : > { %1911 = vrot.lane.b32.xlu0 %v5594_v57, %s4273_s25  ;;  %1909 = vrot.lane.b32.xlu1 %v5621_v49, %s4273_s25  ;;  %v5640_v49 = vsel %vm408_vm0, %v1610_v52, %v1614_v15  ;;  %v1403_v52 = vadd.f32 %v5482_v1, %v5294_v12  ;;  %v1406_v1 = vadd.f32 %v5504_v37, %v5294_v12 }
 0x256   : > { %7382 = vst [vmem:[#allocation4_spill] sm:$0xff] %v5616_v13  ;;  %v1472_v24 = vmax.f32 %v1438_v47, 0.0  ;;  %v2014_v34 = vshll.u32 %v5616_v13, 16  ;;  %7387 = vst [vmem:[#allocation12_spill] sm:$0xff] %v5640_v49  ;;  %v5642_v57 = vor.u32 %v1616_v62, %v1614_v15  ;;  %v1657_v47 = vshll.u32 %v5610_v31, 16 }
 0x257   : > { %v2012_v15 = vshrl.u32 %v5616_v13, 16  ;;  %v5665_v62 = vsel %vm633_vm1, %v1863_v9, %v5633_v58  ;;  %v1463_v9 = vmax.f32 %v1403_v52, 0.0 }
 0x258   : > { %v5637_v51 = vpack.c.bf16 %v7377_v44, %v1472_v24  ;;  %v2016_v3 = vrot.slane %v2014_v34, 1  ;;  %v5661_v24 = vpack.c.bf16 %v7377_v44, %v1458_v14  ;;  %7391 = vst [vmem:[#allocation33_spill] sm:$0xff] %v5665_v62  ;;  %v2090_v34 = vrot.slane %v5616_v13, 1 }
 0x259   : > { %1773 = vrot.lane.b32.xlu0 %v5630_v19, %s4272_s24  ;;  %1767 = vrot.lane.b32.xlu1 %v5640_v49, %s4272_s24  ;;  %v1659_v19 = vrot.slane %v1657_v47, 1  ;;  %v1637_v13 = vshll.u32 %v5646_v8, 16  ;;  %v1464_v47 = vmax.f32 %v1406_v1, 0.0  ;;  %v1398_v1 = vadd.f32 %v5294_v12, %v5519_v16 }
 0x25a   : > { %7386 = vst [vmem:[#allocation40_spill] sm:$0xff] %v5637_v51  ;;  %v2019_v40 = vshll.u32 %v5637_v51, 16  ;;  %v5658_v25 = vrot.slane %v5637_v51, 1  ;;  %7390 = vst [vmem:[#allocation27_spill] sm:$0xff] %v5661_v24  ;;  %v2017_v49 = vor.u32 %v2016_v3, %v2012_v15  ;;  %v1655_v51 = vor.u32 %v1654_v22, %v1650_v55 }
 0x25b   : > { %v5690_v15 = vrot.slane %v5661_v24, 1  ;;  %v5698_v22 = vpack.c.bf16 %v1463_v9, %v7377_v44  ;;  %v1639_v52 = vrot.slane %v1637_v13, 1  ;;  %v1635_v55 = vshrl.u32 %v5646_v8, 16 }
 0x25c   : > { %7389 = vst [vmem:[#allocation21_spill] sm:$0xff] %v5658_v25  ;;  %v5671_v6 = vrot.slane %v2019_v40, 1  ;;  %v5679_v14 = vsel %vm633_vm1, %v2090_v34, %v5658_v25  ;;  %v5687_v3 = vsel %vm408_vm0, %v1655_v51, %v1659_v19  ;;  %v1642_v40 = vshll.u32 %v5661_v24, 16 }
 0x25d   : > { %1769 = vrot.lane.b32.xlu0 %v5642_v57, %s4272_s24  ;;  %1921 = vrot.lane.b32.xlu1 %v5665_v62, %s4273_s25  ;;  %7393 = vst [vmem:[#allocation14_spill] sm:$0xff] %v5679_v14  ;;  %7395 = vst [vmem:[#allocation15_spill] sm:$0xff] %v5687_v3  ;;  %v1860_v51 = vrot.slane %v5646_v8, 1  ;;  %v5705_v34 = vpack.c.bf16 %v7377_v44, %v1464_v47  ;;  %v1640_v14 = vor.u32 %v1639_v52, %v1635_v55 }
 0x25e   : > { %7392 = vst [vmem:[#allocation39_spill] sm:$0xff] %v5671_v6  ;;  %v5684_v37 = vsel %vm408_vm0, %v2017_v49, %v5671_v6  ;;  %7396 = vst [vmem:[#allocation6_spill] sm:$0xff] %v5690_v15  ;;  %v1395_v49 = vadd.f32 %v5294_v12, %v5488_v48  ;;  %v1644_v9 = vrot.slane %v1642_v40, 1  ;;  %v1661_v48 = vshrl.u32 %v5610_v31, 16 }
 0x25f   : > { %7394 = vst [vmem:[#allocation5_spill] sm:$0xff] %v5684_v37  ;;  %v5711_v25 = vsel %vm633_vm1, %v1860_v51, %v5690_v15  ;;  %v1682_v47 = vshll.u32 %v5698_v22, 16  ;;  %v1462_v16 = vmax.f32 %v1398_v1, 0.0  ;;  %v5725_v40 = vrot.slane %v5705_v34, 1 }
 0x260   : > { %7397 = vst [vmem:[#allocation23_spill] sm:$0xff] %v5711_v25  ;;  %v1461_v13 = vmax.f32 %v1395_v49, 0.0  ;;  %v5719_v6 = vor.u32 %v1661_v48, %v1659_v19  ;;  %v5722_v37 = vsel %vm408_vm0, %v1640_v14, %v1644_v9  ;;  %v1687_v51 = vshll.u32 %v5705_v34, 16  ;;  %v5741_v48 = vpop.permute.xlu0 %4164 }
 0x261   : > { %1923 = vrot.lane.b32.xlu0 %v5633_v58, %s4273_s25  ;;  %1779 = vrot.lane.b32.xlu1 %v5687_v3, %s4272_s24  ;;  %7399 = vst [vmem:[#allocation29_spill] sm:$0xff] %v5722_v37  ;;  %7400 = vst [vmem:[#allocation30_spill] sm:$0xff] %v5725_v40  ;;  %v1646_v49 = vshrl.u32 %v5661_v24, 16  ;;  %v1419_v14 = vadd.f32 %v5533_v39, %v5294_v12  ;;  %v1869_v52 = vrot.slane %v5698_v22, 1  ;;  %v1684_v55 = vrot.slane %v1682_v47, 1 }
 0x262   : > { %7398 = vst [vmem:[#allocation24_spill] sm:$0xff] %v5719_v6  ;;  %v5734_v19 = vpack.c.bf16 %v1461_v13, %v7377_v44  ;;  %v1680_v62 = vshrl.u32 %v5698_v22, 16  ;;  %v5745_v58 = vpack.c.bf16 %v7377_v44, %v1462_v16  ;;  %v1422_v3 = vadd.f32 %v5565_v43, %v5294_v12 }
 0x263   : > { %v5739_v1 = vor.u32 %v1646_v49, %v1644_v9  ;;  %v5751_v13 = vsel %vm633_vm1, %v1869_v52, %v5725_v40  ;;  %v1689_v39 = vrot.slane %v1687_v51, 1  ;;  %v5757_v9 = vpop.permute.xlu1 %1881  ;;  %v1467_v47 = vmax.f32 %v1419_v14, 0.0 }
 0x264   : > { %7402 = vst [vmem:[#allocation36_spill] sm:$0xff] %v5751_v13  ;;  %v1685_v49 = vor.u32 %v1684_v55, %v1680_v62  ;;  %v1667_v16 = vshll.u32 %v5734_v19, 16  ;;  %v5764_v52 = vrot.slane %v5745_v58, 1  ;;  %v1672_v51 = vshll.u32 %v5745_v58, 16 }
 0x265   : > { %1919 = vrot.lane.b32.xlu0 %v5690_v15, %s4273_s25  ;;  %1917 = vrot.lane.b32.xlu1 %v5711_v25, %s4273_s25  ;;  %7401 = vst [vmem:[#allocation35_spill] sm:$0xff] %v5739_v1  ;;  %v5774_v62 = vpack.c.bf16 %v1467_v47, %v7377_v44  ;;  %v1866_v14 = vrot.slane %v5734_v19, 1  ;;  %v1665_v25 = vshrl.u32 %v5734_v19, 16 }
 0x266   : > { %v5761_v43 = vsel %vm408_vm0, %v1685_v49, %v1689_v39  ;;  %7404 = vst [vmem:[#allocation42_spill] sm:$0xff] %v5764_v52  ;;  %v1669_v55 = vrot.slane %v1667_v16, 1  ;;  %v1674_v15 = vrot.slane %v1672_v51, 1 }
 0x267   : > { %7403 = vst [vmem:[#allocation41_spill] sm:$0xff] %v5761_v43  ;;  %7406 = vst [vmem:[#allocation44_spill] sm:$0xff] %v5774_v62  ;;  %v5789_v47 = vsel %vm633_vm1, %v1866_v14, %v5764_v52 }
 0x268   : > { %7409 = vst [vmem:[#allocation47_spill] sm:$0xff] %v5789_v47 }
 0x269   : > { %1781 = vrot.lane.b32.xlu0 %v5719_v6, %s4272_s24  ;;  %1775 = vrot.lane.b32.xlu1 %v5722_v37, %s4272_s24  ;;  %v1468_v6 = vmax.f32 %v1422_v3, 0.0  ;;  %v1411_v3 = vadd.f32 %v5294_v12, %v5546_v41  ;;  %v1691_v41 = vshrl.u32 %v5705_v34, 16  ;;  %v1670_v37 = vor.u32 %v1669_v55, %v1665_v25 }
 0x26a   : > { %v1676_v25 = vshrl.u32 %v5745_v58, 16 }
 0x26b   : > { %v1465_v16 = vmax.f32 %v1411_v3, 0.0  ;;  %v5804_v51 = vsel %vm408_vm0, %v1670_v37, %v1674_v15  ;;  %v1427_v37 = vadd.f32 %v5294_v12, %v5606_v4 }
 0x26c   : > { %7413 = vst [vmem:[#allocation51_spill] sm:$0xff] %v5804_v51 }
 0x26d   : > { %1777 = vrot.lane.b32.xlu0 %v5739_v1, %s4272_s24  ;;  %1929 = vrot.lane.b32.xlu1 %v5751_v13, %s4273_s25  ;;  %v5771_v13 = vpop.permute.xlu0 %1883 }
 0x26e   : > { %7405 = vst [vmem:[#allocation43_spill] sm:$0xff] %v5771_v13  ;;  %v1429_v13 = vpop.f32.mrf.mxu0 }
 0x271   : > { %1931 = vrot.lane.b32.xlu0 %v5725_v40, %s4273_s25  ;;  %1787 = vrot.lane.b32.xlu1 %v5761_v43, %s4272_s24  ;;  %v5783_v40 = vpack.c.bf16 %v7377_v44, %v1468_v6  ;;  %v1414_v43 = vadd.f32 %v5294_v12, %v5582_v50  ;;  %v1712_v6 = vshll.u32 %v5774_v62, 16 }
 0x273   : > { %v5779_v49 = vpop.permute.xlu1 %1951  ;;  %7408 = vst [vmem:[#allocation46_spill] sm:$0xff] %v5783_v40  ;;  %v1466_v14 = vmax.f32 %v1414_v43, 0.0  ;;  %v1875_v43 = vrot.slane %v5774_v62, 1  ;;  %v1714_v3 = vrot.slane %v1712_v6, 1 }
 0x274   : > { %7407 = vst [vmem:[#allocation45_spill] sm:$0xff] %v5779_v49  ;;  %v5801_v49 = vor.u32 %v1691_v41, %v1689_v39  ;;  %v5816_v39 = vpack.c.bf16 %v1465_v16, %v7377_v44  ;;  %v1430_v16 = vadd.f32 %v5294_v12, %v1429_v13 }
 0x275   : > { %1927 = vrot.lane.b32.xlu0 %v5764_v52, %s4273_s25  ;;  %1925 = vrot.lane.b32.xlu1 %v5789_v47, %s4273_s25  ;;  %v5807_v52 = vrot.slane %v5783_v40, 1  ;;  %v1717_v47 = vshll.u32 %v5783_v40, 16 }
 0x276   : > { %7412 = vst [vmem:[#allocation50_spill] sm:$0xff] %v5801_v49  ;;  %7415 = vst [vmem:[#allocation53_spill] sm:$0xff] %v5816_v39  ;;  %v1470_v12 = vmax.f32 %v1430_v16, 0.0 }
 0x277   : > { %v5797_v1 = vpop.permute.xlu1 %1947  ;;  %v5799_v50 = vpop.permute.xlu0 %1953  ;;  %7414 = vst [vmem:[#allocation52_spill] sm:$0xff] %v5807_v52  ;;  %v1719_v4 = vrot.slane %v1717_v47, 1 }
 0x278   : > { %7410 = vst [vmem:[#allocation48_spill] sm:$0xff] %v5797_v1  ;;  %7411 = vst [vmem:[#allocation49_spill] sm:$0xff] %v5799_v50  ;;  %v5825_v50 = vor.u32 %v1676_v25, %v1674_v15  ;;  %v5834_v1 = vsel %vm633_vm1, %v1875_v43, %v5807_v52  ;;  %v1469_v15 = vmax.f32 %v1427_v37, 0.0  ;;  %v1697_v25 = vshll.u32 %v5816_v39, 16 }
 0x279   : > { %1789 = vrot.lane.b32.xlu0 %v5801_v49, %s4272_s24  ;;  %1783 = vrot.lane.b32.xlu1 %v5804_v51, %s4272_s24  ;;  %v1710_v49 = vshrl.u32 %v5774_v62, 16  ;;  %v5829_v51 = vpack.c.bf16 %v7377_v44, %v1466_v14  ;;  %7420 = vst [vmem:[#allocation58_spill] sm:$0xff] %v5834_v1  ;;  %v1872_v37 = vrot.slane %v5816_v39, 1 }
 0x27a   : > { %7418 = vst [vmem:[#allocation56_spill] sm:$0xff] %v5825_v50 }
 0x27b   : > { %v5821_v55 = vpop.permute.xlu1 %1889  ;;  %v5823_v41 = vpop.permute.xlu0 %1891  ;;  %7419 = vst [vmem:[#allocation57_spill] sm:$0xff] %v5829_v51  ;;  %v1715_v6 = vor.u32 %v1714_v3, %v1710_v49  ;;  %v5849_v47 = vrot.slane %v5829_v51, 1  ;;  %v1702_v43 = vshll.u32 %v5829_v51, 16  ;;  %v5857_v49 = vpack.c.bf16 %v1469_v15, %v7377_v44 }
 0x27c   : > { %7416 = vst [vmem:[#allocation54_spill] sm:$0xff] %v5821_v55  ;;  %7417 = vst [vmem:[#allocation55_spill] sm:$0xff] %v5823_v41  ;;  %v1699_v3 = vrot.slane %v1697_v25, 1  ;;  %v1721_v15 = vshrl.u32 %v5783_v40, 16 }
 0x27d   : > { %1785 = vrot.lane.b32.xlu0 %v5825_v50, %s4272_s24  ;;  %1937 = vrot.lane.b32.xlu1 %v5834_v1, %s4273_s25  ;;  %v5846_v13 = vsel %vm408_vm0, %v1715_v6, %v1719_v4  ;;  %7423 = vst [vmem:[#allocation61_spill] sm:$0xff] %v5849_v47  ;;  %7424 = vst [vmem:[#allocation62_spill] sm:$0xff] %v5857_v49  ;;  %v5865_v1 = vpack.c.bf16 %v7377_v44, %v1470_v12 }
 0x27e   : > { %7422 = vst [vmem:[#allocation60_spill] sm:$0xff] %v5846_v13  ;;  %v5869_v50 = vsel %vm633_vm1, %v1872_v37, %v5849_v47  ;;  %v5882_v37 = vor.u32 %v1721_v15, %v1719_v4 }
 0x27f   : > { %v5841_v62 = vpop.permute.xlu1 %1959  ;;  %v5843_v14 = vpop.permute.xlu0 %1949  ;;  %7425 = vst [vmem:[#allocation63_spill] sm:$0xff] %v5865_v1  ;;  %7426 = vst [vmem:[#allocation64_spill] sm:$0xff] %v5869_v50 }
 0x280   : > { %7421 = vst [vmem:[#allocation59_spill] sm:$0xff] %v5841_v62  ;;  %v1727_v62 = vshll.u32 %v5857_v49, 16  ;;  %7427 = vst [vmem:[#allocation65_spill] sm:$0xff] %v5882_v37 }
 0x281   : > { %1939 = vrot.lane.b32.xlu0 %v5807_v52, %s4273_s25  ;;  %1795 = vrot.lane.b32.xlu1 %v5846_v13, %s4272_s24  ;;  %v1695_v52 = vshrl.u32 %v5816_v39, 16  ;;  %v1704_v13 = vrot.slane %v1702_v43, 1  ;;  %v5888_v43 = vrot.slane %v5865_v1, 1 }
 0x282   : > { %v1729_v4 = vrot.slane %v1727_v62, 1 }
 0x283   : > { %v5860_v16 = vpop.permute.xlu1 %1747  ;;  %v5862_v6 = vpop.permute.xlu0 %1887  ;;  %v1700_v25 = vor.u32 %v1699_v3, %v1695_v52  ;;  %7429 = vst [vmem:[#allocation67_spill] sm:$0xff] %v5888_v43  ;;  %v1706_v52 = vshrl.u32 %v5829_v51, 16  ;;  %v1878_v3 = vrot.slane %v5857_v49, 1 }
 0x285   : > { %1935 = vrot.lane.b32.xlu0 %v5849_v47, %s4273_s25  ;;  %1933 = vrot.lane.b32.xlu1 %v5869_v50, %s4273_s25  ;;  %v5885_v41 = vsel %vm408_vm0, %v1700_v25, %v1704_v13  ;;  %v1732_v47 = vshll.u32 %v5865_v1, 16  ;;  %v5901_v40 = vor.u32 %v1706_v52, %v1704_v13  ;;  %v5905_v50 = vsel %vm633_vm1, %v1878_v3, %v5888_v43 }
 0x286   : > { %7428 = vst [vmem:[#allocation66_spill] sm:$0xff] %v5885_v41  ;;  %7431 = vst [vmem:[#allocation69_spill] sm:$0xff] %v5905_v50 }
 0x287   : > { %v5878_v44 = vpop.permute.xlu1 %1885  ;;  %v5880_v12 = vpop.permute.xlu0 %1749  ;;  %7430 = vst [vmem:[#allocation68_spill] sm:$0xff] %v5901_v40  ;;  %v1734_v55 = vrot.slane %v1732_v47, 1  ;;  %v1736_v47 = vshrl.u32 %v5865_v1, 16 }
 0x289   : > { %1797 = vrot.lane.b32.xlu0 %v5882_v37, %s4272_s24  ;;  %1791 = vrot.lane.b32.xlu1 %v5885_v41, %s4272_s24  ;;  %v1725_v37 = vshrl.u32 %v5857_v49, 16 }
 0x28b   : > { %v5897_v15 = vpop.permute.xlu1 %1955  ;;  %v5899_v25 = vpop.permute.xlu0 %1745  ;;  %v1730_v62 = vor.u32 %v1729_v4, %v1725_v37  ;;  %v5928_v37 = vor.u32 %v1736_v47, %v1734_v55 }
 0x28d   : > { %1793 = vrot.lane.b32.xlu0 %v5901_v40, %s4272_s24  ;;  %1941 = vrot.lane.b32.xlu1 %v5905_v50, %s4273_s25  ;;  %v5917_v13 = vsel %vm408_vm0, %v1730_v62, %v1734_v55  ;;  %7435 = vst [vmem:[#allocation73_spill] sm:$0xff] %v5928_v37 }
 0x28e   : > { %7432 = vst [vmem:[#allocation70_spill] sm:$0xff] %v5917_v13 }
 0x28f   : > { %v5912_v41 = vpop.permute.xlu1 %1743  ;;  %v5914_v51 = vpop.permute.xlu0 %1961 }
 0x291   : > { %1943 = vrot.lane.b32.xlu0 %v5888_v43, %s4273_s25  ;;  %1799 = vrot.lane.b32.xlu1 %v5917_v13, %s4272_s24 }
 0x293   : > { %v5924_v52 = vpop.permute.xlu1 %1897  ;;  %v5926_v3 = vpop.permute.xlu0 %1899 }
 0x294   : > { %7433 = vst [vmem:[#allocation71_spill] sm:$0xff] %v5924_v52  ;;  %7434 = vst [vmem:[#allocation72_spill] sm:$0xff] %v5926_v3  ;;  %v7514_v52 = vld [vmem:[#allocation49_spill] sm:$0xff] }
 0x295   : > { %1801 = vrot.lane.b32.xlu0 %v5928_v37, %s4272_s24  ;;  %1975 = vrot.lane.b32.xlu1 %v5531_v11, %s4274_s26 }
 0x297   : > { %v5934_v4 = vpop.permute.xlu1 %1967  ;;  %v5936_v62 = vpop.permute.xlu0 %1957 }
 0x298   : > { %7436 = vst [vmem:[#allocation74_spill] sm:$0xff] %v5934_v4 }
 0x299   : > { %1977 = vrot.lane.b32.xlu0 %v5541_v45, %s4274_s26  ;;  %1979 = vrot.lane.b32.xlu1 %v5646_v8, %s4274_s26 }
 0x29b   : > { %v5942_v43 = vpop.permute.xlu1 %1755  ;;  %v5944_v55 = vpop.permute.xlu0 %1895 }
 0x29d   : > { %1981 = vrot.lane.b32.xlu0 %v5661_v24, %s4274_s26  ;;  %1983 = vrot.lane.b32.xlu1 %v5598_v59, %s4274_s26 }
 0x29f   : > { %v5950_v47 = vpop.permute.xlu1 %1893  ;;  %v5952_v50 = vpop.permute.xlu0 %1757 }
 0x2a1   : > { %1985 = vrot.lane.b32.xlu0 %v5610_v31, %s4274_s26  ;;  %1987 = vrot.lane.b32.xlu1 %v5734_v19, %s4274_s26 }
 0x2a3   : > { %v5958_v37 = vpop.permute.xlu1 %1963  ;;  %v5960_v13 = vpop.permute.xlu0 %1753 }
 0x2a4   : > { %7437 = vst [vmem:[#allocation75_spill] sm:$0xff] %v5958_v37 }
 0x2a5   : > { %1989 = vrot.lane.b32.xlu0 %v5745_v58, %s4274_s26  ;;  %1991 = vrot.lane.b32.xlu1 %v5698_v22, %s4274_s26 }
 0x2a7   : > { %v5966_v1 = vpop.permute.xlu1 %1751  ;;  %v5968_v49 = vpop.permute.xlu0 %1969 }
 0x2a8   : > { %7438 = vst [vmem:[#allocation76_spill] sm:$0xff] %v5968_v49 }
 0x2a9   : > { %1993 = vrot.lane.b32.xlu0 %v5705_v34, %s4274_s26  ;;  %1995 = vrot.lane.b32.xlu1 %v5816_v39, %s4274_s26 }
 0x2ab   : > { %v5974_v40 = vpop.permute.xlu1 %1905  ;;  %v5976_v4 = vpop.permute.xlu0 %1907 }
 0x2ac   : > { %7439 = vst [vmem:[#allocation77_spill] sm:$0xff] %v5974_v40  ;;  %7440 = vst [vmem:[#allocation78_spill] sm:$0xff] %v5976_v4 }
 0x2ad   : > { %2026 = vrot.lane.b32.xlu0 %v5384_v27, %s4275_s27  ;;  %2028 = vrot.lane.b32.xlu1 %v5371_v7, %s4275_s27 }
 0x2af   : > { %v5982_v37 = vpop.permute.xlu1 %1763  ;;  %v5984_v3 = vpop.permute.xlu0 %1965 }
 0x2b0   : > { %7441 = vst [vmem:[#allocation79_spill] sm:$0xff] %v5982_v37  ;;  %7442 = vst [vmem:[#allocation80_spill] sm:$0xff] %v5984_v3 }
 0x2b1   : > { %2030 = vrot.lane.b32.xlu0 %v5348_v5, %s4275_s27  ;;  %2032 = vrot.lane.b32.xlu1 %v5357_v30, %s4275_s27 }
 0x2b3   : > { %v5990_v49 = vpop.permute.xlu1 %1901  ;;  %v5992_v40 = vpop.permute.xlu0 %1903 }
 0x2b4   : > { %7443 = vst [vmem:[#allocation81_spill] sm:$0xff] %v5990_v49  ;;  %7444 = vst [vmem:[#allocation82_spill] sm:$0xff] %v5992_v40 }
 0x2b5   : > { %2093 = vrot.lane.b32.xlu0 %v5361_v38, %s4276_s28  ;;  %2095 = vrot.lane.b32.xlu1 %v5343_v32, %s4276_s28 }
 0x2b7   : > { %v5998_v7 = vpop.permute.xlu1 %1971  ;;  %v6000_v27 = vpop.permute.xlu0 %1765 }
 0x2b8   : > { %7445 = vst [vmem:[#allocation83_spill] sm:$0xff] %v5998_v7  ;;  %7446 = vst [vmem:[#allocation84_spill] sm:$0xff] %v6000_v27  ;;  %v4212_v7 = vld [vmem:[%s7158_s3 + $0x10] ss:$0 sps:$4 sm:$0x33]  }
 0x2b9   : > { %2097 = vrot.lane.b32.xlu0 %v5323_v53, %s4276_s28  ;;  %2099 = vrot.lane.b32.xlu1 %v5316_v35, %s4276_s28  ;;  %v3175_v27 = vsel %vm1276_vm2, %v4212_v7, 0 }
 0x2ba   : > { %4142 = vmatprep.subr.msk.bf16.mxu1 %vm1276_vm2, %v4212_v7  ;;  %v4214_v7 = vld [vmem:[%s7158_s3] sm:$0xff]  }
 0x2bb   : > { %v6006_v4 = vpop.permute.xlu1 %1759  ;;  %v6008_v37 = vpop.permute.xlu0 %1761  ;;  %4104 = vmatpush3.bf16.msra.mxu1 %v3175_v27 }
 0x2bd   : > { %2157 = vrot.lane.b32.xlu0 %v5299_v10, %s4277_s10  ;;  %2159 = vrot.lane.b32.xlu1 %v5308_v29, %s4277_s10 }
 0x2bf   : > { %v6014_v32 = vpop.permute.xlu1 %1913  ;;  %v6016_v38 = vpop.permute.xlu0 %1915 }
 0x2c0   : > { %7447 = vst [vmem:[#allocation85_spill] sm:$0xff] %v6014_v32  ;;  %7448 = vst [vmem:[#allocation86_spill] sm:$0xff] %v6016_v38  ;;  %v4213_v32 = vld [vmem:[%s7158_s3 + $0x8] sm:$0xff]  }
 0x2c1   : > { %2163 = vrot.lane.b32.xlu1 %v5409_v23, %s4277_s10  ;;  %2161 = vrot.lane.b32.xlu0 %v5369_v28, %s4277_s10 }
 0x2c2   : > { %4105 = vmatprep.subr.bf16.mxu1 %v4213_v32 }
 0x2c3   : > { %v6027_v3 = vpop.permute.xlu1 %1771  ;;  %v6029_v39 = vpop.permute.xlu0 %1973  ;;  %4106 = vmatpush3.bf16.msra.mxu1 %v4213_v32 }
 0x2c4   : > { %7449 = vst [vmem:[#allocation87_spill] sm:$0xff] %v6027_v3  ;;  %7450 = vst [vmem:[#allocation88_spill] sm:$0xff] %v6029_v39  ;;  %4107 = vmatprep.subr.bf16.mxu1 %v4214_v7  ;;  %v4166_v39 = vunpack.i.l.bf16 %v5741_v48 }
 0x2c5   : > { %2221 = vrot.lane.b32.xlu1 %v5357_v30, %s4278_s11  ;;  %2219 = vrot.lane.b32.xlu0 %v5348_v5, %s4278_s11 }
 0x2c7   : > { %v6038_v38 = vpop.permute.xlu1 %1909  ;;  %v6040_v40 = vpop.permute.xlu0 %1911  ;;  %4108 = vmatpush3.bf16.msra.mxu1 %v4214_v7 }
 0x2c8   : > { %7451 = vst [vmem:[#allocation89_spill] sm:$0xff] %v6038_v38  ;;  %7452 = vst [vmem:[#allocation90_spill] sm:$0xff] %v6040_v40  ;;  %v7509_v38 = vld [vmem:[#allocation31_spill] sm:$0xff]  ;;  %v4167_v40 = vunpack.i.h.bf16 %v5741_v48 }
 0x2c9   : > { %2225 = vrot.lane.b32.xlu1 %v5455_v54, %s4278_s11  ;;  %2223 = vrot.lane.b32.xlu0 %v5472_v42, %s4278_s11 }
 0x2cb   : > { %v6049_v30 = vpop.permute.xlu1 %1767  ;;  %v6051_v5 = vpop.permute.xlu0 %1773 }
 0x2cc   : > { %7453 = vst [vmem:[#allocation91_spill] sm:$0xff] %v6049_v30  ;;  %7454 = vst [vmem:[#allocation92_spill] sm:$0xff] %v6051_v5 }
 0x2cd   : > { %2285 = vrot.lane.b32.xlu1 %v5316_v35, %s4279_s12  ;;  %2283 = vrot.lane.b32.xlu0 %v5323_v53, %s4279_s12 }
 0x2cf   : > { %v6057_v27 = vpop.permute.xlu1 %1921  ;;  %v6059_v32 = vpop.permute.xlu0 %1769 }
 0x2d0   : > { %7455 = vst [vmem:[#allocation93_spill] sm:$0xff] %v6057_v27  ;;  %7456 = vst [vmem:[#allocation94_spill] sm:$0xff] %v6059_v32  ;;  %v2350_v32 = vsel %vm952_vm3, 0.0|0.0, %v4167_v40 }
 0x2d1   : > { %2289 = vrot.lane.b32.xlu1 %v5421_v36, %s4279_s12  ;;  %2287 = vrot.lane.b32.xlu0 %v5445_v26, %s4279_s12 }
 0x2d3   : > { %v6065_v3 = vpop.permute.xlu1 %1779  ;;  %v6067_v5 = vpop.permute.xlu0 %1923 }
 0x2d4   : > { %7457 = vst [vmem:[#allocation95_spill] sm:$0xff] %v6065_v3  ;;  %7458 = vst [vmem:[#allocation96_spill] sm:$0xff] %v6067_v5 }
 0x2d5   : > { %2036 = vrot.lane.b32.xlu1 %v5455_v54, %s4275_s27  ;;  %2034 = vrot.lane.b32.xlu0 %v5472_v42, %s4275_s27 }
 0x2d7   : > { %v6073_v35 = vpop.permute.xlu1 %1917  ;;  %v6075_v53 = vpop.permute.xlu0 %1919 }
 0x2d8   : > { %7459 = vst [vmem:[#allocation97_spill] sm:$0xff] %v6073_v35  ;;  %7460 = vst [vmem:[#allocation98_spill] sm:$0xff] %v6075_v53 }
 0x2d9   : > { %2040 = vrot.lane.b32.xlu1 %v5439_v21, %s4275_s27  ;;  %2038 = vrot.lane.b32.xlu0 %v5428_v18, %s4275_s27 }
 0x2db   : > { %v6081_v7 = vpop.permute.xlu1 %1775  ;;  %v6083_v27 = vpop.permute.xlu0 %1781 }
 0x2dc   : > { %7461 = vst [vmem:[#allocation99_spill] sm:$0xff] %v6081_v7  ;;  %7462 = vst [vmem:[#allocation100_spill] sm:$0xff] %v6083_v27 }
 0x2dd   : > { %2103 = vrot.lane.b32.xlu1 %v5421_v36, %s4276_s28  ;;  %2101 = vrot.lane.b32.xlu0 %v5445_v26, %s4276_s28 }
 0x2df   : > { %v6089_v54 = vpop.permute.xlu1 %1929  ;;  %v6091_v42 = vpop.permute.xlu0 %1777 }
 0x2e0   : > { %7463 = vst [vmem:[#allocation101_spill] sm:$0xff] %v6089_v54  ;;  %7464 = vst [vmem:[#allocation102_spill] sm:$0xff] %v6091_v42 }
 0x2e1   : > { %2107 = vrot.lane.b32.xlu1 %v5387_v17, %s4276_s28  ;;  %2105 = vrot.lane.b32.xlu0 %v5401_v2, %s4276_s28 }
 0x2e3   : > { %v6097_v5 = vpop.permute.xlu1 %1787  ;;  %v6099_v3 = vpop.permute.xlu0 %1931 }
 0x2e4   : > { %7465 = vst [vmem:[#allocation103_spill] sm:$0xff] %v6097_v5  ;;  %7466 = vst [vmem:[#allocation104_spill] sm:$0xff] %v6099_v3 }
 0x2e5   : > { %2167 = vrot.lane.b32.xlu1 %v5374_v0, %s4277_s10  ;;  %2165 = vrot.lane.b32.xlu0 %v5334_v61, %s4277_s10 }
 0x2e7   : > { %v6105_v36 = vpop.permute.xlu1 %1925  ;;  %v6107_v26 = vpop.permute.xlu0 %1927 }
 0x2e8   : > { %7467 = vst [vmem:[#allocation105_spill] sm:$0xff] %v6105_v36  ;;  %7468 = vst [vmem:[#allocation106_spill] sm:$0xff] %v6107_v26 }
 0x2e9   : > { %2171 = vrot.lane.b32.xlu1 %v5486_v20, %s4277_s10  ;;  %2169 = vrot.lane.b32.xlu0 %v5453_v63, %s4277_s10 }
 0x2eb   : > { %v6113_v54 = vpop.permute.xlu1 %1783  ;;  %v6115_v5 = vpop.permute.xlu0 %1789 }
 0x2ec   : > { %7469 = vst [vmem:[#allocation107_spill] sm:$0xff] %v6113_v54  ;;  %7470 = vst [vmem:[#allocation108_spill] sm:$0xff] %v6115_v5 }
 0x2ed   : > { %2229 = vrot.lane.b32.xlu1 %v5439_v21, %s4278_s11  ;;  %2227 = vrot.lane.b32.xlu0 %v5428_v18, %s4278_s11 }
 0x2ef   : > { %v6121_v3 = vpop.permute.xlu1 %1937  ;;  %v6123_v36 = vpop.permute.xlu0 %1785 }
 0x2f0   : > { %7471 = vst [vmem:[#allocation109_spill] sm:$0xff] %v6121_v3  ;;  %7472 = vst [vmem:[#allocation110_spill] sm:$0xff] %v6123_v36  ;;  %v7496_v36 = vld [vmem:[#allocation38_spill] sm:$0xff] }
 0x2f1   : > { %2233 = vrot.lane.b32.xlu1 %v5554_v46, %s4278_s11  ;;  %2231 = vrot.lane.b32.xlu0 %v5557_v33, %s4278_s11 }
 0x2f3   : > { %v6129_v26 = vpop.permute.xlu1 %1795  ;;  %v6131_v54 = vpop.permute.xlu0 %1939 }
 0x2f4   : > { %7473 = vst [vmem:[#allocation111_spill] sm:$0xff] %v6129_v26  ;;  %7474 = vst [vmem:[#allocation112_spill] sm:$0xff] %v6131_v54  ;;  %v7481_v54 = vld [vmem:[#allocation10_spill] sm:$0xff] }
 0x2f5   : > { %2293 = vrot.lane.b32.xlu1 %v5387_v17, %s4279_s12  ;;  %2291 = vrot.lane.b32.xlu0 %v5401_v2, %s4279_s12 }
 0x2f7   : > { %v6137_v18 = vpop.permute.xlu1 %1933  ;;  %v6139_v21 = vpop.permute.xlu0 %1935 }
 0x2f8   : > { %7475 = vst [vmem:[#allocation113_spill] sm:$0xff] %v6137_v18  ;;  %7476 = vst [vmem:[#allocation114_spill] sm:$0xff] %v6139_v21  ;;  %v7482_v21 = vld [vmem:[#allocation26_spill] sm:$0xff] }
 0x2f9   : > { %2297 = vrot.lane.b32.xlu1 %v5510_v60, %s4279_s12  ;;  %2295 = vrot.lane.b32.xlu0 %v5523_v56, %s4279_s12 }
 0x2fb   : > { %v6145_v3 = vpop.permute.xlu1 %1791  ;;  %v6147_v26 = vpop.permute.xlu0 %1797 }
 0x2fc   : > { %7477 = vst [vmem:[#allocation115_spill] sm:$0xff] %v6145_v3  ;;  %7478 = vst [vmem:[#allocation116_spill] sm:$0xff] %v6147_v26  ;;  %v7488_v26 = vld [vmem:[#allocation20_spill] sm:$0xff] }
 0x2fd   : > { %2044 = vrot.lane.b32.xlu1 %v5554_v46, %s4275_s27  ;;  %2042 = vrot.lane.b32.xlu0 %v5557_v33, %s4275_s27 }
 0x2ff   : > { %v6153_v17 = vpop.permute.xlu1 %1941  ;;  %v6155_v2 = vpop.permute.xlu0 %1793 }
 0x300   : > { %7479 = vst [vmem:[#allocation117_spill] sm:$0xff] %v6153_v17  ;;  %7480 = vst [vmem:[#allocation118_spill] sm:$0xff] %v6155_v2  ;;  %v7487_v17 = vld [vmem:[#allocation11_spill] sm:$0xff] }
 0x301   : > { %2048 = vrot.lane.b32.xlu1 %v7481_v54, %s4275_s27  ;;  %2046 = vrot.lane.b32.xlu0 %v7482_v21, %s4275_s27 }
 0x303   : > { %v6161_v18 = vpop.permute.xlu1 %1799  ;;  %v6163_v3 = vpop.permute.xlu0 %1943 }
 0x304   : > { %7483 = vst [vmem:[#allocation10_spill] sm:$0xff] %v6161_v18  ;;  %7484 = vst [vmem:[#allocation26_spill] sm:$0xff] %v6163_v3  ;;  %v7491_v3 = vld [vmem:[#allocation18_spill] sm:$0xff] }
 0x305   : > { %2111 = vrot.lane.b32.xlu1 %v5510_v60, %s4276_s28  ;;  %2109 = vrot.lane.b32.xlu0 %v5523_v56, %s4276_s28  ;;  %v7492_v60 = vld [vmem:[#allocation8_spill] sm:$0xff] }
 0x307   : > { %v6169_v46 = vpop.permute.xlu1 %1975  ;;  %v6171_v33 = vpop.permute.xlu0 %1801 }
 0x308   : > { %7485 = vst [vmem:[#allocation119_spill] sm:$0xff] %v6169_v46  ;;  %7486 = vst [vmem:[#allocation120_spill] sm:$0xff] %v6171_v33  ;;  %v7495_v33 = vld [vmem:[#allocation25_spill] sm:$0xff] }
 0x309   : > { %2115 = vrot.lane.b32.xlu1 %v7487_v17, %s4276_s28  ;;  %2113 = vrot.lane.b32.xlu0 %v7488_v26, %s4276_s28 }
 0x30b   : > { %v6177_v2 = vpop.permute.xlu1 %1979  ;;  %v6179_v18 = vpop.permute.xlu0 %1977 }
 0x30c   : > { %7489 = vst [vmem:[#allocation11_spill] sm:$0xff] %v6177_v2  ;;  %7490 = vst [vmem:[#allocation20_spill] sm:$0xff] %v6179_v18  ;;  %v7501_v2 = vld [vmem:[#allocation12_spill] sm:$0xff] }
 0x30d   : > { %2175 = vrot.lane.b32.xlu1 %v7491_v3, %s4277_s10  ;;  %2173 = vrot.lane.b32.xlu0 %v7492_v60, %s4277_s10  ;;  %v7511_v3 = vld [vmem:[#allocation16_spill] sm:$0xff] }
 0x30e   : > { %v2352_v48 = vsel %vm952_vm3, %v7511_v3, %v5912_v41  ;;  %v7513_v3 = vld [vmem:[#allocation48_spill] sm:$0xff] }
 0x30f   : > { %v6185_v56 = vpop.permute.xlu1 %1983  ;;  %v6187_v5 = vpop.permute.xlu0 %1981  ;;  %v2416_v41 = vsel %vm985_vm4, %v2352_v48, %v5878_v44 }
 0x310   : > { %7493 = vst [vmem:[#allocation121_spill] sm:$0xff] %v6185_v56  ;;  %7494 = vst [vmem:[#allocation122_spill] sm:$0xff] %v6187_v5 }
 0x311   : > { %2179 = vrot.lane.b32.xlu1 %v7495_v33, %s4277_s10  ;;  %2177 = vrot.lane.b32.xlu0 %v7496_v36, %s4277_s10  ;;  %v2348_v33 = vsel %vm952_vm3, 0.0|0.0, %v4166_v39 }
 0x312   : > { %v2412_v39 = vsel %vm985_vm4, %v2348_v33, %v5757_v9  ;;  %v7515_v33 = vld [vmem:[#allocation45_spill] sm:$0xff] }
 0x313   : > { %v6193_v27 = vpop.permute.xlu1 %1987  ;;  %v6195_v53 = vpop.permute.xlu0 %1985 }
 0x314   : > { %7497 = vst [vmem:[#allocation123_spill] sm:$0xff] %v6193_v27  ;;  %7498 = vst [vmem:[#allocation124_spill] sm:$0xff] %v6195_v53 }
 0x315   : > { %2237 = vrot.lane.b32.xlu1 %v7481_v54, %s4278_s11  ;;  %2235 = vrot.lane.b32.xlu0 %v7482_v21, %s4278_s11 }
 0x317   : > { %v6201_v35 = vpop.permute.xlu1 %1991  ;;  %v6203_v56 = vpop.permute.xlu0 %1989 }
 0x318   : > { %7499 = vst [vmem:[#allocation125_spill] sm:$0xff] %v6201_v35  ;;  %7500 = vst [vmem:[#allocation126_spill] sm:$0xff] %v6203_v56  ;;  %v7504_v35 = vld [vmem:[#allocation13_spill] sm:$0xff]  ;;  %v7505_v56 = vld [vmem:[#allocation22_spill] sm:$0xff] }
 0x319   : > { %2241 = vrot.lane.b32.xlu1 %v5642_v57, %s4278_s11  ;;  %2239 = vrot.lane.b32.xlu0 %v7501_v2, %s4278_s11 }
 0x31b   : > { %v6209_v5 = vpop.permute.xlu1 %1995  ;;  %v6211_v27 = vpop.permute.xlu0 %1993 }
 0x31c   : > { %7502 = vst [vmem:[#allocation12_spill] sm:$0xff] %v6209_v5  ;;  %7503 = vst [vmem:[#allocation127_spill] sm:$0xff] %v6211_v27  ;;  %v7507_v27 = vld [vmem:[#allocation37_spill] sm:$0xff] }
 0x31d   : > { %2301 = vrot.lane.b32.xlu1 %v7487_v17, %s4279_s12  ;;  %2299 = vrot.lane.b32.xlu0 %v7488_v26, %s4279_s12  ;;  %v7506_v26 = vld [vmem:[#allocation28_spill] sm:$0xff] }
 0x31f   : > { %v2029_v54 = vpop.permute.xlu1 %2028  ;;  %v2027_v21 = vpop.permute.xlu0 %2026 }
 0x321   : > { %2305 = vrot.lane.b32.xlu1 %v7504_v35, %s4279_s12  ;;  %2303 = vrot.lane.b32.xlu0 %v7505_v56, %s4279_s12 }
 0x323   : > { %v2033_v53 = vpop.permute.xlu1 %2032  ;;  %v2031_v42 = vpop.permute.xlu0 %2030 }
 0x325   : > { %2052 = vrot.lane.b32.xlu1 %v5642_v57, %s4275_s27  ;;  %2050 = vrot.lane.b32.xlu0 %v7501_v2, %s4275_s27  ;;  %v7508_v2 = vld [vmem:[#allocation19_spill] sm:$0xff] }
 0x327   : > { %v2096_v17 = vpop.permute.xlu1 %2095  ;;  %v2094_v5 = vpop.permute.xlu0 %2093 }
 0x329   : > { %2056 = vrot.lane.b32.xlu1 %v7506_v26, %s4275_s27  ;;  %2054 = vrot.lane.b32.xlu0 %v7507_v27, %s4275_s27 }
 0x32b   : > { %v2100_v7 = vpop.permute.xlu1 %2099  ;;  %v2098_v46 = vpop.permute.xlu0 %2097 }
 0x32d   : > { %2119 = vrot.lane.b32.xlu1 %v7504_v35, %s4276_s28  ;;  %2117 = vrot.lane.b32.xlu0 %v7505_v56, %s4276_s28  ;;  %v7510_v35 = vld [vmem:[#allocation9_spill] sm:$0xff] }
 0x32e   : > { %v2354_v56 = vsel %vm952_vm3, %v7510_v35, %v5899_v25  ;;  %v7512_v25 = vld [vmem:[#allocation43_spill] sm:$0xff]  ;;  %v2476_v35 = vsel %vm1018_vm5, %v2412_v39, %v7513_v3 }
 0x32f   : > { %v2160_v57 = vpop.permute.xlu1 %2159  ;;  %v2158_v18 = vpop.permute.xlu0 %2157  ;;  %v2414_v40 = vsel %vm985_vm4, %v2350_v32, %v7512_v25  ;;  %v2480_v32 = vsel %vm1018_vm5, %v2416_v41, %v7515_v33 }
 0x331   : > { %2123 = vrot.lane.b32.xlu1 %v7508_v2, %s4276_s28  ;;  %2121 = vrot.lane.b32.xlu0 %v7509_v38, %s4276_s28 }
 0x333   : > { %v2164_v36 = vpop.permute.xlu1 %2163  ;;  %v2162_v30 = vpop.permute.xlu0 %2161 }
 0x335   : > { %2183 = vrot.lane.b32.xlu1 %v5541_v45, %s4277_s10  ;;  %2181 = vrot.lane.b32.xlu0 %v5531_v11, %s4277_s10  ;;  %v2418_v45 = vsel %vm985_vm4, %v2354_v56, %v5862_v6  ;;  %v2478_v6 = vsel %vm1018_vm5, %v2414_v40, %v5843_v14 }
 0x336   : > { %v2542_v11 = vsel %vm1051_vm6, %v2478_v6, %v2029_v54  ;;  %v2482_v9 = vsel %vm1018_vm5, %v2418_v45, %v7514_v52  ;;  %v2544_v54 = vsel %vm1051_vm6, %v2480_v32, %v2031_v42 }
 0x337   : > { %v2222_v60 = vpop.permute.xlu1 %2221  ;;  %v2220_v49 = vpop.permute.xlu0 %2219  ;;  %v2606_v44 = vsel %vm1084_vm7, %v2542_v11, %v2096_v17  ;;  %v2546_v14 = vsel %vm1051_vm6, %v2482_v9, %v2033_v53  ;;  %v2608_v11 = vsel %vm1084_vm7, %v2544_v54, %v2098_v46  ;;  %v7516_v46 = vld [vmem:[#allocation35_spill] sm:$0xff] }
 0x338   : > { %v2610_v52 = vsel %vm1084_vm7, %v2546_v14, %v2100_v7  ;;  %v2672_v53 = vsel %vm1117_vm8, %v2608_v11, %v2162_v30 }
 0x339   : > { %2187 = vrot.lane.b32.xlu1 %v5661_v24, %s4277_s10  ;;  %2185 = vrot.lane.b32.xlu0 %v5646_v8, %s4277_s10  ;;  %v2540_v8 = vsel %vm1051_vm6, %v2476_v35, %v2027_v21  ;;  %v2670_v21 = vsel %vm1117_vm8, %v2606_v44, %v2160_v57 }
 0x33a   : > { %v2604_v48 = vsel %vm1084_vm7, %v2540_v8, %v2094_v5  ;;  %v2733_v8 = vsel %vm1150_vm9, %v2670_v21, %v2222_v60  ;;  %v7517_v60 = vld [vmem:[#allocation29_spill] sm:$0xff] }
 0x33b   : > { %v2226_v56 = vpop.permute.xlu1 %2225  ;;  %v2224_v24 = vpop.permute.xlu0 %2223  ;;  %v2668_v45 = vsel %vm1117_vm8, %v2604_v48, %v2158_v18 }
 0x33c   : > { %v2731_v5 = vsel %vm1150_vm9, %v2668_v45, %v2220_v49 }
 0x33d   : > { %2245 = vrot.lane.b32.xlu1 %v7506_v26, %s4278_s11  ;;  %2243 = vrot.lane.b32.xlu0 %v7507_v27, %s4278_s11  ;;  %v2674_v27 = vsel %vm1117_vm8, %v2610_v52, %v2164_v36  ;;  %v2735_v36 = vsel %vm1150_vm9, %v2672_v53, %v2224_v24 }
 0x33e   : > { %v2737_v49 = vsel %vm1150_vm9, %v2674_v27, %v2226_v56  ;;  %v7518_v27 = vld [vmem:[#allocation6_spill] sm:$0xff] }
 0x33f   : > { %v2286_v17 = vpop.permute.xlu1 %2285  ;;  %v2284_v26 = vpop.permute.xlu0 %2283 }
 0x340   : > { %v2797_v42 = vsel %vm1183_vm10, %v2733_v8, %v2286_v17  ;;  %v2795_v57 = vsel %vm1183_vm10, %v2731_v5, %v2284_v26 }
 0x341   : > { %v2866_v39 = vshrl.u32 %v2797_v42, 16  ;;  %v2869_v18 = vshll.u32 %v2797_v42, 16  ;;  %v2859_v25 = vshrl.u32 %v2795_v57, 16  ;;  %v2862_v7 = vshll.u32 %v2795_v57, 16  ;;  %2249 = vrot.lane.b32.xlu1 %v7516_v46, %s4278_s11  ;;  %2247 = vrot.lane.b32.xlu0 %v7517_v60, %s4278_s11 }
 0x343   : > { %v2868_v40 = vrot.slane %v2866_v39, 3  ;;  %v2871_v30 = vrot.slane %v2869_v18, 4  ;;  %v2861_v41 = vrot.slane %v2859_v25, 3  ;;  %v2864_v3 = vrot.slane %v2862_v7, 4  ;;  %v2290_v35 = vpop.permute.xlu1 %2289  ;;  %v2288_v6 = vpop.permute.xlu0 %2287  ;;  %v7520_v18 = vld [vmem:[#allocation24_spill] sm:$0xff]  ;;  %v7521_v25 = vld [vmem:[#allocation15_spill] sm:$0xff] }
 0x344   : > { %v2801_v9 = vsel %vm1183_vm10, %v2737_v49, %v2290_v35  ;;  %v2799_v33 = vsel %vm1183_vm10, %v2735_v36, %v2288_v6  ;;  %v2358_v35 = vsel %vm952_vm3, %v5308_v29, %v5880_v12  ;;  %v2362_v6 = vsel %vm952_vm3, %v5409_v23, %v5960_v13 }
 0x345   : > { %v2881_v32 = vshrl.u32 %v2801_v9, 16  ;;  %v2884_v44 = vshll.u32 %v2801_v9, 16  ;;  %v2874_v48 = vshrl.u32 %v2799_v33, 16  ;;  %v2877_v14 = vshll.u32 %v2799_v33, 16  ;;  %2309 = vrot.lane.b32.xlu1 %v7508_v2, %s4279_s12  ;;  %2307 = vrot.lane.b32.xlu0 %v7509_v38, %s4279_s12  ;;  %v7519_v2 = vld [vmem:[#allocation23_spill] sm:$0xff] }
 0x346   : > { %v2865_v24 = vor.u32 %v2864_v3, %v2861_v41  ;;  %v2872_v56 = vor.u32 %v2871_v30, %v2868_v40  ;;  %v7523_v40 = vld [vmem:[#allocation33_spill] sm:$0xff]  ;;  %v2356_v3 = vsel %vm952_vm3, %v5299_v10, %v5860_v16  ;;  %v2360_v9 = vsel %vm952_vm3, %v5369_v28, %v5966_v1  ;;  %v7525_v16 = vld [vmem:[#allocation55_spill] sm:$0xff] }
 0x347   : > { %v2883_v54 = vrot.slane %v2881_v32, 3  ;;  %v2886_v21 = vrot.slane %v2884_v44, 4  ;;  %v2876_v45 = vrot.slane %v2874_v48, 3  ;;  %v2879_v52 = vrot.slane %v2877_v14, 4  ;;  %v2037_v11 = vpop.permute.xlu1 %2036  ;;  %v2035_v8 = vpop.permute.xlu0 %2034  ;;  %v7524_v44 = vld [vmem:[#allocation54_spill] sm:$0xff] }
 0x348   : > { %v2873_v5 = vsel %vm2858_vm12, %v2865_v24, %v2872_v56  ;;  %v2420_v10 = vsel %vm985_vm4, %v2356_v3, %v7524_v44  ;;  %v2422_v48 = vsel %vm985_vm4, %v2358_v35, %v7525_v16  ;;  %v2426_v29 = vsel %vm985_vm4, %v2362_v6, %v5944_v55  ;;  %v7526_v56 = vld [vmem:[#allocation59_spill] sm:$0xff] }
 0x349   : > { %v2887_v17 = vor.u32 %v2886_v21, %v2883_v54  ;;  %v2880_v26 = vor.u32 %v2879_v52, %v2876_v45  ;;  %4109 = vmatprep.mubr.msk.bf16.mxu1 %vm1243_vm11, %v2873_v5  ;;  %2313 = vrot.lane.b32.xlu1 %v7518_v27, %s4279_s12  ;;  %v2424_v23 = vsel %vm985_vm4, %v2360_v9, %v5950_v47 }
 0x34a   : > { %2311 = vrot.lane.b32.xlu0 %v7519_v2, %s4279_s12  ;;  %v2484_v28 = vsel %vm1018_vm5, %v2420_v10, %v5897_v15  ;;  %v2486_v1 = vsel %vm1018_vm5, %v2422_v48, %v5936_v62  ;;  %v2490_v55 = vsel %vm1018_vm5, %v2426_v29, %v5914_v51  ;;  %v2488_v47 = vsel %vm1018_vm5, %v2424_v23, %v7526_v56  ;;  %v7529_v56 = vld [vmem:[#allocation42_spill] sm:$0xff] }
 0x34b   : > { %v2041_v38 = vpop.permute.xlu1 %2040  ;;  %v2039_v53 = vpop.permute.xlu0 %2038  ;;  %v2888_v42 = vsel %vm2858_vm12, %v2880_v26, %v2887_v17  ;;  %v2550_v14 = vsel %vm1051_vm6, %v2486_v1, %v2037_v11  ;;  %v2548_v24 = vsel %vm1051_vm6, %v2484_v28, %v2035_v8 }
 0x34c   : > { %4110 = vmatmul.mubr.msk.bf16.vlgmr.msra.gmra.mxu1 %vm1243_vm11, %v2888_v42  ;;  %v2554_v15 = vsel %vm1051_vm6, %v2490_v55, %v2041_v38  ;;  %v2552_v62 = vsel %vm1051_vm6, %v2488_v47, %v2039_v53  ;;  %v7530_v47 = vld [vmem:[#allocation47_spill] sm:$0xff] }
 0x34d   : > { %2060 = vrot.lane.b32.xlu1 %v7516_v46, %s4275_s27 }
 0x34e   : > { %2058 = vrot.lane.b32.xlu0 %v7517_v60, %s4275_s27  ;;  %v7522_v60 = vld [vmem:[#allocation34_spill] sm:$0xff] }
 0x34f   : > { %v2104_v57 = vpop.permute.xlu1 %2103  ;;  %v2102_v39 = vpop.permute.xlu0 %2101 }
 0x350   : > { %v2614_v54 = vsel %vm1084_vm7, %v2550_v14, %v2104_v57  ;;  %v2612_v21 = vsel %vm1084_vm7, %v2548_v24, %v2102_v39 }
 0x351   : > { %2064 = vrot.lane.b32.xlu1 %v7520_v18, %s4275_s27 }
 0x352   : > { %2062 = vrot.lane.b32.xlu0 %v7521_v25, %s4275_s27 }
 0x353   : > { %v2108_v7 = vpop.permute.xlu1 %2107  ;;  %v2106_v49 = vpop.permute.xlu0 %2105 }
 0x354   : > { %v2618_v51 = vsel %vm1084_vm7, %v2554_v15, %v2108_v7  ;;  %v2616_v11 = vsel %vm1084_vm7, %v2552_v62, %v2106_v49 }
 0x355   : > { %2127 = vrot.lane.b32.xlu1 %v7518_v27, %s4276_s28 }
 0x356   : > { %2125 = vrot.lane.b32.xlu0 %v7519_v2, %s4276_s28 }
 0x357   : > { %v2168_v46 = vpop.permute.xlu1 %2167  ;;  %v2166_v36 = vpop.permute.xlu0 %2165 }
 0x358   : > { %v2678_v45 = vsel %vm1117_vm8, %v2614_v54, %v2168_v46  ;;  %v2676_v52 = vsel %vm1117_vm8, %v2612_v21, %v2166_v36  ;;  %v7528_v46 = vld [vmem:[#allocation51_spill] sm:$0xff] }
 0x359   : > { %2131 = vrot.lane.b32.xlu1 %v7522_v60, %s4276_s28 }
 0x35a   : > { %2129 = vrot.lane.b32.xlu0 %v7523_v40, %s4276_s28 }
 0x35b   : > { %v2172_v30 = vpop.permute.xlu1 %2171  ;;  %v2170_v41 = vpop.permute.xlu0 %2169 }
 0x35c   : > { %v2682_v27 = vsel %vm1117_vm8, %v2618_v51, %v2172_v30  ;;  %v2680_v2 = vsel %vm1117_vm8, %v2616_v11, %v2170_v41 }
 0x35d   : > { %2191 = vrot.lane.b32.xlu1 %v5610_v31, %s4277_s10 }
 0x35e   : > { %2189 = vrot.lane.b32.xlu0 %v5598_v59, %s4277_s10 }
 0x35f   : > { %v2230_v33 = vpop.permute.xlu1 %2229  ;;  %v2228_v32 = vpop.permute.xlu0 %2227 }
 0x360   : > { %v2741_v8 = vsel %vm1150_vm9, %v2678_v45, %v2230_v33  ;;  %v2739_v5 = vsel %vm1150_vm9, %v2676_v52, %v2228_v32  ;;  %v7531_v45 = vld [vmem:[#allocation50_spill] sm:$0xff]  ;;  %v7532_v52 = vld [vmem:[#allocation41_spill] sm:$0xff] }
 0x361   : > { %2195 = vrot.lane.b32.xlu1 %v5745_v58, %s4277_s10 }
 0x362   : > { %2193 = vrot.lane.b32.xlu0 %v5734_v19, %s4277_s10 }
 0x363   : > { %v2234_v12 = vpop.permute.xlu1 %2233  ;;  %v2232_v13 = vpop.permute.xlu0 %2231 }
 0x364   : > { %v2745_v7 = vsel %vm1150_vm9, %v2682_v27, %v2234_v12  ;;  %v2743_v49 = vsel %vm1150_vm9, %v2680_v2, %v2232_v13 }
 0x365   : > { %2253 = vrot.lane.b32.xlu1 %v7520_v18, %s4278_s11 }
 0x366   : > { %2251 = vrot.lane.b32.xlu0 %v7521_v25, %s4278_s11  ;;  %v7527_v25 = vld [vmem:[#allocation56_spill] sm:$0xff] }
 0x367   : > { %v2294_v17 = vpop.permute.xlu1 %2293  ;;  %v2292_v26 = vpop.permute.xlu0 %2291 }
 0x368   : > { %v2805_v38 = vsel %vm1183_vm10, %v2741_v8, %v2294_v17  ;;  %v2803_v53 = vsel %vm1183_vm10, %v2739_v5, %v2292_v26  ;;  %v7533_v17 = vld [vmem:[#allocation30_spill] sm:$0xff]  ;;  %v7534_v26 = vld [vmem:[#allocation36_spill] sm:$0xff] }
 0x369   : > { %v2896_v42 = vshrl.u32 %v2805_v38, 16  ;;  %v2899_v57 = vshll.u32 %v2805_v38, 16  ;;  %v2889_v39 = vshrl.u32 %v2803_v53, 16  ;;  %v2892_v18 = vshll.u32 %v2803_v53, 16  ;;  %2257 = vrot.lane.b32.xlu1 %v7527_v25, %s4278_s11 }
 0x36a   : > { %2255 = vrot.lane.b32.xlu0 %v7528_v46, %s4278_s11  ;;  %v2364_v38 = vsel %vm952_vm3, %v5334_v61, %v5942_v43  ;;  %v2366_v53 = vsel %vm952_vm3, %v5374_v0, %v5952_v50  ;;  %v7537_v43 = vld [vmem:[#allocation72_spill] sm:$0xff]  ;;  %v7538_v0 = vld [vmem:[#allocation81_spill] sm:$0xff] }
 0x36b   : > { %v2898_v36 = vrot.slane %v2896_v42, 3  ;;  %v2901_v30 = vrot.slane %v2899_v57, 4  ;;  %v2891_v41 = vrot.slane %v2889_v39, 3  ;;  %v2894_v3 = vrot.slane %v2892_v18, 4  ;;  %v2298_v35 = vpop.permute.xlu1 %2297  ;;  %v2296_v6 = vpop.permute.xlu0 %2295 }
 0x36c   : > { %v2809_v9 = vsel %vm1183_vm10, %v2745_v7, %v2298_v35  ;;  %v2807_v33 = vsel %vm1183_vm10, %v2743_v49, %v2296_v6  ;;  %v2368_v42 = vsel %vm952_vm3, %v5453_v63, %v6006_v4  ;;  %v2370_v57 = vsel %vm952_vm3, %v5486_v20, %v6008_v37  ;;  %v7536_v7 = vld [vmem:[#allocation71_spill] sm:$0xff]  ;;  %v7540_v4 = vld [vmem:[#allocation53_spill] sm:$0xff] }
 0x36d   : > { %v2902_v32 = vor.u32 %v2901_v30, %v2898_v36  ;;  %v2895_v44 = vor.u32 %v2894_v3, %v2891_v41  ;;  %v2911_v10 = vshrl.u32 %v2809_v9, 16  ;;  %v2914_v16 = vshll.u32 %v2809_v9, 16  ;;  %2317 = vrot.lane.b32.xlu1 %v7522_v60, %s4279_s12  ;;  %v7541_v20 = vld [vmem:[#allocation75_spill] sm:$0xff]  ;;  %v7542_v36 = vld [vmem:[#allocation80_spill] sm:$0xff] }
 0x36e   : > { %v2904_v48 = vshrl.u32 %v2807_v33, 16  ;;  %v2907_v29 = vshll.u32 %v2807_v33, 16  ;;  %2315 = vrot.lane.b32.xlu0 %v7523_v40, %s4279_s12  ;;  %v2428_v61 = vsel %vm985_vm4, %v2364_v38, %v7536_v7  ;;  %v2430_v49 = vsel %vm985_vm4, %v2366_v53, %v7537_v43  ;;  %v7543_v9 = vld [vmem:[#allocation76_spill] sm:$0xff] }
 0x36f   : > { %v2913_v23 = vrot.slane %v2911_v10, 3  ;;  %v2916_v28 = vrot.slane %v2914_v16, 4  ;;  %v2045_v1 = vpop.permute.xlu1 %2044  ;;  %v2043_v12 = vpop.permute.xlu0 %2042  ;;  %v2903_v13 = vsel %vm2858_vm12, %v2895_v44, %v2902_v32  ;;  %v2432_v50 = vsel %vm985_vm4, %v2368_v42, %v7538_v0  ;;  %v7544_v32 = vld [vmem:[#allocation74_spill] sm:$0xff] }
 0x370   : > { %v2906_v14 = vrot.slane %v2904_v48, 3  ;;  %v2909_v24 = vrot.slane %v2907_v29, 4  ;;  %4113 = vmatprep.mubr.msk.bf16.mxu1 %vm1243_vm11, %v2903_v13  ;;  %v2492_v37 = vsel %vm1018_vm5, %v2428_v61, %v7541_v20  ;;  %v2494_v30 = vsel %vm1018_vm5, %v2430_v49, %v7542_v36 }
 0x371   : > { %v2917_v55 = vor.u32 %v2916_v28, %v2913_v23  ;;  %2321 = vrot.lane.b32.xlu1 %v7529_v56, %s4279_s12  ;;  %v2558_v35 = vsel %vm1051_vm6, %v2494_v30, %v2045_v1  ;;  %v2556_v6 = vsel %vm1051_vm6, %v2492_v37, %v2043_v12  ;;  %v2496_v44 = vsel %vm1018_vm5, %v2432_v50, %v7544_v32 }
 0x372   : > { %v2910_v60 = vor.u32 %v2909_v24, %v2906_v14  ;;  %2319 = vrot.lane.b32.xlu0 %v7530_v47, %s4279_s12 }
 0x373   : > { %v2049_v54 = vpop.permute.xlu1 %2048  ;;  %v2047_v40 = vpop.permute.xlu0 %2046 }
 0x374   : > { %v2918_v21 = vsel %vm2858_vm12, %v2910_v60, %v2917_v55  ;;  %v2560_v29 = vsel %vm1051_vm6, %v2496_v44, %v2047_v40  ;;  %v7550_v44 = vld [vmem:[#allocation46_spill] sm:$0xff] }
 0x375   : > { %4114 = vmatmul.mubr.msk.bf16.gmra.mxu1 %vm1243_vm11, %v2918_v21  ;;  %2068 = vrot.lane.b32.xlu1 %v7527_v25, %s4275_s27  ;;  %v7535_v25 = vld [vmem:[#allocation57_spill] sm:$0xff] }
 0x376   : > { %2066 = vrot.lane.b32.xlu0 %v7528_v46, %s4275_s27  ;;  %v7539_v46 = vld [vmem:[#allocation82_spill] sm:$0xff] }
 0x377   : > { %v2112_v15 = vpop.permute.xlu1 %2111  ;;  %v2110_v62 = vpop.permute.xlu0 %2109  ;;  %v2434_v63 = vsel %vm985_vm4, %v2370_v57, %v7539_v46 }
 0x378   : > { %v2498_v33 = vsel %vm1018_vm5, %v2434_v63, %v7543_v9  ;;  %v2622_v10 = vsel %vm1084_vm7, %v2558_v35, %v2112_v15  ;;  %v2620_v16 = vsel %vm1084_vm7, %v2556_v6, %v2110_v62  ;;  %v7549_v9 = vld [vmem:[#allocation44_spill] sm:$0xff] }
 0x379   : > { %2072 = vrot.lane.b32.xlu1 %v7531_v45, %s4275_s27  ;;  %v2562_v48 = vsel %vm1051_vm6, %v2498_v33, %v2049_v54 }
 0x37a   : > { %2070 = vrot.lane.b32.xlu0 %v7532_v52, %s4275_s27 }
 0x37b   : > { %v2116_v51 = vpop.permute.xlu1 %2115  ;;  %v2114_v11 = vpop.permute.xlu0 %2113 }
 0x37c   : > { %v2626_v1 = vsel %vm1084_vm7, %v2562_v48, %v2116_v51  ;;  %v2624_v12 = vsel %vm1084_vm7, %v2560_v29, %v2114_v11  ;;  %v7546_v11 = vld [vmem:[#allocation66_spill] sm:$0xff]  ;;  %v7551_v48 = vld [vmem:[#allocation60_spill] sm:$0xff] }
 0x37d   : > { %2135 = vrot.lane.b32.xlu1 %v7529_v56, %s4276_s28 }
 0x37e   : > { %2133 = vrot.lane.b32.xlu0 %v7530_v47, %s4276_s28 }
 0x37f   : > { %v2176_v8 = vpop.permute.xlu1 %2175  ;;  %v2174_v5 = vpop.permute.xlu0 %2173 }
 0x380   : > { %v2686_v23 = vsel %vm1117_vm8, %v2622_v10, %v2176_v8  ;;  %v2684_v28 = vsel %vm1117_vm8, %v2620_v16, %v2174_v5 }
 0x381   : > { %2139 = vrot.lane.b32.xlu1 %v7533_v17, %s4276_s28 }
 0x382   : > { %2137 = vrot.lane.b32.xlu0 %v7534_v26, %s4276_s28 }
 0x383   : > { %v2180_v27 = vpop.permute.xlu1 %2179  ;;  %v2178_v2 = vpop.permute.xlu0 %2177 }
 0x384   : > { %v2690_v56 = vsel %vm1117_vm8, %v2626_v1, %v2180_v27  ;;  %v2688_v60 = vsel %vm1117_vm8, %v2624_v12, %v2178_v2 }
 0x385   : > { %2199 = vrot.lane.b32.xlu1 %v5705_v34, %s4277_s10 }
 0x386   : > { %2197 = vrot.lane.b32.xlu0 %v5698_v22, %s4277_s10 }
 0x387   : > { %v2238_v39 = vpop.permute.xlu1 %2237  ;;  %v2236_v18 = vpop.permute.xlu0 %2235 }
 0x388   : > { %v2749_v13 = vsel %vm1150_vm9, %v2686_v23, %v2238_v39  ;;  %v2747_v14 = vsel %vm1150_vm9, %v2684_v28, %v2236_v18  ;;  %v7552_v28 = vld [vmem:[#allocation65_spill] sm:$0xff] }
 0x389   : > { %2203 = vrot.lane.b32.xlu1 %v7535_v25, %s4277_s10 }
 0x38a   : > { %2201 = vrot.lane.b32.xlu0 %v7540_v4, %s4277_s10 }
 0x38b   : > { %v2242_v41 = vpop.permute.xlu1 %2241  ;;  %v2240_v3 = vpop.permute.xlu0 %2239 }
 0x38c   : > { %v2751_v51 = vsel %vm1150_vm9, %v2688_v60, %v2240_v3  ;;  %v7548_v3 = vld [vmem:[#allocation64_spill] sm:$0xff]  ;;  %v7557_v60 = vld [vmem:[#allocation18_spill] sm:$0xff] }
 0x38d   : > { %2261 = vrot.lane.b32.xlu1 %v7531_v45, %s4278_s11  ;;  %v7545_v45 = vld [vmem:[#allocation68_spill] sm:$0xff] }
 0x38e   : > { %2259 = vrot.lane.b32.xlu0 %v7532_v52, %s4278_s11  ;;  %v2753_v52 = vsel %vm1150_vm9, %v2690_v56, %v2242_v41  ;;  %v7547_v41 = vld [vmem:[#allocation61_spill] sm:$0xff]  ;;  %v7556_v56 = vld [vmem:[#allocation84_spill] sm:$0xff] }
 0x38f   : > { %v2302_v24 = vpop.permute.xlu1 %2301  ;;  %v2300_v55 = vpop.permute.xlu0 %2299 }
 0x390   : > { %v2813_v47 = vsel %vm1183_vm10, %v2749_v13, %v2302_v24  ;;  %v2811_v54 = vsel %vm1183_vm10, %v2747_v14, %v2300_v55  ;;  %v7553_v13 = vld [vmem:[#allocation58_spill] sm:$0xff]  ;;  %v7554_v14 = vld [vmem:[#allocation79_spill] sm:$0xff]  ;;  %v7555_v24 = vld [vmem:[#allocation8_spill] sm:$0xff] }
 0x391   : > { %v2926_v40 = vshrl.u32 %v2813_v47, 16  ;;  %v2929_v21 = vshll.u32 %v2813_v47, 16  ;;  %v2919_v15 = vshrl.u32 %v2811_v54, 16  ;;  %v2922_v62 = vshll.u32 %v2811_v54, 16  ;;  %2265 = vrot.lane.b32.xlu1 %v7545_v45, %s4278_s11 }
 0x392   : > { %2263 = vrot.lane.b32.xlu0 %v7546_v11, %s4278_s11  ;;  %v2372_v55 = vsel %vm952_vm3, %v7555_v24, %v7554_v14  ;;  %v2374_v47 = vsel %vm952_vm3, %v7557_v60, %v7556_v56 }
 0x393   : > { %v2928_v8 = vrot.slane %v2926_v40, 3  ;;  %v2931_v5 = vrot.slane %v2929_v21, 4  ;;  %v2921_v27 = vrot.slane %v2919_v15, 3  ;;  %v2924_v2 = vrot.slane %v2922_v62, 4  ;;  %v2306_v38 = vpop.permute.xlu1 %2305  ;;  %v2304_v53 = vpop.permute.xlu0 %2303  ;;  %v7558_v21 = vld [vmem:[#allocation94_spill] sm:$0xff]  ;;  %v7559_v15 = vld [vmem:[#allocation25_spill] sm:$0xff] }
 0x394   : > { %v2817_v42 = vsel %vm1183_vm10, %v2753_v52, %v2306_v38  ;;  %v2815_v57 = vsel %vm1183_vm10, %v2751_v51, %v2304_v53  ;;  %v2378_v62 = vsel %vm952_vm3, %v7559_v15, %v7558_v21  ;;  %v7561_v51 = vld [vmem:[#allocation78_spill] sm:$0xff]  ;;  %v7565_v38 = vld [vmem:[#allocation83_spill] sm:$0xff] }
 0x395   : > { %v2932_v39 = vor.u32 %v2931_v5, %v2928_v8  ;;  %v2925_v18 = vor.u32 %v2924_v2, %v2921_v27  ;;  %v2941_v7 = vshrl.u32 %v2817_v42, 16  ;;  %v2944_v61 = vshll.u32 %v2817_v42, 16  ;;  %2325 = vrot.lane.b32.xlu1 %v7533_v17, %s4279_s12  ;;  %v7562_v8 = vld [vmem:[#allocation91_spill] sm:$0xff]  ;;  %v7563_v5 = vld [vmem:[#allocation38_spill] sm:$0xff]  ;;  %v7564_v2 = vld [vmem:[#allocation52_spill] sm:$0xff] }
 0x396   : > { %v2934_v43 = vshrl.u32 %v2815_v57, 16  ;;  %v2937_v49 = vshll.u32 %v2815_v57, 16  ;;  %2323 = vrot.lane.b32.xlu0 %v7534_v26, %s4279_s12  ;;  %v2376_v27 = vsel %vm952_vm3, %v7563_v5, %v7562_v8  ;;  %v7566_v42 = vld [vmem:[#allocation88_spill] sm:$0xff] }
 0x397   : > { %v2943_v0 = vrot.slane %v2941_v7, 3  ;;  %v2946_v50 = vrot.slane %v2944_v61, 4  ;;  %v2053_v46 = vpop.permute.xlu1 %2052  ;;  %v2051_v63 = vpop.permute.xlu0 %2050  ;;  %v2933_v20 = vsel %vm2858_vm12, %v2925_v18, %v2932_v39  ;;  %v7567_v7 = vld [vmem:[#allocation90_spill] sm:$0xff] }
 0x398   : > { %v2936_v37 = vrot.slane %v2934_v43, 3  ;;  %v2939_v36 = vrot.slane %v2937_v49, 4  ;;  %4117 = vmatprep.mubr.msk.bf16.mxu1 %vm1243_vm11, %v2933_v20  ;;  %v2442_v61 = vsel %vm985_vm4, %v2378_v62, %v7567_v7  ;;  %v7569_v20 = vld [vmem:[#allocation20_spill] sm:$0xff] }
 0x399   : > { %v2947_v30 = vor.u32 %v2946_v50, %v2943_v0  ;;  %2329 = vrot.lane.b32.xlu1 %v7547_v41, %s4279_s12  ;;  %v7568_v0 = vld [vmem:[#allocation89_spill] sm:$0xff] }
 0x39a   : > { %v2940_v17 = vor.u32 %v2939_v36, %v2936_v37  ;;  %2327 = vrot.lane.b32.xlu0 %v7548_v3, %s4279_s12  ;;  %v2440_v50 = vsel %vm985_vm4, %v2376_v27, %v7568_v0  ;;  %v2506_v37 = vsel %vm1018_vm5, %v2442_v61, %v7569_v20  ;;  %v7574_v20 = vld [vmem:[#allocation73_spill] sm:$0xff] }
 0x39b   : > { %v2057_v35 = vpop.permute.xlu1 %2056  ;;  %v2055_v26 = vpop.permute.xlu0 %2054 }
 0x39c   : > { %v2948_v6 = vsel %vm2858_vm12, %v2940_v17, %v2947_v30  ;;  %v7571_v17 = vld [vmem:[#allocation119_spill] sm:$0xff] }
 0x39d   : > { %4118 = vmatmul.mubr.msk.bf16.gmra.mxu1 %vm1243_vm11, %v2948_v6  ;;  %1999 = vrot.lane.b32.xlu1 %v7549_v9, %s4274_s26 }
 0x39e   : > { %1997 = vrot.lane.b32.xlu0 %v7535_v25, %s4274_s26 }
 0x39f   : > { %v2120_v33 = vpop.permute.xlu1 %2119  ;;  %v2118_v32 = vpop.permute.xlu0 %2117 }
 0x3a1   : > { %2074 = vrot.lane.b32.xlu1 %v7546_v11, %s4275_s27  ;;  %v2438_v11 = vsel %vm985_vm4, %v2374_v47, %v7561_v51 }
 0x3a2   : > { %2001 = vrot.lane.b32.xlu0 %v7550_v44, %s4274_s26  ;;  %v2502_v57 = vsel %vm1018_vm5, %v2438_v11, %v7566_v42 }
 0x3a3   : > { %v2124_v10 = vpop.permute.xlu1 %2123  ;;  %v2122_v16 = vpop.permute.xlu0 %2121  ;;  %v2566_v43 = vsel %vm1051_vm6, %v2502_v57, %v2053_v46  ;;  %v2570_v46 = vsel %vm1051_vm6, %v2506_v37, %v2057_v35 }
 0x3a4   : > { %v2630_v36 = vsel %vm1084_vm7, %v2566_v43, %v2120_v33  ;;  %v2634_v33 = vsel %vm1084_vm7, %v2570_v46, %v2124_v10 }
 0x3a5   : > { %2078 = vrot.lane.b32.xlu1 %v7551_v48, %s4275_s27 }
 0x3a6   : > { %2076 = vrot.lane.b32.xlu0 %v7545_v45, %s4275_s27  ;;  %v7560_v45 = vld [vmem:[#allocation77_spill] sm:$0xff] }
 0x3a7   : > { %v2184_v29 = vpop.permute.xlu1 %2183  ;;  %v2182_v23 = vpop.permute.xlu0 %2181  ;;  %v2436_v52 = vsel %vm985_vm4, %v2372_v55, %v7560_v45 }
 0x3a8   : > { %v2500_v53 = vsel %vm1018_vm5, %v2436_v52, %v7565_v38 }
 0x3a9   : > { %2141 = vrot.lane.b32.xlu1 %v7548_v3, %s4276_s28  ;;  %v2564_v49 = vsel %vm1051_vm6, %v2500_v53, %v2051_v63  ;;  %v2504_v3 = vsel %vm1018_vm5, %v2440_v50, %v7571_v17  ;;  %v2694_v63 = vsel %vm1117_vm8, %v2630_v36, %v2184_v29  ;;  %v7575_v17 = vld [vmem:[#allocation69_spill] sm:$0xff] }
 0x3aa   : > { %2080 = vrot.lane.b32.xlu0 %v7552_v28, %s4275_s27  ;;  %v2628_v30 = vsel %vm1084_vm7, %v2564_v49, %v2118_v32  ;;  %v2568_v14 = vsel %vm1051_vm6, %v2504_v3, %v2055_v26 }
 0x3ab   : > { %v2188_v1 = vpop.permute.xlu1 %2187  ;;  %v2186_v12 = vpop.permute.xlu0 %2185  ;;  %v2692_v6 = vsel %vm1117_vm8, %v2628_v30, %v2182_v23  ;;  %v2632_v60 = vsel %vm1084_vm7, %v2568_v14, %v2122_v16  ;;  %v7577_v14 = vld [vmem:[#allocation4_spill] sm:$0xff] }
 0x3ac   : > { %v2698_v35 = vsel %vm1117_vm8, %v2634_v33, %v2188_v1  ;;  %v2696_v10 = vsel %vm1117_vm8, %v2632_v60, %v2186_v12  ;;  %v7573_v12 = vld [vmem:[#allocation70_spill] sm:$0xff] }
 0x3ad   : > { %2145 = vrot.lane.b32.xlu1 %v7553_v13, %s4276_s28 }
 0x3ae   : > { %2143 = vrot.lane.b32.xlu0 %v7547_v41, %s4276_s28  ;;  %v7570_v41 = vld [vmem:[#allocation62_spill] sm:$0xff] }
 0x3af   : > { %v2246_v54 = vpop.permute.xlu1 %2245  ;;  %v2244_v40 = vpop.permute.xlu0 %2243 }
 0x3b0   : > { %v2757_v32 = vsel %vm1150_vm9, %v2694_v63, %v2246_v54  ;;  %v2755_v24 = vsel %vm1150_vm9, %v2692_v6, %v2244_v40  ;;  %v7572_v40 = vld [vmem:[#allocation63_spill] sm:$0xff] }
 0x3b1   : > { %2205 = vrot.lane.b32.xlu1 %v7549_v9, %s4277_s10 }
 0x3b2   : > { %2147 = vrot.lane.b32.xlu0 %v7564_v2, %s4276_s28 }
 0x3b3   : > { %v2250_v39 = vpop.permute.xlu1 %2249  ;;  %v2248_v18 = vpop.permute.xlu0 %2247 }
 0x3b4   : > { %v2761_v54 = vsel %vm1150_vm9, %v2698_v35, %v2250_v39  ;;  %v2759_v51 = vsel %vm1150_vm9, %v2696_v10, %v2248_v18  ;;  %v7580_v35 = vld [vmem:[#allocation92_spill] sm:$0xff] }
 0x3b5   : > { %2209 = vrot.lane.b32.xlu1 %v7570_v41, %s4277_s10 }
 0x3b6   : > { %2207 = vrot.lane.b32.xlu0 %v7550_v44, %s4277_s10 }
 0x3b7   : > { %v2310_v55 = vpop.permute.xlu1 %2309  ;;  %v2308_v56 = vpop.permute.xlu0 %2307 }
 0x3b8   : > { %v2821_v29 = vsel %vm1183_vm10, %v2757_v32, %v2310_v55  ;;  %v2819_v23 = vsel %vm1183_vm10, %v2755_v24, %v2308_v56  ;;  %v7579_v56 = vld [vmem:[#allocation5_spill] sm:$0xff] }
 0x3b9   : > { %v2956_v47 = vshrl.u32 %v2821_v29, 16  ;;  %v2959_v21 = vshll.u32 %v2821_v29, 16  ;;  %v2949_v15 = vshrl.u32 %v2819_v23, 16  ;;  %v2952_v26 = vshll.u32 %v2819_v23, 16  ;;  %2267 = vrot.lane.b32.xlu1 %v7551_v48, %s4278_s11  ;;  %v7581_v29 = vld [vmem:[#allocation2_spill] sm:$0xff] }
 0x3ba   : > { %2211 = vrot.lane.b32.xlu0 %v7572_v40, %s4277_s10  ;;  %v2382_v23 = vsel %vm952_vm3, %v7581_v29, %v7580_v35 }
 0x3bb   : > { %v2958_v16 = vrot.slane %v2956_v47, 3  ;;  %v2961_v1 = vrot.slane %v2959_v21, 4  ;;  %v2951_v62 = vrot.slane %v2949_v15, 3  ;;  %v2954_v45 = vrot.slane %v2952_v26, 4  ;;  %v2314_v52 = vpop.permute.xlu1 %2313  ;;  %v7582_v21 = vld [vmem:[#allocation87_spill] sm:$0xff]  ;;  %v7583_v15 = vld [vmem:[#allocation32_spill] sm:$0xff] }
 0x3bc   : > { %v2825_v11 = vsel %vm1183_vm10, %v2761_v54, %v2314_v52  ;;  %v2312_v8 = vpop.permute.xlu0 %2311  ;;  %v2380_v26 = vsel %vm952_vm3, %v7583_v15, %v7582_v21  ;;  %v7584_v54 = vld [vmem:[#allocation39_spill] sm:$0xff] }
 0x3bd   : > { %v2962_v5 = vor.u32 %v2961_v1, %v2958_v16  ;;  %v2955_v27 = vor.u32 %v2954_v45, %v2951_v62  ;;  %v2971_v48 = vshrl.u32 %v2825_v11, 16  ;;  %v2974_v38 = vshll.u32 %v2825_v11, 16  ;;  %2271 = vrot.lane.b32.xlu1 %v7573_v12, %s4278_s11  ;;  %v7585_v1 = vld [vmem:[#allocation86_spill] sm:$0xff]  ;;  %v7586_v45 = vld [vmem:[#allocation99_spill] sm:$0xff] }
 0x3be   : > { %v2823_v53 = vsel %vm1183_vm10, %v2759_v51, %v2312_v8  ;;  %2269 = vrot.lane.b32.xlu0 %v7552_v28, %s4278_s11  ;;  %v2446_v62 = vsel %vm985_vm4, %v2382_v23, %v7585_v1  ;;  %v7587_v52 = vld [vmem:[#allocation3_spill] sm:$0xff]  ;;  %v7588_v11 = vld [vmem:[#allocation102_spill] sm:$0xff] }
 0x3bf   : > { %v2973_v42 = vrot.slane %v2971_v48, 3  ;;  %v2976_v57 = vrot.slane %v2974_v38, 4  ;;  %v2964_v39 = vshrl.u32 %v2823_v53, 16  ;;  %v2967_v7 = vshll.u32 %v2823_v53, 16  ;;  %v2061_v18 = vpop.permute.xlu1 %2060  ;;  %v7589_v8 = vld [vmem:[#allocation27_spill] sm:$0xff]  ;;  %v7591_v38 = vld [vmem:[#allocation122_spill] sm:$0xff] }
 0x3c0   : > { %v2059_v61 = vpop.permute.xlu0 %2058  ;;  %v2963_v43 = vsel %vm2858_vm12, %v2955_v27, %v2962_v5  ;;  %v2384_v51 = vsel %vm952_vm3, %v7587_v52, %v7586_v45  ;;  %v2386_v5 = vsel %vm952_vm3, %v7589_v8, %v7588_v11  ;;  %v7590_v27 = vld [vmem:[#allocation85_spill] sm:$0xff] }
 0x3c1   : > { %v2977_v49 = vor.u32 %v2976_v57, %v2973_v42  ;;  %v2966_v0 = vrot.slane %v2964_v39, 3  ;;  %v2969_v50 = vrot.slane %v2967_v7, 4  ;;  %4121 = vmatprep.mubr.msk.bf16.mxu1 %vm1243_vm11, %v2963_v43  ;;  %2331 = vrot.lane.b32.xlu1 %v7553_v13, %s4279_s12  ;;  %v7576_v13 = vld [vmem:[#allocation67_spill] sm:$0xff]  ;;  %v2444_v48 = vsel %vm985_vm4, %v2380_v26, %v7590_v27 }
 0x3c2   : > { %2273 = vrot.lane.b32.xlu0 %v7574_v20, %s4278_s11  ;;  %v7592_v42 = vld [vmem:[#allocation11_spill] sm:$0xff] }
 0x3c3   : > { %v2970_v28 = vor.u32 %v2969_v50, %v2966_v0  ;;  %v2065_v37 = vpop.permute.xlu1 %2064  ;;  %v2508_v57 = vsel %vm1018_vm5, %v2444_v48, %v7592_v42  ;;  %v7593_v0 = vld [vmem:[#allocation14_spill] sm:$0xff]  ;;  %v7594_v50 = vld [vmem:[#allocation97_spill] sm:$0xff] }
 0x3c4   : > { %v2063_v36 = vpop.permute.xlu0 %2062  ;;  %v2572_v43 = vsel %vm1051_vm6, %v2508_v57, %v2059_v61  ;;  %v7599_v57 = vmov 0.0|0.0  }
 0x3c5   : > { %v2978_v30 = vsel %vm2858_vm12, %v2970_v28, %v2977_v49  ;;  %2335 = vrot.lane.b32.xlu1 %v7575_v17, %s4279_s12  ;;  %v7595_v28 = vld [vmem:[#allocation98_spill] sm:$0xff] }
 0x3c6   : > { %4122 = vmatmul.mubr.msk.bf16.gmra.mxu1 %vm1243_vm11, %v2978_v30  ;;  %2333 = vrot.lane.b32.xlu0 %v7564_v2, %s4279_s12  ;;  %v7578_v2 = vld [vmem:[#allocation40_spill] sm:$0xff]  ;;  %v2450_v30 = vsel %vm985_vm4, %v2386_v5, %v7595_v28 }
 0x3c7   : > { %v2128_v3 = vpop.permute.xlu1 %2127  ;;  %v2023_v60 = vshrl.u32 %v7578_v2, 16 }
 0x3c8   : > { %v2126_v46 = vpop.permute.xlu0 %2125 }
 0x3c9   : > { %2003 = vrot.lane.b32.xlu1 %v7570_v41, %s4274_s26  ;;  %v6615_v16 = vor.u32 %v2023_v60, %v7584_v54 }
 0x3ca   : > { %2337 = vrot.lane.b32.xlu0 %v7576_v13, %s4279_s12 }
 0x3cb   : > { %v2132_v63 = vpop.permute.xlu1 %2131 }
 0x3cc   : > { %v2130_v6 = vpop.permute.xlu0 %2129 }
 0x3cd   : > { %2007 = vrot.lane.b32.xlu1 %v7577_v14, %s4274_s26 }
 0x3ce   : > { %2005 = vrot.lane.b32.xlu0 %v7572_v40, %s4274_s26 }
 0x3cf   : > { %v2192_v33 = vpop.permute.xlu1 %2191 }
 0x3d0   : > { %v2190_v32 = vpop.permute.xlu0 %2189 }
 0x3d1   : > { %2082 = vrot.lane.b32.xlu1 %v7573_v12, %s4275_s27  ;;  %v2510_v12 = vsel %vm1018_vm5, %v2446_v62, %v7591_v38 }
 0x3d2   : > { %2009 = vrot.lane.b32.xlu0 %v7578_v2, %s4274_s26  ;;  %v2574_v39 = vsel %vm1051_vm6, %v2510_v12, %v2061_v18  ;;  %v7596_v18 = vld [vmem:[#allocation121_spill] sm:$0xff]  ;;  %s4026_s26 = sshll.u32 %s7634_s19, 8 }
 0x3d3   : > { %v2196_v24 = vpop.permute.xlu1 %2195  ;;  %v2638_v49 = vsel %vm1084_vm7, %v2574_v39, %v2128_v3  ;;  %v7597_v3 = vld [vmem:[#allocation124_spill] sm:$0xff]  ;;  %s6804_s19 = scalar_lea.vmem %s7160_s5, %s4026_s26 }
 0x3d4   : > { %v2194_v55 = vpop.permute.xlu0 %2193  ;;  %v2702_v60 = vsel %vm1117_vm8, %v2638_v49, %v2192_v33  ;;  %v2514_v35 = vsel %vm1018_vm5, %v2450_v30, %v7597_v3  ;;  %v7600_v3 = vld [vmem:[#allocation17_spill] sm:$0xff] }
 0x3d5   : > { %2086 = vrot.lane.b32.xlu1 %v7579_v56, %s4275_s27  ;;  %v2578_v15 = vsel %vm1051_vm6, %v2514_v35, %v2065_v37 }
 0x3d6   : > { %2084 = vrot.lane.b32.xlu0 %v7574_v20, %s4275_s27  ;;  %v2448_v20 = vsel %vm985_vm4, %v2384_v51, %v7594_v50  ;;  %v2642_v54 = vsel %vm1084_vm7, %v2578_v15, %v2132_v63  ;;  %v4216_v15 = vld [vmem:[%s4327_s23 + $0xc] sm:$0xf] }
 0x3d7   : > { %v2254_v47 = vpop.permute.xlu1 %2253  ;;  %v2512_v61 = vsel %vm1018_vm5, %v2448_v20, %v7596_v18  ;;  %v2706_v37 = vsel %vm1117_vm8, %v2642_v54, %v2196_v24 }
 0x3d8   : > { %v2252_v10 = vpop.permute.xlu0 %2251  ;;  %v2765_v23 = vsel %vm1150_vm9, %v2702_v60, %v2254_v47 }
 0x3d9   : > { %2149 = vrot.lane.b32.xlu1 %v7575_v17, %s4276_s28  ;;  %v2636_v17 = vsel %vm1084_vm7, %v2572_v43, %v2126_v46  ;;  %v2576_v46 = vsel %vm1051_vm6, %v2512_v61, %v2063_v36 }
 0x3da   : > { %2088 = vrot.lane.b32.xlu0 %v6615_v16, %s4275_s27  ;;  %v2700_v29 = vsel %vm1117_vm8, %v2636_v17, %v2190_v32  ;;  %v2640_v32 = vsel %vm1084_vm7, %v2576_v46, %v2130_v6  ;;  %v3345_v46 = vshll.u32 %v4216_v15, 16 }
 0x3db   : > { %v2258_v53 = vpop.permute.xlu1 %2257  ;;  %v2763_v33 = vsel %vm1150_vm9, %v2700_v29, %v2252_v10  ;;  %v7598_v10 = vld [vmem:[#allocation21_spill] sm:$0xff]  ;;  %v2704_v52 = vsel %vm1117_vm8, %v2640_v32, %v2194_v55 }
 0x3dc   : > { %v2256_v7 = vpop.permute.xlu0 %2255  ;;  %v2769_v63 = vsel %vm1150_vm9, %v2706_v37, %v2258_v53  ;;  %v4215_v29 = vld [vmem:[%s4327_s23 + $0x18] sm:$0xf]  ;;  %v4217_v32 = vld [vmem:[%s4327_s23 + $0x1c] sm:$0xf] }
 0x3dd   : > { %2153 = vrot.lane.b32.xlu1 %v7593_v0, %s4276_s28  ;;  %v2767_v5 = vsel %vm1150_vm9, %v2704_v52, %v2256_v7  ;;  %v3375_v37 = vshll.u32 %v4217_v32, 16 }
 0x3de   : > { %2151 = vrot.lane.b32.xlu0 %v7576_v13, %s4276_s28 }
 0x3df   : > { %v2318_v21 = vpop.permute.xlu1 %2317 }
 0x3e0   : > { %v2829_v26 = vsel %vm1183_vm10, %v2765_v23, %v2318_v21  ;;  %v2316_v13 = vpop.permute.xlu0 %2315  ;;  %v3366_v23 = vshrl.u32 %v4215_v29, 16  ;;  %v3369_v21 = vshll.u32 %v4215_v29, 16 }
 0x3e1   : > { %v2986_v1 = vshrl.u32 %v2829_v26, 16  ;;  %v2989_v62 = vshll.u32 %v2829_v26, 16  ;;  %v2827_v45 = vsel %vm1183_vm10, %v2763_v33, %v2316_v13  ;;  %2213 = vrot.lane.b32.xlu1 %v7577_v14, %s4277_s10 }
 0x3e2   : > { %v2979_v47 = vshrl.u32 %v2827_v45, 16  ;;  %v2982_v36 = vshll.u32 %v2827_v45, 16  ;;  %2155 = vrot.lane.b32.xlu0 %v7598_v10, %s4276_s28  ;;  %v3368_v13 = vrot.slane %v3366_v23, 4  ;;  %v3371_v54 = vrot.slane %v3369_v21, 5  ;;  %v7609_v23 = vld [vmem:[#allocation93_spill] sm:$0xff] }
 0x3e3   : > { %v2988_v51 = vrot.slane %v2986_v1, 3  ;;  %v2991_v11 = vrot.slane %v2989_v62, 4  ;;  %v2322_v8 = vpop.permute.xlu1 %2321  ;;  %v3347_v62 = vrot.slane %v3345_v46, 5 }
 0x3e4   : > { %v2981_v27 = vrot.slane %v2979_v47, 3  ;;  %v2984_v14 = vrot.slane %v2982_v36, 4  ;;  %v2833_v6 = vsel %vm1183_vm10, %v2769_v63, %v2322_v8  ;;  %v2320_v48 = vpop.permute.xlu0 %2319  ;;  %v4218_v47 = vld [vmem:[%s4327_s23 + $0x10] sm:$0xf] }
 0x3e5   : > { %v2992_v24 = vor.u32 %v2991_v11, %v2988_v51  ;;  %v3001_v38 = vshrl.u32 %v2833_v6, 16  ;;  %v3004_v12 = vshll.u32 %v2833_v6, 16  ;;  %v2831_v42 = vsel %vm1183_vm10, %v2767_v5, %v2320_v48  ;;  %2217 = vrot.lane.b32.xlu1 %v7599_v57, %s4277_s10 }
 0x3e6   : > { %v2985_v55 = vor.u32 %v2984_v14, %v2981_v27  ;;  %v2994_v53 = vshrl.u32 %v2831_v42, 16  ;;  %v2997_v39 = vshll.u32 %v2831_v42, 16  ;;  %2215 = vrot.lane.b32.xlu0 %v7578_v2, %s4277_s10  ;;  %v3351_v36 = vshll.u32 %v4218_v47, 16 }
 0x3e7   : > { %v3003_v7 = vrot.slane %v3001_v38, 3  ;;  %v3006_v43 = vrot.slane %v3004_v12, 4  ;;  %v6675_v49 = vpop.permute.xlu1 %2068  ;;  %v3355_v52 = vshrl.u32 %v4218_v47, 16  ;;  %v3372_v51 = vor.u32 %v3371_v54, %v3368_v13  ;;  %v7603_v12 = vld [vmem:[#allocation100_spill] sm:$0xff]  ;;  %v7612_v47 = vld [vmem:[#allocation105_spill] sm:$0xff] }
 0x3e8   : > { %v2996_v50 = vrot.slane %v2994_v53, 3  ;;  %v2999_v20 = vrot.slane %v2997_v39, 4  ;;  %v6677_v28 = vpop.permute.xlu0 %2066  ;;  %v2993_v30 = vsel %vm2858_vm12, %v2985_v55, %v2992_v24  ;;  %v3377_v5 = vrot.slane %v3375_v37, 5  ;;  %v7602_v24 = vld [vmem:[#allocation95_spill] sm:$0xff] }
 0x3e9   : > { %v3007_v17 = vor.u32 %v3006_v43, %v3003_v7  ;;  %4125 = vmatprep.mubr.msk.bf16.mxu1 %vm1243_vm11, %v2993_v30  ;;  %2277 = vrot.lane.b32.xlu1 %v6615_v16, %s4278_s11  ;;  %v3353_v27 = vrot.slane %v3351_v36, 5  ;;  %v3357_v6 = vrot.slane %v3355_v52, 4  ;;  %v2388_v38 = vsel %vm952_vm3, %v5598_v59, %v7602_v24  ;;  %v4219_v43 = vld [vmem:[%s4327_s23 + $0x20] sm:$0x1]  ;;  %v4220_v30 = vld [vmem:[%s4327_s23 + $0x14] sm:$0x1] }
 0x3ea   : > { %v3000_v60 = vor.u32 %v2999_v20, %v2996_v50  ;;  %2275 = vrot.lane.b32.xlu0 %v7579_v56, %s4278_s11  ;;  %v7601_v56 = vld [vmem:[#allocation7_spill] sm:$0xff]  ;;  %v2390_v42 = vsel %vm952_vm3, %v5610_v31, %v7603_v12  ;;  %v3373_v57 = vrot.slane %v3372_v51, 4  ;;  %v3385_v50 = vshll.u32 %v4219_v43, 16 }
 0x3eb   : > { %v6685_v2 = vpop.permute.xlu1 %2072  ;;  %v3358_v20 = vor.u32 %v3357_v6, %v3353_v27  ;;  %v2452_v21 = vsel %vm985_vm4, %v2388_v38, %v7609_v23 }
 0x3ec   : > { %v6687_v18 = vpop.permute.xlu0 %2070  ;;  %v3008_v61 = vsel %vm2858_vm12, %v3000_v60, %v3007_v17  ;;  %v3361_v17 = vshll.u32 %v4220_v30, 16  ;;  %v3378_v46 = vsel %vm6719_vm15, %v3373_v57, %v3377_v5 }
 0x3ed   : > { %4126 = vmatmul.mubr.msk.bf16.gmra.mxu1 %vm1243_vm11, %v3008_v61  ;;  %2339 = vrot.lane.b32.xlu1 %v7593_v0, %s4279_s12  ;;  %v3342_v0 = vshrl.u32 %v4216_v15, 16  ;;  %v7606_v61 = vld [vmem:[#allocation107_spill] sm:$0xff]  ;;  %v7610_v15 = vld [vmem:[#allocation126_spill] sm:$0xff]  ;;  %v3759_v57 = vunpack.c.l.bf16 %v3378_v46 }
 0x3ee   : > { %4169 = vrot.lane.b32.xlu0 %v7600_v3, %s4278_s11  ;;  %v2392_v59 = vsel %vm952_vm3, %v5734_v19, %v7606_v61  ;;  %v7607_v3 = vld [vmem:[#allocation110_spill] sm:$0xff] }
 0x3ef   : > { %v6695_v16 = vpop.permute.xlu1 %2135  ;;  %v3344_v1 = vrot.slane %v3342_v0, 4  ;;  %v2394_v31 = vsel %vm952_vm3, %v5745_v58, %v7607_v3  ;;  %v6743_v58 = vrot.slane %v3361_v17, 5  ;;  %v2456_v36 = vsel %vm985_vm4, %v2392_v59, %v7612_v47 }
 0x3f0   : > { %v6697_v35 = vpop.permute.xlu0 %2133 }
 0x3f1   : > { %2343 = vrot.lane.b32.xlu1 %v7601_v56, %s4279_s12  ;;  %v3348_v11 = vor.u32 %v3347_v62, %v3344_v1  ;;  %v3387_v1 = vrot.slane %v3385_v50, 5  ;;  %v6741_v62 = vrot.slane %v3358_v20, 4 }
 0x3f2   : > { %2341 = vrot.lane.b32.xlu0 %v7598_v10, %s4279_s12  ;;  %v3379_v10 = vshrl.u32 %v4217_v32, 16  ;;  %v7611_v32 = vld [vmem:[#allocation123_spill] sm:$0xff] }
 0x3f3   : > { %v6705_v33 = vpop.permute.xlu1 %2139  ;;  %v3349_v55 = vrot.slane %v3348_v11, 4  ;;  %v2516_v37 = vsel %vm1018_vm5, %v2452_v21, %v7611_v32 }
 0x3f4   : > { %v6707_v26 = vpop.permute.xlu0 %2137  ;;  %v3381_v14 = vrot.slane %v3379_v10, 4  ;;  %v7613_v10 = vld [vmem:[#allocation106_spill] sm:$0xff]  ;;  %v2580_v24 = vsel %vm1051_vm6, %v2516_v37, %v6677_v28  ;;  %v3364_v28 = vsel %vm6719_vm15, %v6741_v62, %v6743_v58 }
 0x3f5   : > { %v3354_v13 = vsel %vm6719_vm15, %v3349_v55, %v3353_v27  ;;  %v2458_v52 = vsel %vm985_vm4, %v2394_v31, %v7613_v10  ;;  %v2644_v12 = vsel %vm1084_vm7, %v2580_v24, %v6697_v35 }
 0x3f6   : > { %2345 = vrot.lane.b32.xlu0 %v7601_v56, %s4279_s12  ;;  %v3382_v7 = vor.u32 %v3381_v14, %v3377_v5  ;;  %v7608_v56 = vld [vmem:[#allocation96_spill] sm:$0xff]  ;;  %v7614_v5 = vld [vmem:[#allocation125_spill] sm:$0xff]  ;;  %v7615_v14 = vld [vmem:[#allocation127_spill] sm:$0xff] }
 0x3f7   : > { %v2200_v45 = vpop.permute.xlu1 %2199  ;;  %v2454_v29 = vsel %vm985_vm4, %v2390_v42, %v7608_v56  ;;  %v2520_v27 = vsel %vm1018_vm5, %v2456_v36, %v7614_v5  ;;  %v2522_v6 = vsel %vm1018_vm5, %v2458_v52, %v7615_v14 }
 0x3f8   : > { %v2198_v63 = vpop.permute.xlu0 %2197  ;;  %v2518_v0 = vsel %vm1018_vm5, %v2454_v29, %v7610_v15  ;;  %v3383_v54 = vrot.slane %v3382_v7, 4  ;;  %v2584_v35 = vsel %vm1051_vm6, %v2520_v27, %v6687_v18 }
 0x3f9   : > { %v2582_v51 = vsel %vm1051_vm6, %v2518_v0, %v6675_v49  ;;  %v3757_v49 = vunpack.c.l.bf16 %v3354_v13  ;;  %v2708_v55 = vsel %vm1117_vm8, %v2644_v12, %v2198_v63  ;;  %v2648_v59 = vsel %vm1084_vm7, %v2584_v35, %v6707_v26 }
 0x3fa   : > { %v2646_v38 = vsel %vm1084_vm7, %v2582_v51, %v6695_v16  ;;  %v3388_v50 = vsel %vm6719_vm15, %v3383_v54, %v3387_v1  ;;  %v2586_v16 = vsel %vm1051_vm6, %v2522_v6, %v6685_v2 }
 0x3fb   : > { %v2204_v8 = vpop.permute.xlu1 %2203  ;;  %v2710_v42 = vsel %vm1117_vm8, %v2646_v38, %v2200_v45  ;;  %v2650_v20 = vsel %vm1084_vm7, %v2586_v16, %v6705_v33  ;;  %v6789_v33 = vld [vmem:[%s7159_s4] ss:$0 sm:$0xff]  ;;  %v3760_v51 = vunpack.c.l.bf16 %v3388_v50 }
 0x3fc   : > { %v2202_v48 = vpop.permute.xlu0 %2201  ;;  %v2714_v2 = vsel %vm1117_vm8, %v2650_v20, %v2204_v8 }
 0x3fd   : > { %v2712_v18 = vsel %vm1117_vm8, %v2648_v59, %v2202_v48 }
 0x3ff   : > { %v2262_v53 = vpop.permute.xlu1 %2261 }
 0x400   : > { %v2260_v60 = vpop.permute.xlu0 %2259  ;;  %v2773_v7 = vsel %vm1150_vm9, %v2710_v42, %v2262_v53  ;;  %v3758_v42 = vunpack.c.l.bf16 %v3364_v28 }
 0x401   : > { %v2771_v45 = vsel %vm1150_vm9, %v2708_v55, %v2260_v60 }
 0x403   : > { %v2266_v19 = vpop.permute.xlu1 %2265 }
 0x404   : > { %v2264_v11 = vpop.permute.xlu0 %2263  ;;  %v2777_v60 = vsel %vm1150_vm9, %v2714_v2, %v2266_v19 }
 0x405   : > { %v2775_v21 = vsel %vm1150_vm9, %v2712_v18, %v2264_v11 }
 0x407   : > { %v2326_v43 = vpop.permute.xlu1 %2325 }
 0x408   : > { %v2837_v63 = vsel %vm1183_vm10, %v2773_v7, %v2326_v43  ;;  %v2324_v53 = vpop.permute.xlu0 %2323 }
 0x409   : > { %v3016_v30 = vshrl.u32 %v2837_v63, 16  ;;  %v3019_v17 = vshll.u32 %v2837_v63, 16  ;;  %v2835_v61 = vsel %vm1183_vm10, %v2771_v45, %v2324_v53 }
 0x40a   : > { %v3009_v3 = vshrl.u32 %v2835_v61, 16  ;;  %v3012_v31 = vshll.u32 %v2835_v61, 16 }
 0x40b   : > { %v3018_v56 = vrot.slane %v3016_v30, 3  ;;  %v3021_v29 = vrot.slane %v3019_v17, 4  ;;  %v2330_v23 = vpop.permute.xlu1 %2329 }
 0x40c   : > { %v3011_v26 = vrot.slane %v3009_v3, 3  ;;  %v3014_v15 = vrot.slane %v3012_v31, 4  ;;  %v2841_v8 = vsel %vm1183_vm10, %v2777_v60, %v2330_v23  ;;  %v2328_v0 = vpop.permute.xlu0 %2327  ;;  %v4111_v46 = vpop.f32.mrf.mxu1  ;;  %v4221_v3 = vld [vmem:[%s4327_s23 + $0x30] sm:$0xf]  ;;  %v4223_v23 = vld [vmem:[%s4327_s23 + $0x24] sm:$0xf] }
 0x40d   : > { %v3022_v48 = vor.u32 %v3021_v29, %v3018_v56  ;;  %v3031_v13 = vshrl.u32 %v2841_v8, 16  ;;  %v3034_v19 = vshll.u32 %v2841_v8, 16  ;;  %v2839_v54 = vsel %vm1183_vm10, %v2775_v21, %v2328_v0  ;;  %v4222_v56 = vld [vmem:[%s4327_s23 + $0x34] sm:$0xf]  ;;  %v4224_v8 = vld [vmem:[%s4327_s23 + $0x28] sm:$0xf] }
 0x40e   : > { %v3015_v1 = vor.u32 %v3014_v15, %v3011_v26  ;;  %v3024_v62 = vshrl.u32 %v2839_v54, 16  ;;  %v3027_v58 = vshll.u32 %v2839_v54, 16  ;;  %v3220_v32 = vadd.f32 %v4111_v46, %v6789_v33  ;;  %v3211_v37 = vpop.f32.mrf.mxu1 }
 0x40f   : > { %v3033_v47 = vrot.slane %v3031_v13, 3  ;;  %v3036_v36 = vrot.slane %v3034_v19, 4  ;;  %v3212_v10 = vadd.f32 %v6789_v33, %v3211_v37  ;;  %v6797_v52 = vpop.permute.xlu1 %1999  ;;  %v3414_v31 = vshrl.u32 %v4221_v3, 16 }
 0x410   : > { %v3026_v11 = vrot.slane %v3024_v62, 3  ;;  %v3029_v5 = vrot.slane %v3027_v58, 4  ;;  %v3791_v27 = vadd.f32 %v3759_v57, %v3220_v32  ;;  %v6799_v14 = vpop.permute.xlu0 %1997  ;;  %v4112_v6 = vpop.f32.mrf.mxu1  ;;  %v3023_v57 = vsel %vm2858_vm12, %v3015_v1, %v3022_v48 }
 0x411   : > { %v3037_v24 = vor.u32 %v3036_v36, %v3033_v47  ;;  %v3789_v38 = vadd.f32 %v3757_v49, %v3212_v10  ;;  %v3223_v12 = vadd.f32 %v4112_v6, %v6789_v33  ;;  %4129 = vmatprep.mubr.msk.bf16.mxu1 %vm1243_vm11, %v3023_v57  ;;  %v3417_v18 = vshll.u32 %v4221_v3, 16  ;;  %v7619_v3 = vld [vmem:[#allocation115_spill] sm:$0xff] }
 0x412   : > { %v3030_v55 = vor.u32 %v3029_v5, %v3026_v11  ;;  %v3823_v7 = vmax.f32 %v3791_v27, 0.0  ;;  %v3214_v43 = vpop.f32.mrf.mxu1  ;;  %v3423_v29 = vshll.u32 %v4222_v56, 16  ;;  %v3390_v21 = vshrl.u32 %v4223_v23, 16  ;;  %v4225_v27 = vld [vmem:[%s4327_s23 + $0x38] sm:$0x1] }
 0x413   : > { %v3821_v50 = vmax.f32 %v3789_v38, 0.0  ;;  %v3792_v16 = vadd.f32 %v3760_v51, %v3223_v12  ;;  %v3215_v35 = vadd.f32 %v6789_v33, %v3214_v43  ;;  %v6810_v45 = vpop.permute.xlu1 %2074  ;;  %v3393_v26 = vshll.u32 %v4223_v23, 16  ;;  %v7621_v23 = vld [vmem:[#allocation12_spill] sm:$0xff] }
 0x414   : > { %3855 = vst.msk [vmem:[%s6804_s19 + $0x10] sm:$0xff] %vm952_vm3, %v3823_v7  ;;  %v6814_v49 = vpop.permute.xlu0 %2001  ;;  %v3038_v28 = vsel %vm2858_vm12, %v3030_v55, %v3037_v24  ;;  %v3427_v15 = vshrl.u32 %v4222_v56, 16  ;;  %v3399_v0 = vshll.u32 %v4224_v8, 16  ;;  %v3403_v46 = vshrl.u32 %v4224_v8, 16  ;;  %v7616_v24 = vld [vmem:[#allocation103_spill] sm:$0xff]  ;;  %v7620_v56 = vld [vmem:[#allocation118_spill] sm:$0xff] }
 0x415   : > { %3853 = vst.msk [vmem:[%s6804_s19] sm:$0xff] %vm952_vm3, %v3821_v50  ;;  %v3824_v63 = vmax.f32 %v3792_v16, 0.0  ;;  %v3790_v53 = vadd.f32 %v3758_v42, %v3215_v35  ;;  %4130 = vmatmul.mubr.msk.bf16.gmra.mxu1 %vm1243_vm11, %v3038_v28  ;;  %v3416_v13 = vrot.slane %v3414_v31, 4  ;;  %v3419_v19 = vrot.slane %v3417_v18, 5  ;;  %v4226_v42 = vld [vmem:[%s4327_s23 + $0x2c] sm:$0x1] }
 0x416   : > { %v3425_v1 = vrot.slane %v3423_v29, 5  ;;  %v3392_v62 = vrot.slane %v3390_v21, 4  ;;  %v3395_v58 = vrot.slane %v3393_v26, 5  ;;  %v3429_v32 = vrot.slane %v3427_v15, 4  ;;  %v7617_v28 = vld [vmem:[#allocation101_spill] sm:$0xff] }
 0x417   : > { %3856 = vst.msk [vmem:[%s6804_s19 + $0x18] sm:$0xff] %vm952_vm3, %v3824_v63  ;;  %v3822_v20 = vmax.f32 %v3790_v53, 0.0  ;;  %v6822_v30 = vpop.permute.xlu1 %2078  ;;  %v3401_v37 = vrot.slane %v3399_v0, 5  ;;  %v3405_v47 = vrot.slane %v3403_v46, 4  ;;  %v3420_v10 = vor.u32 %v3419_v19, %v3416_v13  ;;  %v7618_v53 = vld [vmem:[#allocation108_spill] sm:$0xff]  ;;  %v7622_v46 = vld [vmem:[#allocation113_spill] sm:$0xff] }
 0x418   : > { %v6824_v17 = vpop.permute.xlu0 %2076  ;;  %v3396_v11 = vor.u32 %v3395_v58, %v3392_v62  ;;  %v3430_v5 = vor.u32 %v3429_v32, %v3425_v1  ;;  %v3433_v6 = vshll.u32 %v4225_v27, 16  ;;  %v2396_v38 = vsel %vm952_vm3, %v5698_v22, %v7616_v24  ;;  %v7623_v13 = vld [vmem:[#allocation104_spill] sm:$0xff]  ;;  %v7624_v58 = vld [vmem:[#allocation114_spill] sm:$0xff] }
 0x419   : > { %3854 = vst.msk [vmem:[%s6804_s19 + $0x8] sm:$0xff] %vm952_vm3, %v3822_v20  ;;  %v3406_v12 = vor.u32 %v3405_v47, %v3401_v37  ;;  %v3409_v55 = vshll.u32 %v4226_v42, 16  ;;  %v3421_v57 = vrot.slane %v3420_v10, 4  ;;  %v2460_v63 = vsel %vm985_vm4, %v2396_v38, %v7617_v28 }
 0x41a   : > { %v3397_v50 = vrot.slane %v3396_v11, 4  ;;  %v3431_v16 = vrot.slane %v3430_v5, 4  ;;  %v3435_v35 = vrot.slane %v3433_v6, 5  ;;  %v2398_v20 = vsel %vm952_vm3, %v5705_v34, %v7618_v53 }
 0x41b   : > { %v2142_v61 = vpop.permute.xlu1 %2141  ;;  %v2400_v22 = vsel %vm952_vm3, %v7540_v4, %v7619_v3  ;;  %v3407_v31 = vrot.slane %v3406_v12, 4  ;;  %v3411_v18 = vrot.slane %v3409_v55, 5  ;;  %v2402_v29 = vsel %vm952_vm3, %v7535_v25, %v7620_v56 }
 0x41c   : > { %v6828_v59 = vpop.permute.xlu0 %2080  ;;  %v2524_v21 = vsel %vm1018_vm5, %v2460_v63, %v7621_v23  ;;  %v3426_v15 = vsel %vm6719_vm15, %v3421_v57, %v3425_v1  ;;  %v3402_v4 = vsel %vm6719_vm15, %v3397_v50, %v3401_v37  ;;  %v3436_v0 = vsel %vm6719_vm15, %v3431_v16, %v3435_v35 }
 0x41d   : > { %v2588_v34 = vsel %vm1051_vm6, %v2524_v21, %v6810_v45  ;;  %v2464_v25 = vsel %vm985_vm4, %v2400_v22, %v7622_v46  ;;  %v2462_v19 = vsel %vm985_vm4, %v2398_v20, %v7623_v13  ;;  %v2466_v1 = vsel %vm985_vm4, %v2402_v29, %v7624_v58 }
 0x41e   : > { %v2652_v62 = vsel %vm1084_vm7, %v2588_v34, %v2142_v61  ;;  %v3763_v32 = vunpack.c.l.bf16 %v3426_v15  ;;  %v3412_v37 = vsel %vm6719_vm15, %v3407_v31, %v3411_v18  ;;  %v2528_v47 = vsel %vm1018_vm5, %v2464_v25, %v6797_v52 }
 0x41f   : > { %v6830_v2 = vpop.permute.xlu1 %2145  ;;  %v3761_v5 = vunpack.c.l.bf16 %v3402_v4  ;;  %v3764_v27 = vunpack.c.l.bf16 %v3436_v0  ;;  %v2526_v61 = vsel %vm1018_vm5, %v2462_v19, %v6799_v14  ;;  %v2530_v6 = vsel %vm1018_vm5, %v2466_v1, %v6814_v49 }
 0x420   : > { %v6833_v60 = vpop.permute.xlu0 %2143  ;;  %v2590_v52 = vsel %vm1051_vm6, %v2526_v61, %v6824_v17  ;;  %v2594_v12 = vsel %vm1051_vm6, %v2530_v6, %v6828_v59  ;;  %v3762_v14 = vunpack.c.l.bf16 %v3412_v37 }
 0x421   : > { %v2654_v49 = vsel %vm1084_vm7, %v2590_v52, %v6833_v60 }
 0x423   : > { %v2206_v48 = vpop.permute.xlu1 %2205 }
 0x424   : > { %v2148_v54 = vpop.permute.xlu0 %2147  ;;  %v2716_v45 = vsel %vm1117_vm8, %v2652_v62, %v2206_v48  ;;  %v2592_v48 = vsel %vm1051_vm6, %v2528_v47, %v6822_v30 }
 0x425   : > { %v2656_v42 = vsel %vm1084_vm7, %v2592_v48, %v6830_v2 }
 0x427   : > { %v2210_v36 = vpop.permute.xlu1 %2209 }
 0x428   : > { %v2208_v51 = vpop.permute.xlu0 %2207  ;;  %v2720_v30 = vsel %vm1117_vm8, %v2656_v42, %v2210_v36 }
 0x429   : > { %v2718_v50 = vsel %vm1117_vm8, %v2654_v49, %v2208_v51  ;;  %v4227_v49 = vld [vmem:[%s4327_s23 + $0x48] sm:$0xf] }
 0x42b   : > { %v2268_v7 = vpop.permute.xlu1 %2267 }
 0x42c   : > { %v2212_v43 = vpop.permute.xlu0 %2211  ;;  %v2779_v10 = vsel %vm1150_vm9, %v2716_v45, %v2268_v7  ;;  %v2658_v7 = vsel %vm1084_vm7, %v2594_v12, %v2148_v54 }
 0x42d   : > { %v2722_v36 = vsel %vm1117_vm8, %v2658_v7, %v2212_v43  ;;  %v3462_v7 = vshrl.u32 %v4227_v49, 16 }
 0x42f   : > { %v2272_v26 = vpop.permute.xlu1 %2271 }
 0x430   : > { %v2270_v8 = vpop.permute.xlu0 %2269  ;;  %v2783_v17 = vsel %vm1150_vm9, %v2720_v30, %v2272_v26  ;;  %v3465_v30 = vshll.u32 %v4227_v49, 16 }
 0x431   : > { %v2781_v2 = vsel %vm1150_vm9, %v2718_v50, %v2270_v8 }
 0x433   : > { %v2332_v11 = vpop.permute.xlu1 %2331 }
 0x434   : > { %v2843_v24 = vsel %vm1183_vm10, %v2779_v10, %v2332_v11  ;;  %v2274_v38 = vpop.permute.xlu0 %2273 }
 0x435   : > { %v4115_v55 = vpop.f32.mrf.mxu1  ;;  %v3039_v16 = vshrl.u32 %v2843_v24, 16  ;;  %v3042_v59 = vshll.u32 %v2843_v24, 16  ;;  %v2785_v26 = vsel %vm1150_vm9, %v2722_v36, %v2274_v38  ;;  %v3467_v36 = vrot.slane %v3465_v30, 5  ;;  %v7630_v30 = vld [vmem:[#allocation112_spill] sm:$0xff] }
 0x436   : > { %v3236_v57 = vadd.f32 %v4115_v55, %v6789_v33 }
 0x437   : > { %v3227_v35 = vpop.f32.mrf.mxu1  ;;  %v2336_v28 = vpop.permute.xlu1 %2335  ;;  %v3041_v23 = vrot.slane %v3039_v16, 3  ;;  %v3044_v21 = vrot.slane %v3042_v59, 4  ;;  %v4229_v16 = vld [vmem:[%s4327_s23 + $0x4c] sm:$0xf] }
 0x438   : > { %v3795_v63 = vadd.f32 %v3763_v32, %v3236_v57  ;;  %v3228_v53 = vadd.f32 %v6789_v33, %v3227_v35  ;;  %v2847_v60 = vsel %vm1183_vm10, %v2783_v17, %v2336_v28  ;;  %v2334_v54 = vpop.permute.xlu0 %2333  ;;  %v4228_v57 = vld [vmem:[%s4327_s23 + $0x3c] sm:$0xf]  ;;  %v3471_v59 = vshll.u32 %v4229_v16, 16  ;;  %v4230_v35 = vld [vmem:[%s4327_s23 + $0x40] sm:$0xf] }
 0x439   : > { %v3054_v20 = vshrl.u32 %v2847_v60, 16  ;;  %v3057_v3 = vshll.u32 %v2847_v60, 16  ;;  %v2845_v51 = vsel %vm1183_vm10, %v2781_v2, %v2334_v54  ;;  %v4116_v22 = vpop.f32.mrf.mxu1  ;;  %v3045_v47 = vor.u32 %v3044_v21, %v3041_v23 }
 0x43a   : > { %v3827_v31 = vmax.f32 %v3795_v63, 0.0  ;;  %v3793_v18 = vadd.f32 %v3761_v5, %v3228_v53  ;;  %v3046_v56 = vshrl.u32 %v2845_v51, 16  ;;  %v3049_v29 = vshll.u32 %v2845_v51, 16 }
 0x43b   : > { %v3239_v15 = vadd.f32 %v4116_v22, %v6789_v33  ;;  %v3230_v34 = vpop.f32.mrf.mxu1  ;;  %v6904_v8 = vpop.permute.xlu1 %2003  ;;  %v3056_v13 = vrot.slane %v3054_v20, 3  ;;  %v3059_v19 = vrot.slane %v3057_v3, 4  ;;  %v3438_v50 = vshrl.u32 %v4228_v57, 16 }
 0x43c   : > { %3859 = vst.msk [vmem:[%s6804_s19 + $0x30] sm:$0xff] %vm952_vm3, %v3827_v31  ;;  %v3825_v43 = vmax.f32 %v3793_v18, 0.0  ;;  %v3048_v4 = vrot.slane %v3046_v56, 3  ;;  %v3051_v0 = vrot.slane %v3049_v29, 4  ;;  %v3231_v46 = vadd.f32 %v6789_v33, %v3230_v34  ;;  %v2338_v25 = vpop.permute.xlu0 %2337 }
 0x43d   : > { %v3796_v62 = vadd.f32 %v3764_v27, %v3239_v15  ;;  %v2849_v58 = vsel %vm1183_vm10, %v2785_v26, %v2338_v25  ;;  %v3060_v24 = vor.u32 %v3059_v19, %v3056_v13  ;;  %v3441_v17 = vshll.u32 %v4228_v57, 16  ;;  %v4231_v15 = vld [vmem:[%s4327_s23 + $0x50] sm:$0x1] }
 0x43e   : > { %3857 = vst.msk [vmem:[%s6804_s19 + $0x20] sm:$0xff] %vm952_vm3, %v3825_v43  ;;  %v3052_v1 = vor.u32 %v3051_v0, %v3048_v4  ;;  %v3794_v45 = vadd.f32 %v3762_v14, %v3231_v46  ;;  %v3061_v32 = vshrl.u32 %v2849_v58, 16  ;;  %v3064_v37 = vshll.u32 %v2849_v58, 16  ;;  %v4232_v4 = vld [vmem:[%s4327_s23 + $0x44] sm:$0x1] }
 0x43f   : > { %v3828_v10 = vmax.f32 %v3796_v62, 0.0  ;;  %v6912_v11 = vpop.permute.xlu1 %2007  ;;  %v3447_v28 = vshll.u32 %v4230_v35, 16  ;;  %v3475_v2 = vshrl.u32 %v4229_v16, 16  ;;  %v3451_v63 = vshrl.u32 %v4230_v35, 16  ;;  %v7632_v16 = vld [vmem:[#allocation26_spill] sm:$0xff] }
 0x440   : > { %v3826_v5 = vmax.f32 %v3794_v45, 0.0  ;;  %v3063_v61 = vrot.slane %v3061_v32, 3  ;;  %v3066_v6 = vrot.slane %v3064_v37, 4  ;;  %v6914_v48 = vpop.permute.xlu0 %2005  ;;  %v3053_v27 = vsel %vm2858_vm12, %v3045_v47, %v3052_v1  ;;  %v7625_v32 = vld [vmem:[#allocation111_spill] sm:$0xff]  ;;  %v7626_v47 = vld [vmem:[#allocation116_spill] sm:$0xff] }
 0x441   : > { %3860 = vst.msk [vmem:[%s6804_s19 + $0x38] sm:$0xff] %vm952_vm3, %v3828_v10  ;;  %4133 = vmatprep.mubr.msk.bf16.mxu1 %vm1243_vm11, %v3053_v27  ;;  %v3464_v54 = vrot.slane %v3462_v7, 4  ;;  %v3440_v20 = vrot.slane %v3438_v50, 4  ;;  %v3443_v3 = vrot.slane %v3441_v17, 5  ;;  %v3473_v51 = vrot.slane %v3471_v59, 5  ;;  %v7628_v27 = vld [vmem:[#allocation120_spill] sm:$0xff] }
 0x442   : > { %3858 = vst.msk [vmem:[%s6804_s19 + $0x28] sm:$0xff] %vm952_vm3, %v3826_v5  ;;  %v3067_v38 = vor.u32 %v3066_v6, %v3063_v61  ;;  %v3449_v22 = vrot.slane %v3447_v28, 5  ;;  %v3477_v31 = vrot.slane %v3475_v2, 4  ;;  %v3453_v18 = vrot.slane %v3451_v63, 4  ;;  %v7627_v61 = vld [vmem:[#allocation10_spill] sm:$0xff]  ;;  %v7629_v7 = vld [vmem:[#allocation109_spill] sm:$0xff] }
 0x443   : > { %v6922_v52 = vpop.permute.xlu1 %2082  ;;  %v3468_v23 = vor.u32 %v3467_v36, %v3464_v54  ;;  %v3444_v21 = vor.u32 %v3443_v3, %v3440_v20  ;;  %v3481_v34 = vshll.u32 %v4231_v15, 16  ;;  %v3457_v0 = vshll.u32 %v4232_v4, 16  ;;  %v7631_v50 = vld [vmem:[#allocation117_spill] sm:$0xff] }
 0x444   : > { %v6924_v12 = vpop.permute.xlu0 %2009  ;;  %v3068_v42 = vsel %vm2858_vm12, %v3060_v24, %v3067_v38  ;;  %v3478_v26 = vor.u32 %v3477_v31, %v3473_v51  ;;  %v3454_v43 = vor.u32 %v3453_v18, %v3449_v22  ;;  %v2404_v37 = vsel %vm952_vm3, %v7549_v9, %v7625_v32 }
 0x445   : > { %4134 = vmatmul.mubr.msk.bf16.gmra.mxu1 %vm1243_vm11, %v3068_v42  ;;  %v3469_v13 = vrot.slane %v3468_v23, 4  ;;  %v3445_v19 = vrot.slane %v3444_v21, 4  ;;  %v3483_v58 = vrot.slane %v3481_v34, 5  ;;  %v3459_v45 = vrot.slane %v3457_v0, 5 }
 0x446   : > { %v3479_v62 = vrot.slane %v3478_v26, 4  ;;  %v3455_v1 = vrot.slane %v3454_v43, 4  ;;  %v2406_v10 = vsel %vm952_vm3, %v7550_v44, %v7626_v47  ;;  %v2408_v6 = vsel %vm952_vm3, %v7570_v41, %v7627_v61 }
 0x447   : > { %v6928_v55 = vpop.permute.xlu1 %2086  ;;  %v2410_v24 = vsel %vm952_vm3, %v7572_v40, %v7628_v27  ;;  %v3474_v42 = vsel %vm6719_vm15, %v3469_v13, %v3473_v51  ;;  %v3450_v9 = vsel %vm6719_vm15, %v3445_v19, %v3449_v22  ;;  %v2468_v41 = vsel %vm985_vm4, %v2404_v37, %v7629_v7 }
 0x448   : > { %v6930_v14 = vpop.permute.xlu0 %2084  ;;  %v3484_v44 = vsel %vm6719_vm15, %v3479_v62, %v3483_v58  ;;  %v3460_v49 = vsel %vm6719_vm15, %v3455_v1, %v3459_v45  ;;  %v2470_v57 = vsel %vm985_vm4, %v2406_v10, %v7630_v30  ;;  %v2532_v40 = vsel %vm1018_vm5, %v2468_v41, %v6904_v8 }
 0x449   : > { %v2472_v17 = vsel %vm985_vm4, %v2408_v6, %v7631_v50  ;;  %v2474_v59 = vsel %vm985_vm4, %v2410_v24, %v7632_v16  ;;  %v3767_v28 = vunpack.c.l.bf16 %v3474_v42  ;;  %v2596_v2 = vsel %vm1051_vm6, %v2532_v40, %v6922_v52 }
 0x44a   : > { %v3765_v54 = vunpack.c.l.bf16 %v3450_v9  ;;  %v3768_v36 = vunpack.c.l.bf16 %v3484_v44  ;;  %v3766_v20 = vunpack.c.l.bf16 %v3460_v49  ;;  %v2536_v3 = vsel %vm1018_vm5, %v2472_v17, %v6912_v11 }
 0x44b   : > { %v2150_v53 = vpop.permute.xlu1 %2149  ;;  %v2534_v8 = vsel %vm1018_vm5, %v2470_v57, %v6914_v48  ;;  %v2538_v51 = vsel %vm1018_vm5, %v2474_v59, %v6924_v12  ;;  %v2600_v18 = vsel %vm1051_vm6, %v2536_v3, %v6928_v55 }
 0x44c   : > { %v2089_v60 = vpop.permute.xlu0 %2088  ;;  %v2660_v22 = vsel %vm1084_vm7, %v2596_v2, %v2150_v53  ;;  %v2598_v52 = vsel %vm1051_vm6, %v2534_v8, %v6930_v14 }
 0x44d   : > { %v2602_v11 = vsel %vm1051_vm6, %v2538_v51, %v2089_v60 }
 0x44f   : > { %v2154_v56 = vpop.permute.xlu1 %2153 }
 0x450   : > { %v2152_v29 = vpop.permute.xlu0 %2151  ;;  %v2664_v48 = vsel %vm1084_vm7, %v2600_v18, %v2154_v56  ;;  %v4233_v18 = vld [vmem:[%s4327_s23 + $0x60] sm:$0xf] }
 0x451   : > { %v2662_v26 = vsel %vm1084_vm7, %v2598_v52, %v2152_v29  ;;  %v3510_v52 = vshrl.u32 %v4233_v18, 16 }
 0x453   : > { %v2214_v46 = vpop.permute.xlu1 %2213 }
 0x454   : > { %v2156_v25 = vpop.permute.xlu0 %2155  ;;  %v2724_v23 = vsel %vm1117_vm8, %v2660_v22, %v2214_v46 }
 0x455   : > { %v2666_v34 = vsel %vm1084_vm7, %v2602_v11, %v2156_v25 }
 0x457   : > { %v6944_v5 = vpop.permute.xlu1 %2217 }
 0x458   : > { %v2216_v38 = vpop.permute.xlu0 %2215  ;;  %v2728_v60 = vsel %vm1117_vm8, %v2664_v48, %v6944_v5  ;;  %v2729_v57 = vsel %vm1117_vm8, %v2666_v34, %v6944_v5 }
 0x459   : > { %v2726_v13 = vsel %vm1117_vm8, %v2662_v26, %v2216_v38  ;;  %v3512_v26 = vrot.slane %v3510_v52, 4 }
 0x45b   : > { %v2278_v35 = vpop.permute.xlu1 %2277 }
 0x45c   : > { %v2276_v63 = vpop.permute.xlu0 %2275  ;;  %v2789_v58 = vsel %vm1150_vm9, %v2726_v13, %v2278_v35 }
 0x45d   : > { %v4119_v31 = vpop.f32.mrf.mxu1  ;;  %v2787_v12 = vsel %vm1150_vm9, %v2724_v23, %v2276_v63  ;;  %v3513_v23 = vshll.u32 %v4233_v18, 16 }
 0x45e   : > { %v3252_v21 = vadd.f32 %v4119_v31, %v6789_v33 }
 0x45f   : > { %v3243_v53 = vpop.f32.mrf.mxu1  ;;  %v2340_v15 = vpop.permute.xlu1 %2339 }
 0x460   : > { %v3799_v55 = vadd.f32 %v3767_v28, %v3252_v21  ;;  %v3244_v43 = vadd.f32 %v6789_v33, %v3243_v53  ;;  %v2851_v14 = vsel %vm1183_vm10, %v2787_v12, %v2340_v15  ;;  %v4170_v4 = vpop.permute.xlu0 %4169  ;;  %v4234_v21 = vld [vmem:[%s4327_s23 + $0x54] sm:$0xf]  ;;  %v3515_v12 = vrot.slane %v3513_v23, 5  ;;  %v4235_v53 = vld [vmem:[%s4327_s23 + $0x64] sm:$0xf] }
 0x461   : > { %v3069_v0 = vshrl.u32 %v2851_v14, 16  ;;  %v3072_v56 = vshll.u32 %v2851_v14, 16  ;;  %v4171_v46 = vunpack.i.l.bf16 %v4170_v4  ;;  %v4120_v29 = vpop.f32.mrf.mxu1  ;;  %v4172_v45 = vunpack.i.h.bf16 %v4170_v4  ;;  %v4236_v14 = vld [vmem:[%s4327_s23 + $0x58] sm:$0xf] }
 0x462   : > { %v3831_v19 = vmax.f32 %v3799_v55, 0.0  ;;  %v3797_v62 = vadd.f32 %v3765_v54, %v3244_v43  ;;  %v3255_v25 = vadd.f32 %v4120_v29, %v6789_v33  ;;  %v3486_v11 = vshrl.u32 %v4234_v21, 16 }
 0x463   : > { %v3071_v1 = vrot.slane %v3069_v0, 3  ;;  %v3246_v32 = vpop.f32.mrf.mxu1  ;;  %v2344_v37 = vpop.permute.xlu1 %2343  ;;  %v2791_v47 = vsel %vm1150_vm9, %v2728_v60, %v4171_v46  ;;  %v3074_v38 = vrot.slane %v3072_v56, 4  ;;  %v2793_v59 = vsel %vm1150_vm9, %v2729_v57, %v4172_v45 }
 0x464   : > { %3863 = vst.msk [vmem:[%s6804_s19 + $0x50] sm:$0xff] %vm952_vm3, %v3831_v19  ;;  %v3829_v10 = vmax.f32 %v3797_v62, 0.0  ;;  %v3800_v61 = vadd.f32 %v3768_v36, %v3255_v25  ;;  %v3247_v6 = vadd.f32 %v6789_v33, %v3246_v32  ;;  %v2855_v27 = vsel %vm1183_vm10, %v2791_v47, %v2344_v37  ;;  %v2342_v24 = vpop.permute.xlu0 %2341  ;;  %v4238_v37 = vld [vmem:[%s4327_s23 + $0x5c] sm:$0x1] }
 0x465   : > { %v3084_v42 = vshrl.u32 %v2855_v27, 16  ;;  %v3087_v9 = vshll.u32 %v2855_v27, 16  ;;  %v2853_v44 = vsel %vm1183_vm10, %v2789_v58, %v2342_v24  ;;  %v3075_v35 = vor.u32 %v3074_v38, %v3071_v1  ;;  %v4237_v58 = vld [vmem:[%s4327_s23 + $0x68] sm:$0x1] }
 0x466   : > { %3861 = vst.msk [vmem:[%s6804_s19 + $0x40] sm:$0xff] %vm952_vm3, %v3829_v10  ;;  %v3832_v49 = vmax.f32 %v3800_v61, 0.0  ;;  %v3798_v7 = vadd.f32 %v3766_v20, %v3247_v6  ;;  %v3076_v41 = vshrl.u32 %v2853_v44, 16  ;;  %v3079_v30 = vshll.u32 %v2853_v44, 16 }
 0x467   : > { %v3086_v28 = vrot.slane %v3084_v42, 3  ;;  %v3089_v63 = vrot.slane %v3087_v9, 4  ;;  %v3489_v48 = vshll.u32 %v4234_v21, 16  ;;  %v3519_v15 = vshll.u32 %v4235_v53, 16 }
 0x468   : > { %3864 = vst.msk [vmem:[%s6804_s19 + $0x58] sm:$0xff] %vm952_vm3, %v3832_v49  ;;  %v3830_v40 = vmax.f32 %v3798_v7, 0.0  ;;  %v3078_v50 = vrot.slane %v3076_v41, 3  ;;  %v3081_v17 = vrot.slane %v3079_v30, 4  ;;  %v2346_v16 = vpop.permute.xlu0 %2345  ;;  %v3523_v34 = vshrl.u32 %v4235_v53, 16 }
 0x469   : > { %v2857_v2 = vsel %vm1183_vm10, %v2793_v59, %v2346_v16  ;;  %v3090_v51 = vor.u32 %v3089_v63, %v3086_v28  ;;  %v3488_v55 = vrot.slane %v3486_v11, 4  ;;  %v3491_v43 = vrot.slane %v3489_v48, 5  ;;  %v4241_v11 = vld [vmem:[%s4327_s23 + $0x7c] sm:$0xf] }
 0x46a   : > { %3862 = vst.msk [vmem:[%s6804_s19 + $0x48] sm:$0xff] %vm952_vm3, %v3830_v40  ;;  %v3082_v54 = vor.u32 %v3081_v17, %v3078_v50  ;;  %v3091_v36 = vshrl.u32 %v2857_v2, 16  ;;  %v3094_v5 = vshll.u32 %v2857_v2, 16  ;;  %v3495_v4 = vshll.u32 %v4236_v14, 16 }
 0x46b   : > { %v3499_v60 = vshrl.u32 %v4236_v14, 16  ;;  %v3516_v0 = vor.u32 %v3515_v12, %v3512_v26  ;;  %v3521_v56 = vrot.slane %v3519_v15, 5  ;;  %v3525_v46 = vrot.slane %v3523_v34, 4  ;;  %v4242_v15 = vld [vmem:[%s4327_s23 + $0x70] sm:$0xf] }
 0x46c   : > { %v3093_v20 = vrot.slane %v3091_v36, 3  ;;  %v3096_v3 = vrot.slane %v3094_v5, 4  ;;  %v3083_v8 = vsel %vm2858_vm12, %v3075_v35, %v3082_v54  ;;  %v3492_v29 = vor.u32 %v3491_v43, %v3488_v55 }
 0x46d   : > { %4137 = vmatprep.mubr.msk.bf16.mxu1 %vm1243_vm11, %v3083_v8  ;;  %v3497_v13 = vrot.slane %v3495_v4, 5  ;;  %v3501_v19 = vrot.slane %v3499_v60, 4  ;;  %v3517_v62 = vrot.slane %v3516_v0, 4  ;;  %v3526_v25 = vor.u32 %v3525_v46, %v3521_v56  ;;  %v4239_v8 = vld [vmem:[%s4327_s23 + $0x78] sm:$0xf] }
 0x46e   : > { %v3097_v22 = vor.u32 %v3096_v3, %v3093_v20  ;;  %v3529_v1 = vshll.u32 %v4237_v58, 16  ;;  %v3493_v45 = vrot.slane %v3492_v29, 4  ;;  %v3505_v47 = vshll.u32 %v4238_v37, 16  ;;  %v4244_v58 = vld [vmem:[%s4327_s23 + $0x74] sm:$0x1] }
 0x46f   : > { %v3502_v32 = vor.u32 %v3501_v19, %v3497_v13  ;;  %v3522_v10 = vsel %vm6719_vm15, %v3517_v62, %v3521_v56  ;;  %v3527_v61 = vrot.slane %v3526_v25, 4  ;;  %v3567_v48 = vshll.u32 %v4241_v11, 16 }
 0x470   : > { %v3098_v31 = vsel %vm2858_vm12, %v3090_v51, %v3097_v22  ;;  %v3531_v6 = vrot.slane %v3529_v1, 5  ;;  %v3498_v27 = vsel %vm6719_vm15, %v3493_v45, %v3497_v13  ;;  %v3507_v38 = vrot.slane %v3505_v47, 5  ;;  %v4243_v13 = vld [vmem:[%s4327_s23 + $0x80] sm:$0x1] }
 0x471   : > { %4138 = vmatmul.mubr.msk.bf16.gmra.mxu1 %vm1243_vm11, %v3098_v31  ;;  %v3503_v24 = vrot.slane %v3502_v32, 4  ;;  %v3771_v42 = vunpack.c.l.bf16 %v3522_v10  ;;  %v3769_v7 = vunpack.c.l.bf16 %v3498_v27  ;;  %v3558_v51 = vshrl.u32 %v4239_v8, 16  ;;  %v4240_v31 = vld [vmem:[%s4327_s23 + $0x6c] sm:$0xf] }
 0x472   : > { %v3532_v44 = vsel %vm6719_vm15, %v3527_v61, %v3531_v6  ;;  %v3561_v22 = vshll.u32 %v4239_v8, 16  ;;  %v3534_v18 = vshrl.u32 %v4240_v31, 16  ;;  %v3537_v52 = vshll.u32 %v4240_v31, 16 }
 0x473   : > { %v3508_v30 = vsel %vm6719_vm15, %v3503_v24, %v3507_v38  ;;  %v3772_v50 = vunpack.c.l.bf16 %v3532_v44  ;;  %v3560_v23 = vrot.slane %v3558_v51, 4  ;;  %v3571_v26 = vshrl.u32 %v4241_v11, 16 }
 0x474   : > { %v3770_v28 = vunpack.c.l.bf16 %v3508_v30  ;;  %v3563_v21 = vrot.slane %v3561_v22, 5  ;;  %v3536_v12 = vrot.slane %v3534_v18, 4  ;;  %v3539_v53 = vrot.slane %v3537_v52, 5  ;;  %v4247_v18 = vld [vmem:[%s4327_s23 + $0x94] sm:$0xf] }
 0x475   : > { %v3543_v34 = vshll.u32 %v4242_v15, 16  ;;  %v3547_v55 = vshrl.u32 %v4242_v15, 16  ;;  %v3569_v14 = vrot.slane %v3567_v48, 5  ;;  %v3573_v4 = vrot.slane %v3571_v26, 4  ;;  %v4248_v48 = vld [vmem:[%s4327_s23 + $0x88] sm:$0xf] }
 0x476   : > { %v3564_v43 = vor.u32 %v3563_v21, %v3560_v23  ;;  %v3540_v60 = vor.u32 %v3539_v53, %v3536_v12  ;;  %v3577_v19 = vshll.u32 %v4243_v13, 16  ;;  %v3553_v1 = vshll.u32 %v4244_v58, 16  ;;  %v4250_v13 = vld [vmem:[%s4327_s23 + $0x8c] sm:$0x1] }
 0x477   : > { %v3545_v0 = vrot.slane %v3543_v34, 5  ;;  %v3549_v56 = vrot.slane %v3547_v55, 4  ;;  %v3574_v29 = vor.u32 %v3573_v4, %v3569_v14  ;;  %v3615_v52 = vshll.u32 %v4247_v18, 16 }
 0x478   : > { %v3565_v46 = vrot.slane %v3564_v43, 4  ;;  %v3541_v62 = vrot.slane %v3540_v60, 4  ;;  %v3579_v37 = vrot.slane %v3577_v19, 5  ;;  %v3555_v61 = vrot.slane %v3553_v1, 5 }
 0x479   : > { %v3550_v25 = vor.u32 %v3549_v56, %v3545_v0  ;;  %v3575_v32 = vrot.slane %v3574_v29, 4  ;;  %v3619_v23 = vshrl.u32 %v4247_v18, 16  ;;  %v3591_v26 = vshll.u32 %v4248_v48, 16  ;;  %v4254_v18 = vld [vmem:[%s4327_s23 + $0xa0] sm:$0xf] }
 0x47a   : > { %v3570_v45 = vsel %vm6719_vm15, %v3565_v46, %v3569_v14  ;;  %v3546_v47 = vsel %vm6719_vm15, %v3541_v62, %v3545_v0  ;;  %v3595_v12 = vshrl.u32 %v4248_v48, 16  ;;  %v3617_v15 = vrot.slane %v3615_v52, 5  ;;  %v4249_v0 = vld [vmem:[%s4327_s23 + $0x98] sm:$0x1] }
 0x47b   : > { %v3551_v10 = vrot.slane %v3550_v25, 4  ;;  %v3775_v6 = vunpack.c.l.bf16 %v3570_v45  ;;  %v3580_v24 = vsel %vm6719_vm15, %v3575_v32, %v3579_v37  ;;  %v3621_v34 = vrot.slane %v3619_v23, 4 }
 0x47c   : > { %v3593_v43 = vrot.slane %v3591_v26, 5  ;;  %v3597_v14 = vrot.slane %v3595_v12, 4  ;;  %v3625_v56 = vshll.u32 %v4249_v0, 16  ;;  %v3601_v19 = vshll.u32 %v4250_v13, 16 }
 0x47d   : > { %v3556_v44 = vsel %vm6719_vm15, %v3551_v10, %v3555_v61  ;;  %v3622_v60 = vor.u32 %v3621_v34, %v3617_v15  ;;  %v3639_v52 = vshll.u32 %v4254_v18, 16  ;;  %v3643_v23 = vshrl.u32 %v4254_v18, 16 }
 0x47e   : > { %v3598_v29 = vor.u32 %v3597_v14, %v3593_v43  ;;  %v3627_v58 = vrot.slane %v3625_v56, 5  ;;  %v3603_v32 = vrot.slane %v3601_v19, 5 }
 0x47f   : > { %v3623_v25 = vrot.slane %v3622_v60, 4  ;;  %v3641_v12 = vrot.slane %v3639_v52, 5  ;;  %v4256_v60 = vld [vmem:[%s4327_s23 + $0xa4] sm:$0x1] }
 0x480   : > { %v3599_v45 = vrot.slane %v3598_v29, 4  ;;  %v3649_v0 = vshll.u32 %v4256_v60, 16 }
 0x481   : > { %v3628_v10 = vsel %vm6719_vm15, %v3623_v25, %v3627_v58 }
 0x486   : > { %v4123_v9 = vpop.f32.mrf.mxu1 }
 0x487   : > { %v3268_v49 = vadd.f32 %v4123_v9, %v6789_v33 }
 0x488   : > { %v3259_v41 = vpop.f32.mrf.mxu1 }
 0x489   : > { %v3803_v57 = vadd.f32 %v3771_v42, %v3268_v49  ;;  %v3260_v40 = vadd.f32 %v6789_v33, %v3259_v41  ;;  %v3773_v42 = vunpack.c.l.bf16 %v3546_v47  ;;  %v3776_v41 = vunpack.c.l.bf16 %v3580_v24 }
 0x48a   : > { %v4124_v17 = vpop.f32.mrf.mxu1  ;;  %v3604_v24 = vsel %vm6719_vm15, %v3599_v45, %v3603_v32  ;;  %v7110_v45 = vld [vmem:[%s7159_s4] ss:$0 sm:$0xff] }
 0x48b   : > { %v3835_v16 = vmax.f32 %v3803_v57, 0.0  ;;  %v3801_v59 = vadd.f32 %v3769_v7, %v3260_v40  ;;  %v3271_v35 = vadd.f32 %v4124_v17, %v6789_v33  ;;  %v3774_v17 = vunpack.c.l.bf16 %v3556_v44 }
 0x48c   : > { %v3262_v2 = vpop.f32.mrf.mxu1 }
 0x48d   : > { %3867 = vst.msk [vmem:[%s6804_s19 + $0x70] sm:$0xff] %vm952_vm3, %v3835_v16  ;;  %v3833_v63 = vmax.f32 %v3801_v59, 0.0  ;;  %v3804_v54 = vadd.f32 %v3772_v50, %v3271_v35  ;;  %v3263_v36 = vadd.f32 %v6789_v33, %v3262_v2 }
 0x48f   : > { %3865 = vst.msk [vmem:[%s6804_s19 + $0x60] sm:$0xff] %vm952_vm3, %v3833_v63  ;;  %v3836_v5 = vmax.f32 %v3804_v54, 0.0  ;;  %v3802_v20 = vadd.f32 %v3770_v28, %v3263_v36  ;;  %v4245_v36 = vld [vmem:[%s4327_s23 + $0x90] sm:$0xf] }
 0x491   : > { %3868 = vst.msk [vmem:[%s6804_s19 + $0x78] sm:$0xff] %vm952_vm3, %v3836_v5  ;;  %v3834_v3 = vmax.f32 %v3802_v20, 0.0  ;;  %v3606_v5 = vshrl.u32 %v4245_v36, 16  ;;  %v3609_v20 = vshll.u32 %v4245_v36, 16 }
 0x493   : > { %3866 = vst.msk [vmem:[%s6804_s19 + $0x68] sm:$0xff] %vm952_vm3, %v3834_v3  ;;  %v4246_v3 = vld [vmem:[%s4327_s23 + $0x84] sm:$0xf]  ;;  %v3608_v22 = vrot.slane %v3606_v5, 4  ;;  %v3611_v31 = vrot.slane %v3609_v20, 5 }
 0x494   : > { %v3582_v8 = vshrl.u32 %v4246_v3, 16  ;;  %v3585_v51 = vshll.u32 %v4246_v3, 16 }
 0x495   : > { %v3612_v53 = vor.u32 %v3611_v31, %v3608_v22 }
 0x496   : > { %v3584_v21 = vrot.slane %v3582_v8, 4  ;;  %v3587_v11 = vrot.slane %v3585_v51, 5  ;;  %v4253_v8 = vld [vmem:[%s4327_s23 + $0xac] sm:$0xf] }
 0x497   : > { %v3613_v4 = vrot.slane %v3612_v53, 4  ;;  %v3667_v51 = vshrl.u32 %v4253_v8, 16  ;;  %v3645_v53 = vrot.slane %v3643_v23, 4 }
 0x498   : > { %v3588_v55 = vor.u32 %v3587_v11, %v3584_v21 }
 0x499   : > { %v3618_v62 = vsel %vm6719_vm15, %v3613_v4, %v3617_v15  ;;  %v3669_v48 = vrot.slane %v3667_v51, 4  ;;  %v3646_v4 = vor.u32 %v3645_v53, %v3641_v12 }
 0x49a   : > { %v3589_v46 = vrot.slane %v3588_v55, 4  ;;  %v3779_v37 = vunpack.c.l.bf16 %v3618_v62  ;;  %v4255_v55 = vld [vmem:[%s4327_s23 + $0xb0] sm:$0x1]  ;;  %v3651_v62 = vrot.slane %v3649_v0, 5 }
 0x49b   : > { %v3647_v19 = vrot.slane %v3646_v4, 4 }
 0x49c   : > { %v3594_v1 = vsel %vm6719_vm15, %v3589_v46, %v3593_v43  ;;  %v3673_v43 = vshll.u32 %v4255_v55, 16  ;;  %v4263_v55 = vld [vmem:[%s4327_s23 + $0xbc] sm:$0x1] }
 0x49e   : > { %v3675_v29 = vrot.slane %v3673_v43, 5  ;;  %v3697_v43 = vshll.u32 %v4263_v55, 16 }
 0x4ad   : > { %v4127_v27 = vpop.f32.mrf.mxu1 }
 0x4ae   : > { %v3284_v38 = vadd.f32 %v4127_v27, %v6789_v33 }
 0x4af   : > { %v3275_v9 = vpop.f32.mrf.mxu1 }
 0x4b0   : > { %v3807_v49 = vadd.f32 %v3775_v6, %v3284_v38  ;;  %v3276_v7 = vadd.f32 %v6789_v33, %v3275_v9  ;;  %v3777_v6 = vunpack.c.l.bf16 %v3594_v1  ;;  %v3780_v9 = vunpack.c.l.bf16 %v3628_v10 }
 0x4b1   : > { %v4128_v30 = vpop.f32.mrf.mxu1  ;;  %v3652_v10 = vsel %vm6719_vm15, %v3647_v19, %v3651_v62 }
 0x4b2   : > { %v3839_v57 = vmax.f32 %v3807_v49, 0.0  ;;  %v3805_v40 = vadd.f32 %v3773_v42, %v3276_v7  ;;  %v3287_v50 = vadd.f32 %v4128_v30, %v6789_v33  ;;  %v3778_v30 = vunpack.c.l.bf16 %v3604_v24 }
 0x4b3   : > { %v3278_v16 = vpop.f32.mrf.mxu1 }
 0x4b4   : > { %3871 = vst.msk [vmem:[%s6804_s19 + $0x90] sm:$0xff] %vm952_vm3, %v3839_v57  ;;  %v3837_v59 = vmax.f32 %v3805_v40, 0.0  ;;  %v3808_v35 = vadd.f32 %v3776_v41, %v3287_v50  ;;  %v3279_v28 = vadd.f32 %v6789_v33, %v3278_v16 }
 0x4b6   : > { %3869 = vst.msk [vmem:[%s6804_s19 + $0x80] sm:$0xff] %vm952_vm3, %v3837_v59  ;;  %v3840_v2 = vmax.f32 %v3808_v35, 0.0  ;;  %v3806_v63 = vadd.f32 %v3774_v17, %v3279_v28  ;;  %v4251_v28 = vld [vmem:[%s4327_s23 + $0xa8] sm:$0xf] }
 0x4b8   : > { %3872 = vst.msk [vmem:[%s6804_s19 + $0x98] sm:$0xff] %vm952_vm3, %v3840_v2  ;;  %v3838_v54 = vmax.f32 %v3806_v63, 0.0  ;;  %v3654_v2 = vshrl.u32 %v4251_v28, 16  ;;  %v3657_v63 = vshll.u32 %v4251_v28, 16 }
 0x4ba   : > { %3870 = vst.msk [vmem:[%s6804_s19 + $0x88] sm:$0xff] %vm952_vm3, %v3838_v54  ;;  %v4252_v54 = vld [vmem:[%s4327_s23 + $0x9c] sm:$0xf]  ;;  %v3656_v20 = vrot.slane %v3654_v2, 4  ;;  %v3659_v3 = vrot.slane %v3657_v63, 5 }
 0x4bb   : > { %v3630_v36 = vshrl.u32 %v4252_v54, 16  ;;  %v3633_v5 = vshll.u32 %v4252_v54, 16 }
 0x4bc   : > { %v3660_v21 = vor.u32 %v3659_v3, %v3656_v20 }
 0x4bd   : > { %v3632_v22 = vrot.slane %v3630_v36, 4  ;;  %v3635_v31 = vrot.slane %v3633_v5, 5  ;;  %v4260_v36 = vld [vmem:[%s4327_s23 + $0xc4] sm:$0xf] }
 0x4be   : > { %v3661_v15 = vrot.slane %v3660_v21, 4  ;;  %v3711_v5 = vshll.u32 %v4260_v36, 16  ;;  %v3715_v20 = vshrl.u32 %v4260_v36, 16 }
 0x4bf   : > { %v3636_v26 = vor.u32 %v3635_v31, %v3632_v22 }
 0x4c0   : > { %v3713_v18 = vrot.slane %v3711_v5, 5  ;;  %v3717_v52 = vrot.slane %v3715_v20, 4 }
 0x4c1   : > { %v3637_v14 = vrot.slane %v3636_v26, 4 }
 0x4c2   : > { %v3718_v26 = vor.u32 %v3717_v52, %v3713_v18 }
 0x4c3   : > { %v3642_v13 = vsel %vm6719_vm15, %v3637_v14, %v3641_v12  ;;  %v4262_v12 = vld [vmem:[%s4327_s23 + $0xc8] sm:$0x1] }
 0x4c4   : > { %v3721_v53 = vshll.u32 %v4262_v12, 16  ;;  %v3719_v4 = vrot.slane %v3718_v26, 4 }
 0x4c6   : > { %v3723_v60 = vrot.slane %v3721_v53, 5 }
 0x4c8   : > { %v3724_v19 = vsel %vm6719_vm15, %v3719_v4, %v3723_v60 }
 0x4d5   : > { %v4131_v47 = vpop.f32.mrf.mxu1 }
 0x4d6   : > { %v3300_v61 = vadd.f32 %v4131_v47, %v6789_v33 }
 0x4d7   : > { %v3291_v27 = vpop.f32.mrf.mxu1 }
 0x4d8   : > { %v3811_v38 = vadd.f32 %v3779_v37, %v3300_v61  ;;  %v3292_v42 = vadd.f32 %v6789_v33, %v3291_v27  ;;  %v3781_v37 = vunpack.c.l.bf16 %v3642_v13 }
 0x4d9   : > { %v4132_v44 = vpop.f32.mrf.mxu1 }
 0x4da   : > { %v3843_v49 = vmax.f32 %v3811_v38, 0.0  ;;  %v3809_v7 = vadd.f32 %v3777_v6, %v3292_v42  ;;  %v3303_v41 = vadd.f32 %v4132_v44, %v6789_v33  ;;  %v3782_v44 = vunpack.c.l.bf16 %v3652_v10 }
 0x4db   : > { %v3294_v57 = vpop.f32.mrf.mxu1 }
 0x4dc   : > { %3875 = vst.msk [vmem:[%s6804_s19 + $0xb0] sm:$0xff] %vm952_vm3, %v3843_v49  ;;  %v3841_v40 = vmax.f32 %v3809_v7, 0.0  ;;  %v3812_v50 = vadd.f32 %v3780_v9, %v3303_v41  ;;  %v3295_v17 = vadd.f32 %v6789_v33, %v3294_v57  ;;  %v3663_v33 = vshll.u32 %v4253_v8, 16 }
 0x4de   : > { %3873 = vst.msk [vmem:[%s6804_s19 + $0xa0] sm:$0xff] %vm952_vm3, %v3841_v40  ;;  %v3844_v16 = vmax.f32 %v3812_v50, 0.0  ;;  %v3810_v59 = vadd.f32 %v3778_v30, %v3295_v17  ;;  %v3665_v11 = vrot.slane %v3663_v33, 5  ;;  %v4258_v17 = vld [vmem:[%s4327_s23 + $0xc0] sm:$0xf] }
 0x4df   : > { %v4261_v33 = vld [vmem:[%s4327_s23 + $0xb8] sm:$0xf] }
 0x4e0   : > { %3876 = vst.msk [vmem:[%s6804_s19 + $0xb8] sm:$0xff] %vm952_vm3, %v3844_v16  ;;  %v3842_v35 = vmax.f32 %v3810_v59, 0.0  ;;  %v3670_v34 = vor.u32 %v3669_v48, %v3665_v11  ;;  %v3666_v56 = vsel %vm6719_vm15, %v3661_v15, %v3665_v11  ;;  %v3702_v16 = vshrl.u32 %v4258_v17, 16 }
 0x4e1   : > { %v3783_v25 = vunpack.c.l.bf16 %v3666_v56  ;;  %v3705_v59 = vshll.u32 %v4258_v17, 16  ;;  %v3687_v51 = vshll.u32 %v4261_v33, 16  ;;  %v3691_v22 = vshrl.u32 %v4261_v33, 16 }
 0x4e2   : > { %3874 = vst.msk [vmem:[%s6804_s19 + $0xa8] sm:$0xff] %vm952_vm3, %v3842_v35  ;;  %v3671_v46 = vrot.slane %v3670_v34, 4  ;;  %v4259_v35 = vld [vmem:[%s4327_s23 + $0xb4] sm:$0xf]  ;;  %v3704_v63 = vrot.slane %v3702_v16, 4 }
 0x4e3   : > { %v3678_v28 = vshrl.u32 %v4259_v35, 16  ;;  %v3681_v2 = vshll.u32 %v4259_v35, 16  ;;  %v3707_v54 = vrot.slane %v3705_v59, 5  ;;  %v3689_v21 = vrot.slane %v3687_v51, 5 }
 0x4e4   : > { %v3676_v1 = vsel %vm6719_vm15, %v3671_v46, %v3675_v29  ;;  %v3693_v11 = vrot.slane %v3691_v22, 4  ;;  %v3699_v46 = vrot.slane %v3697_v43, 5 }
 0x4e5   : > { %v3784_v27 = vunpack.c.l.bf16 %v3676_v1  ;;  %v3680_v3 = vrot.slane %v3678_v28, 4  ;;  %v3683_v8 = vrot.slane %v3681_v2, 5  ;;  %v3708_v31 = vor.u32 %v3707_v54, %v3704_v63 }
 0x4e6   : > { %v3694_v34 = vor.u32 %v3693_v11, %v3689_v21 }
 0x4e7   : > { %v3684_v23 = vor.u32 %v3683_v8, %v3680_v3  ;;  %v3709_v48 = vrot.slane %v3708_v31, 4 }
 0x4e8   : > { %v3695_v56 = vrot.slane %v3694_v34, 4 }
 0x4e9   : > { %v3685_v15 = vrot.slane %v3684_v23, 4  ;;  %v3714_v14 = vsel %vm6719_vm15, %v3709_v48, %v3713_v18 }
 0x4ea   : > { %v3787_v29 = vunpack.c.l.bf16 %v3714_v14  ;;  %v3700_v1 = vsel %vm6719_vm15, %v3695_v56, %v3699_v46 }
 0x4eb   : > { %v3690_v0 = vsel %vm6719_vm15, %v3685_v15, %v3689_v21 }
 0x505   : > { %v4135_v58 = vpop.f32.mrf.mxu1 }
 0x506   : > { %v3316_v32 = vadd.f32 %v7110_v45, %v4135_v58 }
 0x507   : > { %v3307_v47 = vpop.f32.mrf.mxu1 }
 0x508   : > { %v3815_v61 = vadd.f32 %v3783_v25, %v3316_v32  ;;  %v3308_v6 = vadd.f32 %v7110_v45, %v3307_v47  ;;  %v3785_v25 = vunpack.c.l.bf16 %v3690_v0  ;;  %v3788_v47 = vunpack.c.l.bf16 %v3724_v19 }
 0x509   : > { %v4136_v24 = vpop.f32.mrf.mxu1 }
 0x50a   : > { %v3847_v38 = vmax.f32 %v3815_v61, 0.0  ;;  %v3813_v42 = vadd.f32 %v3781_v37, %v3308_v6  ;;  %v3319_v9 = vadd.f32 %v7110_v45, %v4136_v24  ;;  %v3786_v24 = vunpack.c.l.bf16 %v3700_v1 }
 0x50b   : > { %v3310_v49 = vpop.f32.mrf.mxu1 }
 0x50c   : > { %3879 = vst.msk [vmem:[%s6804_s19 + $0xd0] sm:$0xff] %vm952_vm3, %v3847_v38  ;;  %v3845_v7 = vmax.f32 %v3813_v42, 0.0  ;;  %v3816_v41 = vadd.f32 %v3784_v27, %v3319_v9  ;;  %v3311_v30 = vadd.f32 %v7110_v45, %v3310_v49 }
 0x50e   : > { %3877 = vst.msk [vmem:[%s6804_s19 + $0xc0] sm:$0xff] %vm952_vm3, %v3845_v7  ;;  %v3848_v57 = vmax.f32 %v3816_v41, 0.0  ;;  %v3814_v40 = vadd.f32 %v3782_v44, %v3311_v30 }
 0x510   : > { %3880 = vst.msk [vmem:[%s6804_s19 + $0xd8] sm:$0xff] %vm952_vm3, %v3848_v57  ;;  %v3846_v50 = vmax.f32 %v3814_v40, 0.0 }
 0x512   : > { %3878 = vst.msk [vmem:[%s6804_s19 + $0xc8] sm:$0xff] %vm952_vm3, %v3846_v50 }
 0x531   : > { %v4139_v13 = vpop.f32.mrf.mxu1 }
 0x532   : > { %v3332_v62 = vadd.f32 %v7110_v45, %v4139_v13 }
 0x533   : > { %v3323_v58 = vpop.f32.mrf.mxu1 }
 0x534   : > { %v3819_v32 = vadd.f32 %v3787_v29, %v3332_v62  ;;  %v3324_v37 = vadd.f32 %v7110_v45, %v3323_v58 }
 0x535   : > { %v4140_v10 = vpop.f32.mrf.mxu1 }
 0x536   : > { %v3851_v61 = vmax.f32 %v3819_v32, 0.0  ;;  %v3817_v6 = vadd.f32 %v3785_v25, %v3324_v37  ;;  %v3335_v27 = vadd.f32 %v7110_v45, %v4140_v10 }
 0x537   : > { %v3326_v38 = vpop.f32.mrf.mxu1 }
 0x538   : > { %3883 = vst.msk [vmem:[%s6804_s19 + $0xf0] sm:$0xff] %vm952_vm3, %v3851_v61  ;;  %v3849_v42 = vmax.f32 %v3817_v6, 0.0  ;;  %v3820_v9 = vadd.f32 %v3788_v47, %v3335_v27  ;;  %v3327_v39 = vadd.f32 %v7110_v45, %v3326_v38 }
 0x53a   : > { %3881 = vst.msk [vmem:[%s6804_s19 + $0xe0] sm:$0xff] %vm952_vm3, %v3849_v42  ;;  %v3852_v44 = vmax.f32 %v3820_v9, 0.0  ;;  %v3818_v49 = vadd.f32 %v3786_v24, %v3327_v39 }
 0x53c   : > { %3884 = vst.msk [vmem:[%s6804_s19 + $0xf8] sm:$0xff] %vm952_vm3, %v3852_v44  ;;  %v3850_v7 = vmax.f32 %v3818_v49, 0.0 }
 0x53e   : > { %3882 = vst.msk [vmem:[%s6804_s19 + $0xe8] sm:$0xff] %vm952_vm3, %v3850_v7 }
 0x53f PF: > { %s15_s18 = sadd.s32 1, %s4270_s18  }
 0x540   : > { %p12_p4 = scmp.ge.s32.totalorder %s15_s18, 4  }
 0x542   :  { %14 = sbr.rel (!%p12_p4) target bundleno = 1 (0x1), region = 70 }

</bundles_post_ra>
